<compile_context>
chip_gen: v5e
topology: v5e:2x2
jax: 0.10.0
libtpu: 0.0.40
codegen_flags: <defaults>
</compile_context>

<pallas_src>
import functools

import numpy as np
import jax
import jax.numpy as jnp
from jax.experimental import pallas as pl
from jax.experimental.pallas import tpu as pltpu


def cgcn_kernel(embed_ref, phase_ref, adj_ref,
                w1_ref, lb1_ref, gb1_ref,
                w2_ref, lb2_ref, gb2_ref,
                wfc_ref, bfc_ref,
                out_ref, *, num_classes, valid_len, use_vpu_agg):
    TB, L, D = embed_ref.shape
    P_pad = out_ref.shape[1]

    # bf16 is a storage/DMA/MXU-operand format; elementwise math stays f32
    # (v5e has no bf16 VPU/EUP datapath). Phase arrives in f32 for precision.
    emb = embed_ref[...].astype(jnp.float32)            # (TB, L, D)
    ph = phase_ref[...]                                  # (TB, L, D) f32
    adj = adj_ref[...].astype(jnp.float32)               # (TB, L, L)

    # Complex embedding (text_embed_dropout is identity in eval mode).
    x_r = emb * jnp.cos(ph)
    x_i = emb * jnp.sin(ph)

    # Degree normaliser (reference: sum(adj, dim=2) + 1) folded into the
    # adjacency once (exact f32 reciprocal on the small tensor), reused by
    # both conv layers.
    inv_deg = 1.0 / (jnp.sum(adj, axis=2, keepdims=True) + 1.0)   # (TB, L, 1)
    adj_n = adj * inv_deg                                          # (TB, L, L)
    adj_n_bf = None if use_vpu_agg else adj_n.astype(jnp.bfloat16)

    def cgraph_conv(x_r, x_i, w_ref, lb_ref, gb_ref):
        # ComplexLinear real part: xr@wr - xi@wi + lbr.
        # NOTE: the reference computes output_imag = output_real + bias_imag,
        # so the imaginary linear/aggregation results are dead code and are
        # never computed here (bit-for-bit the same math as the reference).
        xr = x_r.reshape(TB * L, D).astype(jnp.bfloat16)
        xi = x_i.reshape(TB * L, D).astype(jnp.bfloat16)
        h = (jnp.dot(xr, w_ref[0], preferred_element_type=jnp.float32)
             + jnp.dot(xi, w_ref[1], preferred_element_type=jnp.float32))
        h = (h + lb_ref[...]).reshape(TB, L, D)                    # f32

        if use_vpu_agg:
            # Small-L path: broadcast-FMA accumulation on the VPU (stays f32,
            # keeps the MXU slot free, avoids TB tiny per-sample matmuls).
            agg = adj_n[:, :, 0:1] * h[:, 0:1, :]
            for j in range(1, L):
                agg = agg + adj_n[:, :, j:j + 1] * h[:, j:j + 1, :]
        else:
            agg = jnp.einsum('bij,bjd->bid', adj_n_bf, h.astype(jnp.bfloat16),
                             preferred_element_type=jnp.float32)

        # out_r = agg + gbr ; out_i = out_r + gbi (reference asymmetry), ReLU.
        out_r = jnp.maximum(agg + gb_ref[0], 0.0)
        out_i = jnp.maximum(agg + gb_ref[1], 0.0)
        return out_r, out_i

    x_r, x_i = cgraph_conv(x_r, x_i, w1_ref, lb1_ref, gb1_ref)
    x_r, x_i = cgraph_conv(x_r, x_i, w2_ref, lb2_ref, gb2_ref)

    # Sum-pool over valid sequence positions; padded rows carry nonzero biases
    # after the conv layers and must be masked out.
    if valid_len != L:
        row = jax.lax.broadcasted_iota(jnp.int32, (TB, L, 1), 1)
        keep = row < valid_len
        x_r = jnp.where(keep, x_r, 0.0)
        x_i = jnp.where(keep, x_i, 0.0)
    s_r = jnp.sum(x_r, axis=1).astype(jnp.bfloat16)                # (TB, D)
    s_i = jnp.sum(x_i, axis=1).astype(jnp.bfloat16)

    # Complex FC head on pre-packed, lane-padded weights:
    #   o = [o_r | o_i] = s_r @ [wr|wi] + s_i @ [-wi|wr] + [br|bi]
    o = (jnp.dot(s_r, wfc_ref[0], preferred_element_type=jnp.float32)
         + jnp.dot(s_i, wfc_ref[1], preferred_element_type=jnp.float32)
         + bfc_ref[...])                                           # (TB, 2*P_pad)
    o_r = o[:, :P_pad]
    o_i = o[:, P_pad:]
    norms = jnp.sqrt(o_r * o_r + o_i * o_i) * (1.0 / 1.5)          # (TB, P_pad)

    # Softmax over the real classes only; padded lanes are masked out but the
    # final store stays lane-dense (full 128-wide vst, no masked partial stores).
    col = jax.lax.broadcasted_iota(jnp.int32, norms.shape, 1)
    masked = jnp.where(col < num_classes, norms, -1e30)
    m = jnp.max(masked, axis=-1, keepdims=True)
    e = jnp.exp(masked - m)
    # Exact divide for the final normalisation keeps probabilities summing to 1.
    out_ref[...] = e / jnp.sum(e, axis=-1, keepdims=True)


def pack_cgcn_params(params, num_classes, classes_padded):
    """Pre-pack the small weights/biases into MXU-friendly bf16 / f32 arrays."""
    D = params["wr1"].shape[0]
    P, P_pad = num_classes, classes_padded

    def pack_conv(wr, wi, gbr, gbi):
        w = jnp.stack([wr, -wi], axis=0).astype(jnp.bfloat16)        # (2, D, D)
        gb = jnp.stack([gbr[0], (gbr + gbi)[0]], axis=0)             # (2, D) f32
        return w, gb

    w1, gb1 = pack_conv(params["wr1"], params["wi1"], params["gbr1"], params["gbi1"])
    w2, gb2 = pack_conv(params["wr2"], params["wi2"], params["gbr2"], params["gbi2"])

    padc = jnp.zeros((D, P_pad - P), jnp.float32)
    padb = jnp.zeros((1, P_pad - P), jnp.float32)
    # wfc[0] = [wr | wi], wfc[1] = [-wi | wr], each class-block padded to P_pad lanes.
    wfc = jnp.stack(
        [jnp.concatenate([params["wr_fc"], padc, params["wi_fc"], padc], axis=1),
         jnp.concatenate([-params["wi_fc"], padc, params["wr_fc"], padc], axis=1)],
        axis=0).astype(jnp.bfloat16)                                 # (2, D, 2*P_pad)
    bfc = jnp.concatenate([params["br_fc"], padb, params["bi_fc"], padb], axis=1)

    # Note: lbi1/lbi2 (ComplexLinear imaginary biases) are dead in the reference
    # forward pass (output_imag is rebuilt from output_real) and are not packed.
    return dict(w1=w1, lb1=params["lbr1"], gb1=gb1,
                w2=w2, lb2=params["lbr2"], gb2=gb2,
                wfc=wfc, bfc=bfc)


def _per_sample_vmem_bytes(L, D, P_pad):
    # Double-buffered streamed blocks (embed bf16, phase f32, adj bf16, out f32)
    streamed = 2 * (L * D * 2 + L * D * 4 + L * L * 2 + P_pad * 4)
    # f32 intermediates (x_r, x_i, h, agg, out_r, out_i, adj_n) + bf16 copies
    interm = (6 * L * D + 2 * L * L) * 4 + (2 * L * D + L * L) * 2
    return streamed + interm


def _pick_batch_tile(B, L, D, P_pad, vmem_cap):
    per_sample = max(_per_sample_vmem_bytes(L, D, P_pad), 1)
    tb_vmem = (vmem_cap // 2) // per_sample              # target ~50% of VMEM
    # >= 2 grid steps whenever B > 8 so the "parallel" batch axis can feed both
    # v7x TensorCores; never tile beyond the 8-padded batch.
    tb_split = ((B + 1) // 2 + 7) // 8 * 8 if B > 8 else (B + 7) // 8 * 8
    tb = min(256, tb_vmem, tb_split)
    return max(8, (tb // 8) * 8)


def cgcn_forward(embed_real, phase, adj, params, *,
                 batch_tile=None, vpu_agg_max_len=32):
    B, L, D = embed_real.shape
    P = params["wr_fc"].shape[1]
    P_pad = ((P + 127) // 128) * 128
    L_pad = ((L + 7) // 8) * 8

    # VMEM capacity (128 MiB on v5e/v6e, 64 MiB per core on v7x); conservative
    # fallback if the query is unavailable.
    try:
        vmem_cap = int(pltpu.get_tpu_info().vmem_capacity_bytes)
    except Exception:
        vmem_cap = 64 * 1024 * 1024

    if batch_tile is None:
        batch_tile = _pick_batch_tile(B, L_pad, D, P_pad, vmem_cap)
    TB = batch_tile
    grid_b = pl.cdiv(B, TB)
    B_pad = grid_b * TB

    # bf16 storage for embed/adj halves their HBM traffic and is the native MXU
    # operand type; phase stays f32 (angle precision feeds cos/sin).
    embed_real = embed_real.astype(jnp.bfloat16)
    phase = phase.astype(jnp.float32)
    adj = adj.astype(jnp.bfloat16)          # exact for 0/1 adjacency entries

    pad_b, pad_l = B_pad - B, L_pad - L
    if pad_b or pad_l:
        embed_real = jnp.pad(embed_real, ((0, pad_b), (0, pad_l), (0, 0)))
        phase = jnp.pad(phase, ((0, pad_b), (0, pad_l), (0, 0)))
        adj = jnp.pad(adj, ((0, pad_b), (0, pad_l), (0, pad_l)))

    packed = pack_cgcn_params(params, P, P_pad)
    use_vpu_agg = L_pad <= vpu_agg_max_len

    per_batch = lambda last: pl.BlockSpec((TB, L_pad, last), lambda b: (b, 0, 0))
    shared2 = lambda shp: pl.BlockSpec(shp, lambda b: (0, 0))
    shared3 = lambda shp: pl.BlockSpec(shp, lambda b: (0, 0, 0))

    # NOTE: the three streamed specs could take pipeline_mode=pl.Buffered(3)
    # if a bundle dump shows exposed DMA; left at the default depth of 2.
    in_specs = [
        per_batch(D), per_batch(D), per_batch(L_pad),
        shared3((2, D, D)), shared2((1, D)), shared2((2, D)),
        shared3((2, D, D)), shared2((1, D)), shared2((2, D)),
        shared3((2, D, 2 * P_pad)), shared2((1, 2 * P_pad)),
    ]
    out_spec = pl.BlockSpec((TB, P_pad), lambda b: (b, 0))

    # Explicit scoped-VMEM limit sized to the tile (+~50% headroom), clamped
    # to 90% of physical VMEM.
    weight_bytes = (2 * (2 * D * D * 2 + D * 4 + 2 * D * 4)
                    + 2 * D * 2 * P_pad * 2 + 2 * P_pad * 4)
    est_bytes = TB * _per_sample_vmem_bytes(L_pad, D, P_pad) + 2 * weight_bytes
    vmem_limit = int(min(vmem_cap * 9 // 10,
                         max(est_bytes * 3 // 2, 32 * 1024 * 1024)))

    flops = int(B_pad * (2 * (4 * L_pad * D * D + 2 * L_pad * L_pad * D)
                         + 4 * D * 2 * P_pad))
    transcendentals = int(B_pad * (2 * L_pad * D + P_pad))
    bytes_accessed = int(B_pad * (L_pad * D * 2 + L_pad * D * 4
                                  + L_pad * L_pad * 2 + P_pad * 4)
                         + weight_bytes)

    out = pl.pallas_call(
        functools.partial(cgcn_kernel, num_classes=P, valid_len=L,
                          use_vpu_agg=use_vpu_agg),
        out_shape=jax.ShapeDtypeStruct((B_pad, P_pad), jnp.float32),
        grid=(grid_b,),
        in_specs=in_specs,
        out_specs=out_spec,
        compiler_params=pltpu.CompilerParams(
            dimension_semantics=("parallel",),
            vmem_limit_bytes=vmem_limit),
        cost_estimate=pl.CostEstimate(
            flops=flops, transcendentals=transcendentals,
            bytes_accessed=bytes_accessed),
    )(embed_real, phase, adj,
      packed["w1"], packed["lb1"], packed["gb1"],
      packed["w2"], packed["lb2"], packed["gb2"],
      packed["wfc"], packed["bfc"])

    return out[:B, :P]


# ---------------- parameter / input construction (deterministic) ----------------

def xavier_uniform(key, shape):
    fan_in, fan_out = shape
    a = float(np.sqrt(6.0 / (fan_in + fan_out)))
    return jax.random.uniform(key, shape, jnp.float32, -a, a)


def bias_uniform(key, n):
    stdv = 1.0 / float(np.sqrt(n))
    return jax.random.uniform(key, (1, n), jnp.float32, -stdv, stdv)


def sinusoid_word_table(vocab_size, d_hid, padding_idx=0):
    # get_sinusoid_encoding_table with vocob_size (schema 0): every row is
    # [1 / 10000^(j/d) for j in range(d)], padding row zeroed.
    row = np.array([1.0 / np.power(10000.0, j / d_hid) for j in range(d_hid)],
                   dtype=np.float32)
    tbl = np.tile(row[None, :], (vocab_size, 1))
    if padding_idx is not None:
        tbl[padding_idx] = 0.0
    return jnp.asarray(tbl)


if __name__ == "__main__":
    B, L, D, P, V = 2, 8, 32, 3, 20   # batch, seq, hidden(=embedding_dim), polarities, vocab

    key = jax.random.PRNGKey(0)
    ks = jax.random.split(key, 24)

    # "pretrained" embedding matrix
    embedding_matrix = jax.random.normal(ks[0], (V, D), jnp.float32)
    # sinusoid position-period table (schema=0, padding_idx=0)
    sin_table = sinusoid_word_table(V, D, padding_idx=0)

    # inputs: all indices nonzero so text_lens.max() == L (matches torch broadcast)
    text_indices = jax.random.randint(ks[1], (B, L), 1, V)
    adj_raw = jax.random.uniform(ks[2], (B, L, L), jnp.float32)
    adj = (adj_raw > 0.5).astype(jnp.float32)

    # glue: embedding gathers and phase construction (stay in XLA)
    # TODO(synk): the nn.Embedding gathers remain XLA glue; only the dense math is in Pallas.
    enc_output_real = embedding_matrix[text_indices]             # (B, L, D)
    emb_period = sin_table[text_indices]                         # (B, L, D)
    pos_seq = jnp.arange(1, L + 1, dtype=jnp.float32)[:, None]   # (L, 1)
    phase = pos_seq * emb_period                                 # (B, L, D)

    params = {
        # gc1 : ComplexLinear weights/biases + CGraphConvolution biases
        "wr1": xavier_uniform(ks[3], (D, D)), "wi1": xavier_uniform(ks[4], (D, D)),
        "lbr1": bias_uniform(ks[5], D), "lbi1": bias_uniform(ks[6], D),
        "gbr1": bias_uniform(ks[7], D), "gbi1": bias_uniform(ks[8], D),
        # gc2
        "wr2": xavier_uniform(ks[9], (D, D)), "wi2": xavier_uniform(ks[10], (D, D)),
        "lbr2": bias_uniform(ks[11], D), "lbi2": bias_uniform(ks[12], D),
        "gbr2": bias_uniform(ks[13], D), "gbi2": bias_uniform(ks[14], D),
        # complex_fc
        "wr_fc": xavier_uniform(ks[15], (D, P)), "wi_fc": xavier_uniform(ks[16], (D, P)),
        "br_fc": bias_uniform(ks[17], P), "bi_fc": bias_uniform(ks[18], P),
    }

    out = cgcn_forward(enc_output_real, phase, adj, params)
    out = jax.block_until_ready(out)

    assert out.shape == (B, P)
    assert bool(jnp.all(jnp.isfinite(out)))
    assert bool(jnp.allclose(jnp.sum(out, axis=-1), 1.0, atol=1e-5))
    print("KERNEL_OK")
</pallas_src>

<mosaic_0001>
module attributes {stable_mosaic.version = 11 : i64} {
  func.func @cgcn_kernel(%arg0: i32, %arg1: memref<8x8x32xbf16, #tpu.memory_space<vmem>>, %arg2: memref<8x8x32xf32, #tpu.memory_space<vmem>>, %arg3: memref<8x8x8xbf16, #tpu.memory_space<vmem>>, %arg4: memref<2x32x32xbf16, #tpu.memory_space<vmem>>, %arg5: memref<1x32xf32, #tpu.memory_space<vmem>>, %arg6: memref<2x32xf32, #tpu.memory_space<vmem>>, %arg7: memref<2x32x32xbf16, #tpu.memory_space<vmem>>, %arg8: memref<1x32xf32, #tpu.memory_space<vmem>>, %arg9: memref<2x32xf32, #tpu.memory_space<vmem>>, %arg10: memref<2x32x256xbf16, #tpu.memory_space<vmem>>, %arg11: memref<1x256xf32, #tpu.memory_space<vmem>>, %arg12: memref<8x128xf32, #tpu.memory_space<vmem>>) attributes {dimension_semantics = [#tpu.dimension_semantics<parallel>], iteration_bounds = array<i64: 1>, scalar_prefetch = 0 : i64, scratch_operands = 0 : i64, tpu.core_type = #tpu.core_type<tc>, window_params = [{transform_indices = @transform_0, window_bounds = array<i64: 8, 8, 32>}, {transform_indices = @transform_1, window_bounds = array<i64: 8, 8, 32>}, {transform_indices = @transform_2, window_bounds = array<i64: 8, 8, 8>}, {pipeline_mode = #tpu.pipeline_mode<synchronous>, transform_indices = @transform_3, window_bounds = array<i64: 2, 32, 32>}, {pipeline_mode = #tpu.pipeline_mode<synchronous>, transform_indices = @transform_4, window_bounds = array<i64: 1, 32>}, {pipeline_mode = #tpu.pipeline_mode<synchronous>, transform_indices = @transform_5, window_bounds = array<i64: 2, 32>}, {pipeline_mode = #tpu.pipeline_mode<synchronous>, transform_indices = @transform_6, window_bounds = array<i64: 2, 32, 32>}, {pipeline_mode = #tpu.pipeline_mode<synchronous>, transform_indices = @transform_7, window_bounds = array<i64: 1, 32>}, {pipeline_mode = #tpu.pipeline_mode<synchronous>, transform_indices = @transform_8, window_bounds = array<i64: 2, 32>}, {pipeline_mode = #tpu.pipeline_mode<synchronous>, transform_indices = @transform_9, window_bounds = array<i64: 2, 32, 256>}, {pipeline_mode = #tpu.pipeline_mode<synchronous>, transform_indices = @transform_10, window_bounds = array<i64: 1, 256>}, {transform_indices = @transform_11, window_bounds = array<i64: 8, 128>}]} {
    %c0 = arith.constant 0 : index
    %c0_0 = arith.constant 0 : index
    %c0_1 = arith.constant 0 : index
    %0 = vector.load %arg1[%c0, %c0_0, %c0_1] : memref<8x8x32xbf16, #tpu.memory_space<vmem>>, vector<8x8x32xbf16>
    %1 = arith.extf %0 : vector<8x8x32xbf16> to vector<8x8x32xf32>
    %c0_2 = arith.constant 0 : index
    %c0_3 = arith.constant 0 : index
    %c0_4 = arith.constant 0 : index
    %2 = vector.load %arg2[%c0_2, %c0_3, %c0_4] : memref<8x8x32xf32, #tpu.memory_space<vmem>>, vector<8x8x32xf32>
    %c0_5 = arith.constant 0 : index
    %c0_6 = arith.constant 0 : index
    %c0_7 = arith.constant 0 : index
    %3 = vector.load %arg3[%c0_5, %c0_6, %c0_7] : memref<8x8x8xbf16, #tpu.memory_space<vmem>>, vector<8x8x8xbf16>
    %4 = arith.extf %3 : vector<8x8x8xbf16> to vector<8x8x8xf32>
    %5 = math.cos %2 : vector<8x8x32xf32>
    %6 = arith.mulf %1, %5 : vector<8x8x32xf32>
    %7 = math.sin %2 : vector<8x8x32xf32>
    %8 = arith.mulf %1, %7 : vector<8x8x32xf32>
    %cst = arith.constant dense<0.000000e+00> : vector<8x8xf32>
    %9 = vector.multi_reduction <add>, %4, %cst [2] : vector<8x8x8xf32> to vector<8x8xf32>
    %10 = vector.shape_cast %9 : vector<8x8xf32> to vector<8x8x1xf32>
    %cst_8 = arith.constant 1.000000e+00 : f32
    %11 = vector.broadcast %cst_8 : f32 to vector<8x8x1xf32>
    %12 = arith.addf %10, %11 : vector<8x8x1xf32>
    %cst_9 = arith.constant 1.000000e+00 : f32
    %13 = vector.broadcast %cst_9 : f32 to vector<8x8x1xf32>
    %14 = arith.divf %13, %12 : vector<8x8x1xf32>
    %15 = vector.broadcast %14 : vector<8x8x1xf32> to vector<8x8x8xf32>
    %16 = arith.mulf %4, %15 : vector<8x8x8xf32>
    %17 = vector.shape_cast %6 : vector<8x8x32xf32> to vector<64x32xf32>
    %18 = arith.truncf %17 : vector<64x32xf32> to vector<64x32xbf16>
    %19 = vector.shape_cast %8 : vector<8x8x32xf32> to vector<64x32xf32>
    %20 = arith.truncf %19 : vector<64x32xf32> to vector<64x32xbf16>
    %c0_10 = arith.constant 0 : index
    %c0_11 = arith.constant 0 : index
    %c0_12 = arith.constant 0 : index
    %21 = vector.load %arg4[%c0_10, %c0_11, %c0_12] : memref<2x32x32xbf16, #tpu.memory_space<vmem>>, vector<1x32x32xbf16>
    %22 = vector.shape_cast %21 : vector<1x32x32xbf16> to vector<32x32xbf16>
    %cst_13 = arith.constant dense<0.000000e+00> : vector<64x32xf32>
    %23 = tpu.matmul %18, %22, %cst_13 {dimension_numbers = #tpu.dot_dimension_numbers<[1], [0], [0], [1], [0, 0, 1, 1], [], []>} : vector<64x32xbf16>, vector<32x32xbf16>, vector<64x32xf32> -> vector<64x32xf32>
    %c1 = arith.constant 1 : index
    %c0_14 = arith.constant 0 : index
    %c0_15 = arith.constant 0 : index
    %24 = vector.load %arg4[%c1, %c0_14, %c0_15] : memref<2x32x32xbf16, #tpu.memory_space<vmem>>, vector<1x32x32xbf16>
    %25 = vector.shape_cast %24 : vector<1x32x32xbf16> to vector<32x32xbf16>
    %cst_16 = arith.constant dense<0.000000e+00> : vector<64x32xf32>
    %26 = tpu.matmul %20, %25, %cst_16 {dimension_numbers = #tpu.dot_dimension_numbers<[1], [0], [0], [1], [0, 0, 1, 1], [], []>} : vector<64x32xbf16>, vector<32x32xbf16>, vector<64x32xf32> -> vector<64x32xf32>
    %27 = arith.addf %23, %26 : vector<64x32xf32>
    %c0_17 = arith.constant 0 : index
    %c0_18 = arith.constant 0 : index
    %28 = vector.load %arg5[%c0_17, %c0_18] : memref<1x32xf32, #tpu.memory_space<vmem>>, vector<1x32xf32>
    %29 = vector.broadcast %28 : vector<1x32xf32> to vector<64x32xf32>
    %30 = arith.addf %27, %29 : vector<64x32xf32>
    %31 = vector.shape_cast %30 : vector<64x32xf32> to vector<8x8x32xf32>
    %32 = vector.extract_strided_slice %16 {offsets = [0, 0, 0], sizes = [8, 8, 1], strides = [1, 1, 1]} : vector<8x8x8xf32> to vector<8x8x1xf32>
    %33 = vector.extract_strided_slice %31 {offsets = [0, 0, 0], sizes = [8, 1, 32], strides = [1, 1, 1]} : vector<8x8x32xf32> to vector<8x1x32xf32>
    %34 = vector.broadcast %32 : vector<8x8x1xf32> to vector<8x8x32xf32>
    %35 = vector.broadcast %33 : vector<8x1x32xf32> to vector<8x8x32xf32>
    %36 = arith.mulf %34, %35 : vector<8x8x32xf32>
    %37 = vector.extract_strided_slice %16 {offsets = [0, 0, 1], sizes = [8, 8, 1], strides = [1, 1, 1]} : vector<8x8x8xf32> to vector<8x8x1xf32>
    %38 = vector.extract_strided_slice %31 {offsets = [0, 1, 0], sizes = [8, 1, 32], strides = [1, 1, 1]} : vector<8x8x32xf32> to vector<8x1x32xf32>
    %39 = vector.broadcast %37 : vector<8x8x1xf32> to vector<8x8x32xf32>
    %40 = vector.broadcast %38 : vector<8x1x32xf32> to vector<8x8x32xf32>
    %41 = arith.mulf %39, %40 : vector<8x8x32xf32>
    %42 = arith.addf %36, %41 : vector<8x8x32xf32>
    %43 = vector.extract_strided_slice %16 {offsets = [0, 0, 2], sizes = [8, 8, 1], strides = [1, 1, 1]} : vector<8x8x8xf32> to vector<8x8x1xf32>
    %44 = vector.extract_strided_slice %31 {offsets = [0, 2, 0], sizes = [8, 1, 32], strides = [1, 1, 1]} : vector<8x8x32xf32> to vector<8x1x32xf32>
    %45 = vector.broadcast %43 : vector<8x8x1xf32> to vector<8x8x32xf32>
    %46 = vector.broadcast %44 : vector<8x1x32xf32> to vector<8x8x32xf32>
    %47 = arith.mulf %45, %46 : vector<8x8x32xf32>
    %48 = arith.addf %42, %47 : vector<8x8x32xf32>
    %49 = vector.extract_strided_slice %16 {offsets = [0, 0, 3], sizes = [8, 8, 1], strides = [1, 1, 1]} : vector<8x8x8xf32> to vector<8x8x1xf32>
    %50 = vector.extract_strided_slice %31 {offsets = [0, 3, 0], sizes = [8, 1, 32], strides = [1, 1, 1]} : vector<8x8x32xf32> to vector<8x1x32xf32>
    %51 = vector.broadcast %49 : vector<8x8x1xf32> to vector<8x8x32xf32>
    %52 = vector.broadcast %50 : vector<8x1x32xf32> to vector<8x8x32xf32>
    %53 = arith.mulf %51, %52 : vector<8x8x32xf32>
    %54 = arith.addf %48, %53 : vector<8x8x32xf32>
    %55 = vector.extract_strided_slice %16 {offsets = [0, 0, 4], sizes = [8, 8, 1], strides = [1, 1, 1]} : vector<8x8x8xf32> to vector<8x8x1xf32>
    %56 = vector.extract_strided_slice %31 {offsets = [0, 4, 0], sizes = [8, 1, 32], strides = [1, 1, 1]} : vector<8x8x32xf32> to vector<8x1x32xf32>
    %57 = vector.broadcast %55 : vector<8x8x1xf32> to vector<8x8x32xf32>
    %58 = vector.broadcast %56 : vector<8x1x32xf32> to vector<8x8x32xf32>
    %59 = arith.mulf %57, %58 : vector<8x8x32xf32>
    %60 = arith.addf %54, %59 : vector<8x8x32xf32>
    %61 = vector.extract_strided_slice %16 {offsets = [0, 0, 5], sizes = [8, 8, 1], strides = [1, 1, 1]} : vector<8x8x8xf32> to vector<8x8x1xf32>
    %62 = vector.extract_strided_slice %31 {offsets = [0, 5, 0], sizes = [8, 1, 32], strides = [1, 1, 1]} : vector<8x8x32xf32> to vector<8x1x32xf32>
    %63 = vector.broadcast %61 : vector<8x8x1xf32> to vector<8x8x32xf32>
    %64 = vector.broadcast %62 : vector<8x1x32xf32> to vector<8x8x32xf32>
    %65 = arith.mulf %63, %64 : vector<8x8x32xf32>
    %66 = arith.addf %60, %65 : vector<8x8x32xf32>
    %67 = vector.extract_strided_slice %16 {offsets = [0, 0, 6], sizes = [8, 8, 1], strides = [1, 1, 1]} : vector<8x8x8xf32> to vector<8x8x1xf32>
    %68 = vector.extract_strided_slice %31 {offsets = [0, 6, 0], sizes = [8, 1, 32], strides = [1, 1, 1]} : vector<8x8x32xf32> to vector<8x1x32xf32>
    %69 = vector.broadcast %67 : vector<8x8x1xf32> to vector<8x8x32xf32>
    %70 = vector.broadcast %68 : vector<8x1x32xf32> to vector<8x8x32xf32>
    %71 = arith.mulf %69, %70 : vector<8x8x32xf32>
    %72 = arith.addf %66, %71 : vector<8x8x32xf32>
    %73 = vector.extract_strided_slice %16 {offsets = [0, 0, 7], sizes = [8, 8, 1], strides = [1, 1, 1]} : vector<8x8x8xf32> to vector<8x8x1xf32>
    %74 = vector.extract_strided_slice %31 {offsets = [0, 7, 0], sizes = [8, 1, 32], strides = [1, 1, 1]} : vector<8x8x32xf32> to vector<8x1x32xf32>
    %75 = vector.broadcast %73 : vector<8x8x1xf32> to vector<8x8x32xf32>
    %76 = vector.broadcast %74 : vector<8x1x32xf32> to vector<8x8x32xf32>
    %77 = arith.mulf %75, %76 : vector<8x8x32xf32>
    %78 = arith.addf %72, %77 : vector<8x8x32xf32>
    %c0_19 = arith.constant 0 : index
    %c0_20 = arith.constant 0 : index
    %79 = vector.load %arg6[%c0_19, %c0_20] : memref<2x32xf32, #tpu.memory_space<vmem>>, vector<1x32xf32>
    %80 = vector.shape_cast %79 : vector<1x32xf32> to vector<32xf32>
    %81 = vector.shape_cast %80 : vector<32xf32> to vector<1x1x32xf32>
    %82 = vector.broadcast %81 : vector<1x1x32xf32> to vector<8x8x32xf32>
    %83 = arith.addf %78, %82 : vector<8x8x32xf32>
    %cst_21 = arith.constant 0.000000e+00 : f32
    %84 = vector.broadcast %cst_21 : f32 to vector<8x8x32xf32>
    %85 = arith.maximumf %83, %84 : vector<8x8x32xf32>
    %c1_22 = arith.constant 1 : index
    %c0_23 = arith.constant 0 : index
    %86 = vector.load %arg6[%c1_22, %c0_23] : memref<2x32xf32, #tpu.memory_space<vmem>>, vector<1x32xf32>
    %87 = vector.shape_cast %86 : vector<1x32xf32> to vector<32xf32>
    %88 = vector.shape_cast %87 : vector<32xf32> to vector<1x1x32xf32>
    %89 = vector.broadcast %88 : vector<1x1x32xf32> to vector<8x8x32xf32>
    %90 = arith.addf %78, %89 : vector<8x8x32xf32>
    %cst_24 = arith.constant 0.000000e+00 : f32
    %91 = vector.broadcast %cst_24 : f32 to vector<8x8x32xf32>
    %92 = arith.maximumf %90, %91 : vector<8x8x32xf32>
    %93 = vector.shape_cast %85 : vector<8x8x32xf32> to vector<64x32xf32>
    %94 = arith.truncf %93 : vector<64x32xf32> to vector<64x32xbf16>
    %95 = vector.shape_cast %92 : vector<8x8x32xf32> to vector<64x32xf32>
    %96 = arith.truncf %95 : vector<64x32xf32> to vector<64x32xbf16>
    %c0_25 = arith.constant 0 : index
    %c0_26 = arith.constant 0 : index
    %c0_27 = arith.constant 0 : index
    %97 = vector.load %arg7[%c0_25, %c0_26, %c0_27] : memref<2x32x32xbf16, #tpu.memory_space<vmem>>, vector<1x32x32xbf16>
    %98 = vector.shape_cast %97 : vector<1x32x32xbf16> to vector<32x32xbf16>
    %cst_28 = arith.constant dense<0.000000e+00> : vector<64x32xf32>
    %99 = tpu.matmul %94, %98, %cst_28 {dimension_numbers = #tpu.dot_dimension_numbers<[1], [0], [0], [1], [0, 0, 1, 1], [], []>} : vector<64x32xbf16>, vector<32x32xbf16>, vector<64x32xf32> -> vector<64x32xf32>
    %c1_29 = arith.constant 1 : index
    %c0_30 = arith.constant 0 : index
    %c0_31 = arith.constant 0 : index
    %100 = vector.load %arg7[%c1_29, %c0_30, %c0_31] : memref<2x32x32xbf16, #tpu.memory_space<vmem>>, vector<1x32x32xbf16>
    %101 = vector.shape_cast %100 : vector<1x32x32xbf16> to vector<32x32xbf16>
    %cst_32 = arith.constant dense<0.000000e+00> : vector<64x32xf32>
    %102 = tpu.matmul %96, %101, %cst_32 {dimension_numbers = #tpu.dot_dimension_numbers<[1], [0], [0], [1], [0, 0, 1, 1], [], []>} : vector<64x32xbf16>, vector<32x32xbf16>, vector<64x32xf32> -> vector<64x32xf32>
    %103 = arith.addf %99, %102 : vector<64x32xf32>
    %c0_33 = arith.constant 0 : index
    %c0_34 = arith.constant 0 : index
    %104 = vector.load %arg8[%c0_33, %c0_34] : memref<1x32xf32, #tpu.memory_space<vmem>>, vector<1x32xf32>
    %105 = vector.broadcast %104 : vector<1x32xf32> to vector<64x32xf32>
    %106 = arith.addf %103, %105 : vector<64x32xf32>
    %107 = vector.shape_cast %106 : vector<64x32xf32> to vector<8x8x32xf32>
    %108 = vector.extract_strided_slice %16 {offsets = [0, 0, 0], sizes = [8, 8, 1], strides = [1, 1, 1]} : vector<8x8x8xf32> to vector<8x8x1xf32>
    %109 = vector.extract_strided_slice %107 {offsets = [0, 0, 0], sizes = [8, 1, 32], strides = [1, 1, 1]} : vector<8x8x32xf32> to vector<8x1x32xf32>
    %110 = vector.broadcast %108 : vector<8x8x1xf32> to vector<8x8x32xf32>
    %111 = vector.broadcast %109 : vector<8x1x32xf32> to vector<8x8x32xf32>
    %112 = arith.mulf %110, %111 : vector<8x8x32xf32>
    %113 = vector.extract_strided_slice %16 {offsets = [0, 0, 1], sizes = [8, 8, 1], strides = [1, 1, 1]} : vector<8x8x8xf32> to vector<8x8x1xf32>
    %114 = vector.extract_strided_slice %107 {offsets = [0, 1, 0], sizes = [8, 1, 32], strides = [1, 1, 1]} : vector<8x8x32xf32> to vector<8x1x32xf32>
    %115 = vector.broadcast %113 : vector<8x8x1xf32> to vector<8x8x32xf32>
    %116 = vector.broadcast %114 : vector<8x1x32xf32> to vector<8x8x32xf32>
    %117 = arith.mulf %115, %116 : vector<8x8x32xf32>
    %118 = arith.addf %112, %117 : vector<8x8x32xf32>
    %119 = vector.extract_strided_slice %16 {offsets = [0, 0, 2], sizes = [8, 8, 1], strides = [1, 1, 1]} : vector<8x8x8xf32> to vector<8x8x1xf32>
    %120 = vector.extract_strided_slice %107 {offsets = [0, 2, 0], sizes = [8, 1, 32], strides = [1, 1, 1]} : vector<8x8x32xf32> to vector<8x1x32xf32>
    %121 = vector.broadcast %119 : vector<8x8x1xf32> to vector<8x8x32xf32>
    %122 = vector.broadcast %120 : vector<8x1x32xf32> to vector<8x8x32xf32>
    %123 = arith.mulf %121, %122 : vector<8x8x32xf32>
    %124 = arith.addf %118, %123 : vector<8x8x32xf32>
    %125 = vector.extract_strided_slice %16 {offsets = [0, 0, 3], sizes = [8, 8, 1], strides = [1, 1, 1]} : vector<8x8x8xf32> to vector<8x8x1xf32>
    %126 = vector.extract_strided_slice %107 {offsets = [0, 3, 0], sizes = [8, 1, 32], strides = [1, 1, 1]} : vector<8x8x32xf32> to vector<8x1x32xf32>
    %127 = vector.broadcast %125 : vector<8x8x1xf32> to vector<8x8x32xf32>
    %128 = vector.broadcast %126 : vector<8x1x32xf32> to vector<8x8x32xf32>
    %129 = arith.mulf %127, %128 : vector<8x8x32xf32>
    %130 = arith.addf %124, %129 : vector<8x8x32xf32>
    %131 = vector.extract_strided_slice %16 {offsets = [0, 0, 4], sizes = [8, 8, 1], strides = [1, 1, 1]} : vector<8x8x8xf32> to vector<8x8x1xf32>
    %132 = vector.extract_strided_slice %107 {offsets = [0, 4, 0], sizes = [8, 1, 32], strides = [1, 1, 1]} : vector<8x8x32xf32> to vector<8x1x32xf32>
    %133 = vector.broadcast %131 : vector<8x8x1xf32> to vector<8x8x32xf32>
    %134 = vector.broadcast %132 : vector<8x1x32xf32> to vector<8x8x32xf32>
    %135 = arith.mulf %133, %134 : vector<8x8x32xf32>
    %136 = arith.addf %130, %135 : vector<8x8x32xf32>
    %137 = vector.extract_strided_slice %16 {offsets = [0, 0, 5], sizes = [8, 8, 1], strides = [1, 1, 1]} : vector<8x8x8xf32> to vector<8x8x1xf32>
    %138 = vector.extract_strided_slice %107 {offsets = [0, 5, 0], sizes = [8, 1, 32], strides = [1, 1, 1]} : vector<8x8x32xf32> to vector<8x1x32xf32>
    %139 = vector.broadcast %137 : vector<8x8x1xf32> to vector<8x8x32xf32>
    %140 = vector.broadcast %138 : vector<8x1x32xf32> to vector<8x8x32xf32>
    %141 = arith.mulf %139, %140 : vector<8x8x32xf32>
    %142 = arith.addf %136, %141 : vector<8x8x32xf32>
    %143 = vector.extract_strided_slice %16 {offsets = [0, 0, 6], sizes = [8, 8, 1], strides = [1, 1, 1]} : vector<8x8x8xf32> to vector<8x8x1xf32>
    %144 = vector.extract_strided_slice %107 {offsets = [0, 6, 0], sizes = [8, 1, 32], strides = [1, 1, 1]} : vector<8x8x32xf32> to vector<8x1x32xf32>
    %145 = vector.broadcast %143 : vector<8x8x1xf32> to vector<8x8x32xf32>
    %146 = vector.broadcast %144 : vector<8x1x32xf32> to vector<8x8x32xf32>
    %147 = arith.mulf %145, %146 : vector<8x8x32xf32>
    %148 = arith.addf %142, %147 : vector<8x8x32xf32>
    %149 = vector.extract_strided_slice %16 {offsets = [0, 0, 7], sizes = [8, 8, 1], strides = [1, 1, 1]} : vector<8x8x8xf32> to vector<8x8x1xf32>
    %150 = vector.extract_strided_slice %107 {offsets = [0, 7, 0], sizes = [8, 1, 32], strides = [1, 1, 1]} : vector<8x8x32xf32> to vector<8x1x32xf32>
    %151 = vector.broadcast %149 : vector<8x8x1xf32> to vector<8x8x32xf32>
    %152 = vector.broadcast %150 : vector<8x1x32xf32> to vector<8x8x32xf32>
    %153 = arith.mulf %151, %152 : vector<8x8x32xf32>
    %154 = arith.addf %148, %153 : vector<8x8x32xf32>
    %c0_35 = arith.constant 0 : index
    %c0_36 = arith.constant 0 : index
    %155 = vector.load %arg9[%c0_35, %c0_36] : memref<2x32xf32, #tpu.memory_space<vmem>>, vector<1x32xf32>
    %156 = vector.shape_cast %155 : vector<1x32xf32> to vector<32xf32>
    %157 = vector.shape_cast %156 : vector<32xf32> to vector<1x1x32xf32>
    %158 = vector.broadcast %157 : vector<1x1x32xf32> to vector<8x8x32xf32>
    %159 = arith.addf %154, %158 : vector<8x8x32xf32>
    %cst_37 = arith.constant 0.000000e+00 : f32
    %160 = vector.broadcast %cst_37 : f32 to vector<8x8x32xf32>
    %161 = arith.maximumf %159, %160 : vector<8x8x32xf32>
    %c1_38 = arith.constant 1 : index
    %c0_39 = arith.constant 0 : index
    %162 = vector.load %arg9[%c1_38, %c0_39] : memref<2x32xf32, #tpu.memory_space<vmem>>, vector<1x32xf32>
    %163 = vector.shape_cast %162 : vector<1x32xf32> to vector<32xf32>
    %164 = vector.shape_cast %163 : vector<32xf32> to vector<1x1x32xf32>
    %165 = vector.broadcast %164 : vector<1x1x32xf32> to vector<8x8x32xf32>
    %166 = arith.addf %154, %165 : vector<8x8x32xf32>
    %cst_40 = arith.constant 0.000000e+00 : f32
    %167 = vector.broadcast %cst_40 : f32 to vector<8x8x32xf32>
    %168 = arith.maximumf %166, %167 : vector<8x8x32xf32>
    %cst_41 = arith.constant dense<0.000000e+00> : vector<8x32xf32>
    %169 = vector.multi_reduction <add>, %161, %cst_41 [1] : vector<8x8x32xf32> to vector<8x32xf32>
    %170 = arith.truncf %169 : vector<8x32xf32> to vector<8x32xbf16>
    %cst_42 = arith.constant dense<0.000000e+00> : vector<8x32xf32>
    %171 = vector.multi_reduction <add>, %168, %cst_42 [1] : vector<8x8x32xf32> to vector<8x32xf32>
    %172 = arith.truncf %171 : vector<8x32xf32> to vector<8x32xbf16>
    %c0_43 = arith.constant 0 : index
    %c0_44 = arith.constant 0 : index
    %c0_45 = arith.constant 0 : index
    %173 = vector.load %arg10[%c0_43, %c0_44, %c0_45] : memref<2x32x256xbf16, #tpu.memory_space<vmem>>, vector<1x32x256xbf16>
    %174 = vector.shape_cast %173 : vector<1x32x256xbf16> to vector<32x256xbf16>
    %cst_46 = arith.constant dense<0.000000e+00> : vector<8x256xf32>
    %175 = tpu.matmul %170, %174, %cst_46 {dimension_numbers = #tpu.dot_dimension_numbers<[1], [0], [0], [1], [0, 0, 1, 1], [], []>} : vector<8x32xbf16>, vector<32x256xbf16>, vector<8x256xf32> -> vector<8x256xf32>
    %c1_47 = arith.constant 1 : index
    %c0_48 = arith.constant 0 : index
    %c0_49 = arith.constant 0 : index
    %176 = vector.load %arg10[%c1_47, %c0_48, %c0_49] : memref<2x32x256xbf16, #tpu.memory_space<vmem>>, vector<1x32x256xbf16>
    %177 = vector.shape_cast %176 : vector<1x32x256xbf16> to vector<32x256xbf16>
    %cst_50 = arith.constant dense<0.000000e+00> : vector<8x256xf32>
    %178 = tpu.matmul %172, %177, %cst_50 {dimension_numbers = #tpu.dot_dimension_numbers<[1], [0], [0], [1], [0, 0, 1, 1], [], []>} : vector<8x32xbf16>, vector<32x256xbf16>, vector<8x256xf32> -> vector<8x256xf32>
    %179 = arith.addf %175, %178 : vector<8x256xf32>
    %c0_51 = arith.constant 0 : index
    %c0_52 = arith.constant 0 : index
    %180 = vector.load %arg11[%c0_51, %c0_52] : memref<1x256xf32, #tpu.memory_space<vmem>>, vector<1x256xf32>
    %181 = vector.broadcast %180 : vector<1x256xf32> to vector<8x256xf32>
    %182 = arith.addf %179, %181 : vector<8x256xf32>
    %183 = vector.extract_strided_slice %182 {offsets = [0, 0], sizes = [8, 128], strides = [1, 1]} : vector<8x256xf32> to vector<8x128xf32>
    %184 = vector.extract_strided_slice %182 {offsets = [0, 128], sizes = [8, 128], strides = [1, 1]} : vector<8x256xf32> to vector<8x128xf32>
    %185 = arith.mulf %183, %183 : vector<8x128xf32>
    %186 = arith.mulf %184, %184 : vector<8x128xf32>
    %187 = arith.addf %185, %186 : vector<8x128xf32>
    %188 = math.sqrt %187 : vector<8x128xf32>
    %cst_53 = arith.constant 0.666666686 : f32
    %189 = vector.broadcast %cst_53 : f32 to vector<8x128xf32>
    %190 = arith.mulf %188, %189 : vector<8x128xf32>
    %191 = tpu.iota {dimensions = array<i32: 1>} : vector<8x128xi32>
    %c3_i32 = arith.constant 3 : i32
    %192 = vector.broadcast %c3_i32 : i32 to vector<8x128xi32>
    %193 = arith.cmpi slt, %191, %192 : vector<8x128xi32>
    %cst_54 = arith.constant -1.000000e+30 : f32
    %194 = vector.broadcast %cst_54 : f32 to vector<8x128xf32>
    %195 = arith.select %193, %190, %194 : vector<8x128xi1>, vector<8x128xf32>
    %cst_55 = arith.constant dense<0xFF800000> : vector<8xf32>
    %196 = vector.multi_reduction <maximumf>, %195, %cst_55 [1] : vector<8x128xf32> to vector<8xf32>
    %197 = vector.shape_cast %196 : vector<8xf32> to vector<8x1xf32>
    %198 = vector.broadcast %197 : vector<8x1xf32> to vector<8x128xf32>
    %199 = arith.subf %195, %198 : vector<8x128xf32>
    %200 = math.exp %199 : vector<8x128xf32>
    %cst_56 = arith.constant dense<0.000000e+00> : vector<8xf32>
    %201 = vector.multi_reduction <add>, %200, %cst_56 [1] : vector<8x128xf32> to vector<8xf32>
    %202 = vector.shape_cast %201 : vector<8xf32> to vector<8x1xf32>
    %203 = vector.broadcast %202 : vector<8x1xf32> to vector<8x128xf32>
    %204 = arith.divf %200, %203 : vector<8x128xf32>
    %c0_57 = arith.constant 0 : index
    %c0_58 = arith.constant 0 : index
    %205 = vector.load %arg12[%c0_57, %c0_58] : memref<8x128xf32, #tpu.memory_space<vmem>>, vector<8x128xf32>
    tpu.vector_store %arg12[%c0_57, %c0_58], %204 {strides = array<i32>} : memref<8x128xf32, #tpu.memory_space<vmem>>, vector<8x128xf32>,
    return
  }
  func.func @transform_0(%arg0: i32) -> (i32, i32, i32) {
    %c0_i32 = arith.constant 0 : i32
    %c0_i32_0 = arith.constant 0 : i32
    %c0_i32_1 = arith.constant 0 : i32
    return %arg0, %c0_i32, %c0_i32_0 : i32, i32, i32
  }
  func.func @transform_1(%arg0: i32) -> (i32, i32, i32) {
    %c0_i32 = arith.constant 0 : i32
    %c0_i32_0 = arith.constant 0 : i32
    %c0_i32_1 = arith.constant 0 : i32
    return %arg0, %c0_i32, %c0_i32_0 : i32, i32, i32
  }
  func.func @transform_2(%arg0: i32) -> (i32, i32, i32) {
    %c0_i32 = arith.constant 0 : i32
    %c0_i32_0 = arith.constant 0 : i32
    %c0_i32_1 = arith.constant 0 : i32
    return %arg0, %c0_i32, %c0_i32_0 : i32, i32, i32
  }
  func.func @transform_3(%arg0: i32) -> (i32, i32, i32) {
    %c0_i32 = arith.constant 0 : i32
    %c0_i32_0 = arith.constant 0 : i32
    %c0_i32_1 = arith.constant 0 : i32
    %c0_i32_2 = arith.constant 0 : i32
    return %c0_i32, %c0_i32_0, %c0_i32_1 : i32, i32, i32
  }
  func.func @transform_4(%arg0: i32) -> (i32, i32) {
    %c0_i32 = arith.constant 0 : i32
    %c0_i32_0 = arith.constant 0 : i32
    %c0_i32_1 = arith.constant 0 : i32
    return %c0_i32, %c0_i32_0 : i32, i32
  }
  func.func @transform_5(%arg0: i32) -> (i32, i32) {
    %c0_i32 = arith.constant 0 : i32
    %c0_i32_0 = arith.constant 0 : i32
    %c0_i32_1 = arith.constant 0 : i32
    return %c0_i32, %c0_i32_0 : i32, i32
  }
  func.func @transform_6(%arg0: i32) -> (i32, i32, i32) {
    %c0_i32 = arith.constant 0 : i32
    %c0_i32_0 = arith.constant 0 : i32
    %c0_i32_1 = arith.constant 0 : i32
    %c0_i32_2 = arith.constant 0 : i32
    return %c0_i32, %c0_i32_0, %c0_i32_1 : i32, i32, i32
  }
  func.func @transform_7(%arg0: i32) -> (i32, i32) {
    %c0_i32 = arith.constant 0 : i32
    %c0_i32_0 = arith.constant 0 : i32
    %c0_i32_1 = arith.constant 0 : i32
    return %c0_i32, %c0_i32_0 : i32, i32
  }
  func.func @transform_8(%arg0: i32) -> (i32, i32) {
    %c0_i32 = arith.constant 0 : i32
    %c0_i32_0 = arith.constant 0 : i32
    %c0_i32_1 = arith.constant 0 : i32
    return %c0_i32, %c0_i32_0 : i32, i32
  }
  func.func @transform_9(%arg0: i32) -> (i32, i32, i32) {
    %c0_i32 = arith.constant 0 : i32
    %c0_i32_0 = arith.constant 0 : i32
    %c0_i32_1 = arith.constant 0 : i32
    %c0_i32_2 = arith.constant 0 : i32
    return %c0_i32, %c0_i32_0, %c0_i32_1 : i32, i32, i32
  }
  func.func @transform_10(%arg0: i32) -> (i32, i32) {
    %c0_i32 = arith.constant 0 : i32
    %c0_i32_0 = arith.constant 0 : i32
    %c0_i32_1 = arith.constant 0 : i32
    return %c0_i32, %c0_i32_0 : i32, i32
  }
  func.func @transform_11(%arg0: i32) -> (i32, i32) {
    %c0_i32 = arith.constant 0 : i32
    %c0_i32_0 = arith.constant 0 : i32
    return %arg0, %c0_i32 : i32, i32
  }
}

</mosaic_0001>

<bundles_post_ra>
// kernel: tpu_custom_call.1
= control target key start
LH: loop header
LB: loop body
LE: loop exit
PB: predicated region body
PF: predicated region fallthrough
CT: control target
= control target key end

     0   :  { %16 = vsyncpa [#allocation3], 0  ;;  %s6831_s0 = inlined_call_operand.hbm [shape: bf16[8,8,32], index: 0, kind: input, shape index: {}]   ;;  %s6832_s1 = inlined_call_operand.hbm [shape: f32[8,8,32], index: 1, kind: input, shape index: {}]   ;;  %s6833_s2 = inlined_call_operand.hbm [shape: bf16[8,8,8], index: 2, kind: input, shape index: {}]   ;;  %s6834_s3 = inlined_call_operand.hbm [shape: bf16[2,32,32], index: 3, kind: input, shape index: {}]   ;;  %s6835_s4 = inlined_call_operand.hbm [shape: f32[1,32], index: 4, kind: input, shape index: {}]   ;;  %s6836_s5 = inlined_call_operand.vmem [shape: f32[2,32], index: 5, kind: input, shape index: {}]   ;;  %s6837_s6 = inlined_call_operand.hbm [shape: bf16[2,32,32], index: 6, kind: input, shape index: {}]   ;;  %s6838_s7 = inlined_call_operand.hbm [shape: f32[1,32], index: 7, kind: input, shape index: {}]   ;;  %s6839_s8 = inlined_call_operand.vmem [shape: f32[2,32], index: 8, kind: input, shape index: {}]   ;;  %s6840_s9 = inlined_call_operand.hbm [shape: bf16[2,32,256], index: 9, kind: input, shape index: {}]   ;;  %s6841_s10 = inlined_call_operand.vmem [shape: f32[1,256], index: 10, kind: input, shape index: {}]   ;;  %s6842_s11 = inlined_call_operand.hbm [shape: f32[8,128], index: 11, kind: output, shape index: {}]  }
   0x1   :  { %17 = vsyncpa [#allocation6], 0 }
   0x2   :  { %18 = vsyncpa [#allocation9], 0 }
   0x3   :  { %19 = vsyncpa [#allocation12], 0 }
   0x4   :  { %20 = vsyncpa [#allocation15], 0  ;;  %s39_s19 = sshll.u32 %s6832_s1, 4  ;;  %s40_s19 = int_to_ptr.hbm [resolvable:$true] %s39_s19 }
   0x5   :  { %21 = vsyncpa [#allocation4], 0  ;;  %s4722_s20 = smov [#allocation5]   ;;  %s4723_s22 = smov 128  }
   0x6   :  { %s41_s21 = sshll.u32 %s4722_s20, 4  ;;  %s4724_s23 = smov 8   ;;  %s42_s21 = int_to_ptr.vmem [resolvable:$true] %s41_s21 }
   0x7   :  { %47 = dma.hbm_to_vmem [thread:$0]  %s40_s19, 1024, %s42_s21, [#allocation6], %s4723_s22, %s4723_s22, %s4724_s23  }
   0x8   :  { %s65_s26 = sshll.u32 %s6834_s3, 4  ;;  %s4725_s27 = smov [#allocation8]   ;;  %s66_s26 = int_to_ptr.hbm [resolvable:$true] %s65_s26 }
   0x9   :  { %s67_s28 = sshll.u32 %s4725_s27, 4  ;;  %s91_s30 = sshll.u32 %s6837_s6, 4  ;;  %s68_s28 = int_to_ptr.vmem [resolvable:$true] %s67_s28  ;;  %s92_s30 = int_to_ptr.hbm [resolvable:$true] %s91_s30 }
   0xa   :  { %s4726_s12 = smov 64   ;;  %s4727_s13 = smov 4  }
   0xb   :  { %73 = dma.hbm_to_vmem [thread:$0]  %s66_s26, 512, %s68_s28, [#allocation9], %s4726_s12, %s4726_s12, %s4727_s13  }
   0xc   :  { %s26_s16 = sshll.u32 %s6831_s0, 4  ;;  %s4728_s17 = smov [#allocation11]   ;;  %s27_s16 = int_to_ptr.hbm [resolvable:$true] %s26_s16 }
   0xd   :  { %s93_s18 = sshll.u32 %s4728_s17, 4  ;;  %s4729_s3 = smov [#allocation2]   ;;  %s94_s18 = int_to_ptr.vmem [resolvable:$true] %s93_s18 }
   0xe   :  { %99 = dma.hbm_to_vmem [thread:$0]  %s92_s30, 512, %s94_s18, [#allocation12], %s4726_s12, %s4726_s12, %s4727_s13  }
   0xf   :  { %s28_s19 = sshll.u32 %s4729_s3, 4  ;;  %s52_s6 = sshll.u32 %s6833_s2, 4  ;;  %s29_s19 = int_to_ptr.vmem [resolvable:$true] %s28_s19  ;;  %s53_s6 = int_to_ptr.hbm [resolvable:$true] %s52_s6 }
  0x10   :  { %34 = dma.hbm_to_vmem [thread:$0]  %s27_s16, 512, %s29_s19, [#allocation3], %s4726_s12, %s4726_s12, %s4727_s13  }
  0x11   :  { %s79_s26 = sshll.u32 %s6835_s4, 4  ;;  %s4730_s27 = smov [#allocation7]   ;;  %s80_s26 = int_to_ptr.hbm [resolvable:$true] %s79_s26 }
  0x12   :  { %s54_s0 = sshll.u32 %s4730_s27, 4  ;;  %s4731_s28 = smov [#allocation10]   ;;  %s55_s0 = int_to_ptr.vmem [resolvable:$true] %s54_s0 }
  0x13   :  { %60 = dma.hbm_to_vmem [thread:$0]  %s53_s6, 512, %s55_s0, [#allocation6], %s4726_s12, %s4726_s12, %s4727_s13  }
  0x14   :  { %s81_s29 = sshll.u32 %s4731_s28, 4  ;;  %s105_s14 = sshll.u32 %s6838_s7, 4  ;;  %s82_s29 = int_to_ptr.vmem [resolvable:$true] %s81_s29  ;;  %s106_s14 = int_to_ptr.hbm [resolvable:$true] %s105_s14 }
  0x15   :  { %84 = dma.hbm_to_vmem [thread:$0]  %s80_s26, 16, %s82_s29, [#allocation9]  }
  0x16   :  { %s117_s16 = sshll.u32 %s6840_s9, 4  ;;  %s4732_s17 = smov [#allocation13]   ;;  %s118_s16 = int_to_ptr.hbm [resolvable:$true] %s117_s16 }
  0x17   :  { %s107_s4 = sshll.u32 %s4732_s17, 4  ;;  %s4733_s18 = smov [#allocation14]   ;;  %s108_s4 = int_to_ptr.vmem [resolvable:$true] %s107_s4 }
  0x18   :  { %110 = dma.hbm_to_vmem [thread:$0]  %s106_s14, 16, %s108_s4, [#allocation12]  }
  0x19   :  { %s119_s12 = sshll.u32 %s4733_s18, 4  ;;  %s120_s12 = int_to_ptr.vmem [resolvable:$true] %s119_s12 }
  0x1a   :  { %125 = dma.hbm_to_vmem [thread:$0]  %s118_s16, 1024, %s120_s12, [#allocation15], %s4723_s22, %s4723_s22, %s4724_s23  }
  0x1b   :  { %4710 = dma.done.wait [#allocation3], 512  }
  0x1c   :  { %4711 = vsyncadd [#allocation3], 4294966784 }
  0x1d   :  { %4712 = dma.done.wait [#allocation6], 1536  }
  0x1e   :  { %4713 = vsyncadd [#allocation6], 4294965760 }
  0x1f   :  { %4714 = dma.done.wait [#allocation9], 528  }
  0x20   :  { %4715 = vsyncadd [#allocation9], 4294966768 }
  0x21   :  { %4716 = dma.done.wait [#allocation12], 528  }
  0x22   :  { %4717 = vsyncadd [#allocation12], 4294966768 }
  0x23   :  { %4718 = dma.done.wait [#allocation15], 1024  }
  0x24   :  { %4719 = vsyncadd [#allocation15], 4294966272  ;;  %v4839_v0 = vld [vmem:[#allocation7] sm:$0xff]   ;;  %vm2689_vm0 = vcmask 64512   ;;  %v4841_v1 = vld [vmem:[#allocation7 + $0x8] sm:$0xff]   ;;  %v4734_v27 = vmov 0  }
  0x25   :  { %v4843_v2 = vld [vmem:[#allocation7 + $0x10] sm:$0xff]   ;;  %v4353_v3 = vunpack.c.l.bf16 %v4839_v0  ;;  %v4357_v4 = vunpack.c.l.bf16 %v4841_v1  ;;  %v4322_v5 = vld [vmem:[#allocation8 + $0x18] sm:$0xff]  ;;  %v4320_v6 = vld [vmem:[#allocation8 + $0x8] sm:$0xff]  ;;  %v4354_v14 = vunpack.c.h.bf16 %v4839_v0  ;;  %v4358_v15 = vunpack.c.h.bf16 %v4841_v1  ;;  %4400 = vset.pattern.permute.xlu2 %v4734_v27  ;;  %s4173_s25 = sshll.u32 %s6842_s11, 4  ;;  %s4174_s25 = int_to_ptr.hbm [resolvable:$true] %s4173_s25 }
  0x26   :  { %v4361_v7 = vunpack.c.l.bf16 %v4843_v2  ;;  %v4321_v8 = vld [vmem:[#allocation8 + $0x10] sm:$0xff]  ;;  %2898 = vmatpush.bf16.msra.mxu0 %v4322_v5  ;;  %2951 = vmatpush.bf16.msra.mxu1 %v4320_v6  ;;  %v4319_v11 = vld [vmem:[#allocation8] sm:$0xff]  ;;  %v4856_v13 = vld [vmem:[#allocation5 + $0x8] sm:$0xff]  ;;  %v6845_v18 = vunpack.c.h.bf16 %v4843_v2  ;;  %v6864_v48 = vmov 683565275   ;;  %v6852_v0 = vmov 2  }
  0x27   :  { %v2690_v9 = vsel %vm2689_vm0, %v4353_v3, 0.0  ;;  %v2696_v10 = vsel %vm2689_vm0, %v4357_v4, 0.0  ;;  %v4854_v12 = vld [vmem:[#allocation5] sm:$0xff]  ;;  %v355_v20 = vand.u32 2147483647, %v4856_v13  ;;  %v358_v21 = vand.u32 2139095040, %v4856_v13 }
  0x28   :  { %2691 = vadd.xlane.f32.xlu0 %v2690_v9  ;;  %2697 = vadd.xlane.f32.xlu1 %v2696_v10  ;;  %v2702_v16 = vsel %vm2689_vm0, %v4361_v7, 0.0  ;;  %v201_v17 = vand.u32 2147483647, %v4854_v12  ;;  %v204_v19 = vand.u32 2139095040, %v4854_v12  ;;  %v2693_v23 = vsel %vm2689_vm0, %v4354_v14, 0.0  ;;  %v4882_v30 = vld [vmem:[#allocation7 + $0x18] sm:$0xff]  }
  0x29   :  { %2703 = vadd.xlane.f32.xlu2 %v2702_v16  ;;  %v2699_v24 = vsel %vm2689_vm0, %v4358_v15, 0.0  ;;  %v359_v26 = vshrl.u32 %v358_v21, 23  ;;  %v362_v28 = vand.u32 8388607, %v355_v20  ;;  %v2705_v29 = vsel %vm2689_vm0, %v6845_v18, 0.0 }
  0x2a   :  { %2899 = vmatpush.bf16.msra.mxu0 %v4321_v8  ;;  %2952 = vmatpush.bf16.msra.mxu1 %v4319_v11  ;;  %v208_v22 = vand.u32 8388607, %v201_v17  ;;  %v205_v25 = vshrl.u32 %v204_v19, 23  ;;  %v6844_v36 = vunpack.c.l.bf16 %v4882_v30  ;;  %v6843_v37 = vunpack.c.h.bf16 %v4882_v30 }
  0x2b   :  { %v4190_v32 = vadd.s32 4294967169, %v359_v26  ;;  %v363_v38 = vor.u32 8388608, %v362_v28  ;;  %v6862_v50 = vmov 2475754826   ;;  %v6860_v53 = vmov 2131351028  }
  0x2c   :  { %v4187_v31 = vadd.s32 4294967169, %v205_v25  ;;  %v209_v33 = vor.u32 8388608, %v208_v22  ;;  %v2708_v44 = vsel %vm2689_vm0, %v6844_v36, 0.0  ;;  %v2711_v45 = vsel %vm2689_vm0, %v6843_v37, 0.0 }
  0x2d   :  { %v365_v35 = vadd.s32 1, %v4190_v32  ;;  %v4896_v46 = vshll.u32 %v363_v38, 8  ;;  %v6858_v55 = vmov 2102212464   ;;  %v6856_v57 = vmov 920167782  }
  0x2e   :  { %v211_v34 = vadd.s32 1, %v4187_v31  ;;  %v4886_v40 = vshll.u32 %v209_v33, 8  ;;  %v6854_v8 = vmov 1326507024  }
  0x2f   :  { %vm366_vm2 = vcmp.gt.s32.totalorder %v365_v35, 0 }
  0x30   :  { %2694 = vadd.xlane.f32.xlu0 %v2693_v23  ;;  %2700 = vadd.xlane.f32.xlu1 %v2699_v24  ;;  %vm212_vm1 = vcmp.gt.s32.totalorder %v211_v34, 0  ;;  %v367_v41 = vsel %vm366_vm2, %v365_v35, 0  ;;  %v250_v59 = vand.u32 65535, %v4886_v40  ;;  %v251_v62 = vshrl.u32 %v4886_v40, 16 }
  0x31   :  { %2706 = vadd.xlane.f32.xlu2 %v2705_v29  ;;  %v213_v39 = vsel %vm212_vm1, %v211_v34, 0  ;;  %v4900_v52 = vand.u32 31, %v367_v41  ;;  %v4934_v35 = vshrl.u32 %v367_v41, 5 }
  0x32   :  { %v4888_v42 = vshrl.u32 %v213_v39, 5  ;;  %v215_v43 = vand.u32 31, %v213_v39 }
  0x33   :  { %v4916_v16 = vsub.s32 32, %v4900_v52  ;;  %v372_v24 = vshll.u32 %v6864_v48, %v4900_v52  ;;  %v375_v25 = vshll.u32 %v6862_v50, %v4900_v52  ;;  %vm387_vm11 = vcmp.lt.s32.totalorder %v4934_v35, 1 }
  0x34   :  { %v216_v47 = vsub.s32 32, %v215_v43  ;;  %v218_v49 = vshll.u32 %v6864_v48, %v215_v43  ;;  %v221_v51 = vshll.u32 %v6862_v50, %v215_v43  ;;  %v224_v54 = vshll.u32 %v6860_v53, %v215_v43 }
  0x35   :  { %v227_v56 = vshll.u32 %v6858_v55, %v215_v43  ;;  %v230_v58 = vshll.u32 %v6856_v57, %v215_v43  ;;  %vm233_vm3 = vcmp.lt.s32.totalorder %v4888_v42, 1  ;;  %vm236_vm4 = vcmp.lt.s32.totalorder %v4888_v42, 4 }
  0x36   :  { %v219_v60 = vshrl.u32 %v6862_v50, %v216_v47  ;;  %v222_v61 = vshrl.u32 %v6860_v53, %v216_v47  ;;  %v217_v63 = vshrl.u32 %v6864_v48, %v216_v47  ;;  %v225_v5 = vshrl.u32 %v6858_v55, %v216_v47 }
  0x37   :  { %v228_v6 = vshrl.u32 %v6856_v57, %v216_v47  ;;  %v231_v9 = vshrl.u32 %v6854_v8, %v216_v47  ;;  %vm235_vm5 = vcmp.lt.s32.totalorder %v4888_v42, 3  ;;  %vm234_vm6 = vcmp.lt.s32.totalorder %v4888_v42, 2 }
  0x38   :  { %2709 = vadd.xlane.f32.xlu0 %v2708_v44  ;;  %2712 = vadd.xlane.f32.xlu1 %v2711_v45  ;;  %v220_v10 = vor.u32 %v219_v60, %v218_v49  ;;  %v223_v11 = vor.u32 %v222_v61, %v221_v51  ;;  %v226_v19 = vor.u32 %v225_v5, %v224_v54  ;;  %vm389_vm12 = vcmp.lt.s32.totalorder %v4934_v35, 3 }
  0x39   :  { %v229_v21 = vor.u32 %v228_v6, %v227_v56  ;;  %v232_v22 = vor.u32 %v231_v9, %v230_v58  ;;  %v373_v31 = vshrl.u32 %v6862_v50, %v4916_v16  ;;  %v376_v44 = vshrl.u32 %v6860_v53, %v4916_v16 }
  0x3a   :  { %v241_v23 = vsel %vm233_vm3, %v220_v10, %v223_v11  ;;  %v245_v28 = vsel %vm233_vm3, %v223_v11, %v226_v19  ;;  %v238_v32 = vsel %vm236_vm4, %v226_v19, 2102212464  ;;  %v237_v38 = vsel %vm233_vm3, %v217_v63, %v220_v10 }
  0x3b   :  { %v242_v26 = vsel %vm236_vm4, %v229_v21, 920167782  ;;  %v246_v29 = vsel %vm236_vm4, %v232_v22, 1326507024  ;;  %v239_v41 = vsel %vm235_vm5, %v223_v11, %v238_v32  ;;  %v4946_v54 = vor.u32 %v373_v31, %v372_v24 }
  0x3c   :  { %v243_v33 = vsel %vm235_vm5, %v226_v19, %v242_v26  ;;  %v247_v34 = vsel %vm235_vm5, %v229_v21, %v246_v29  ;;  %v4948_v56 = vor.u32 %v376_v44, %v375_v25  ;;  %v378_v58 = vshll.u32 %v6860_v53, %v4900_v52 }
  0x3d   :  { %v244_v39 = vsel %vm234_vm6, %v241_v23, %v243_v33  ;;  %v248_v43 = vsel %vm234_vm6, %v245_v28, %v247_v34  ;;  %v379_v5 = vshrl.u32 %v6858_v55, %v4916_v16  ;;  %v381_v32 = vshll.u32 %v6858_v55, %v4900_v52 }
  0x3e   :  { %v252_v45 = vand.u32 65535, %v248_v43  ;;  %v253_v47 = vshrl.u32 %v248_v43, 16  ;;  %v274_v49 = vand.u32 65535, %v244_v39  ;;  %v275_v51 = vshrl.u32 %v244_v39, 16 }
  0x3f   :  { %v384_v43 = vshll.u32 %v6856_v57, %v4900_v52  ;;  %vm388_vm13 = vcmp.lt.s32.totalorder %v4934_v35, 2  ;;  %vm390_vm14 = vcmp.lt.s32.totalorder %v4934_v35, 4  ;;  %v404_v42 = vand.u32 65535, %v4896_v46 }
  0x40   :  { %v254_v60 = vmul.u32 %v252_v45, %v250_v59  ;;  %v255_v61 = vmul.u32 %v253_v47, %v250_v59  ;;  %v256_v63 = vmul.u32 %v252_v45, %v251_v62  ;;  %v257_v6 = vmul.u32 %v253_v47, %v251_v62 }
  0x41   :  { %v276_v9 = vmul.u32 %v274_v49, %v250_v59  ;;  %v277_v10 = vmul.u32 %v275_v51, %v250_v59  ;;  %v278_v19 = vmul.u32 %v274_v49, %v251_v62  ;;  %v279_v23 = vmul.u32 %v275_v51, %v251_v62 }
  0x42   :  { %v258_v21 = vshll.u32 %v255_v61, 16  ;;  %v259_v22 = vshrl.u32 %v255_v61, 16  ;;  %v260_v11 = vshll.u32 %v256_v63, 16  ;;  %v261_v24 = vshrl.u32 %v256_v63, 16 }
  0x43   :  { %v280_v25 = vshll.u32 %v277_v10, 16  ;;  %v281_v26 = vshrl.u32 %v277_v10, 16  ;;  %v282_v28 = vshll.u32 %v278_v19, 16  ;;  %v283_v31 = vshrl.u32 %v278_v19, 16 }
  0x44   :  { %vm262_vm7 = vc.u32 %v254_v60, %v258_v21  ;;  %v264_v29 = vadd.s32 %v258_v21, %v254_v60  ;;  %v382_v59 = vshrl.u32 %v6856_v57, %v4916_v16  ;;  %v380_v47 = vor.u32 %v379_v5, %v378_v58 }
  0x45   :  { %v263_v33 = vsel %vm262_vm7, 1, %v4734_v27  ;;  %vm284_vm8 = vc.u32 %v276_v9, %v280_v25  ;;  %v286_v34 = vadd.s32 %v280_v25, %v276_v9  ;;  %v385_v61 = vshrl.u32 %v6854_v8, %v4916_v16 }
  0x46   :  { %v265_v39 = vadd.s32 %v263_v33, %v257_v6  ;;  %vm266_vm9 = vc.u32 %v264_v29, %v260_v11  ;;  %v285_v62 = vsel %vm284_vm8, 1, %v4734_v27  ;;  %v383_v60 = vor.u32 %v382_v59, %v381_v32 }
  0x47   :  { %v267_v44 = vsel %vm266_vm9, 1, %v4734_v27  ;;  %v287_v45 = vadd.s32 %v285_v62, %v279_v23  ;;  %vm288_vm10 = vc.u32 %v286_v34, %v282_v28  ;;  %v4966_v63 = vadd.s32 %v286_v34, %v282_v28 }
  0x48   :  { %v269_v49 = vadd.s32 %v267_v44, %v265_v39  ;;  %v289_v51 = vsel %vm288_vm10, 1, %v4734_v27  ;;  %v386_v9 = vor.u32 %v385_v61, %v384_v43  ;;  %v240_v58 = vsel %vm234_vm6, %v237_v38, %v239_v41 }
  0x49   :  { %v291_v6 = vadd.s32 %v289_v51, %v287_v45  ;;  %v395_v10 = vsel %vm387_vm11, %v4946_v54, %v4948_v56  ;;  %v396_v19 = vsel %vm390_vm14, %v383_v60, 920167782  ;;  %v399_v11 = vsel %vm387_vm11, %v4948_v56, %v380_v47 }
  0x4a   :  { %v270_v52 = vadd.s32 %v269_v49, %v259_v22  ;;  %v397_v22 = vsel %vm389_vm12, %v380_v47, %v396_v19  ;;  %v400_v23 = vsel %vm390_vm14, %v386_v9, 1326507024  ;;  %v405_v25 = vshrl.u32 %v4896_v46, 16 }
  0x4b   :  { %v292_v5 = vadd.s32 %v291_v6, %v281_v26  ;;  %v398_v41 = vsel %vm388_vm13, %v395_v10, %v397_v22  ;;  %v401_v26 = vsel %vm389_vm12, %v383_v60, %v400_v23  ;;  %v371_v33 = vshrl.u32 %v6864_v48, %v4916_v16 }
  0x4c   :  { %v4980_v21 = vadd.s32 %v270_v52, %v261_v24  ;;  %v294_v24 = vmul.u32 %v4886_v40, %v240_v58  ;;  %v428_v28 = vand.u32 65535, %v398_v41  ;;  %v429_v32 = vshrl.u32 %v398_v41, 16  ;;  %v5007_v58 = vld [vmem:[#allocation5 + $0x10] sm:$0xff] }
  0x4d   :  { %v293_v38 = vadd.s32 %v292_v5, %v283_v31  ;;  %v402_v31 = vsel %vm388_vm13, %v399_v11, %v401_v26  ;;  %v392_v40 = vsel %vm390_vm14, %v380_v47, 2102212464  ;;  %v391_v52 = vsel %vm387_vm11, %v371_v33, %v4946_v54 }
  0x4e   :  { %vm296_vm15 = vc.u32 %v4980_v21, %v4966_v63  ;;  %v406_v34 = vand.u32 65535, %v402_v31  ;;  %v407_v59 = vshrl.u32 %v402_v31, 16  ;;  %v431_v62 = vmul.u32 %v429_v32, %v404_v42 }
  0x4f   :  { %v297_v29 = vadd.s32 1, %v293_v38  ;;  %v432_v43 = vmul.u32 %v428_v28, %v405_v25  ;;  %v430_v51 = vmul.u32 %v428_v28, %v404_v42  ;;  %v393_v47 = vsel %vm389_vm12, %v4948_v56, %v392_v40 }
  0x50   :  { %v408_v45 = vmul.u32 %v406_v34, %v404_v42  ;;  %v409_v49 = vmul.u32 %v407_v59, %v404_v42  ;;  %v410_v60 = vmul.u32 %v406_v34, %v405_v25  ;;  %v434_v61 = vshll.u32 %v431_v62, 16 }
  0x51   :  { %v298_v39 = vsel %vm296_vm15, %v297_v29, %v293_v38  ;;  %v411_v16 = vmul.u32 %v407_v59, %v405_v25  ;;  %v433_v10 = vmul.u32 %v429_v32, %v405_v25  ;;  %v436_v19 = vshll.u32 %v432_v43, 16 }
  0x52   :  { %v299_v44 = vadd.s32 %v298_v39, %v294_v24  ;;  %v412_v9 = vshll.u32 %v409_v49, 16  ;;  %v414_v5 = vshll.u32 %v410_v60, 16  ;;  %vm438_vm1 = vc.u32 %v430_v51, %v434_v61 }
  0x53   :  { %v439_v54 = vsel %vm438_vm1, 1, %v4734_v27  ;;  %v440_v38 = vadd.s32 %v434_v61, %v430_v51  ;;  %v512_v41 = vand.u32 2139095040, %v5007_v58  ;;  %v413_v24 = vshrl.u32 %v409_v49, 16 }
  0x54   :  { %v300_v6 = vadd.s32 536870912, %v299_v44  ;;  %vm416_vm0 = vc.u32 %v408_v45, %v412_v9  ;;  %v418_v11 = vadd.s32 %v412_v9, %v408_v45  ;;  %v435_v25 = vshrl.u32 %v431_v62, 16 }
  0x55   :  { %v417_v42 = vsel %vm416_vm0, 1, %v4734_v27  ;;  %v441_v28 = vadd.s32 %v439_v54, %v433_v10  ;;  %vm442_vm3 = vc.u32 %v440_v38, %v436_v19  ;;  %v415_v31 = vshrl.u32 %v410_v60, 16 }
  0x56   :  { %v5012_v22 = vshrl.u32 %v300_v6, 30  ;;  %v419_v26 = vadd.s32 %v417_v42, %v411_v16  ;;  %vm420_vm2 = vc.u32 %v418_v11, %v414_v5  ;;  %v443_v33 = vsel %vm442_vm3, 1, %v4734_v27 }
  0x57   :  { %v421_v56 = vsel %vm420_vm2, 1, %v4734_v27  ;;  %v437_v34 = vshrl.u32 %v432_v43, 16  ;;  %v445_v59 = vadd.s32 %v443_v33, %v441_v28  ;;  %v513_v39 = vshrl.u32 %v512_v41, 23 }
  0x58   :  { %v302_v23 = vshll.u32 %v5012_v22, 30  ;;  %v423_v32 = vadd.s32 %v421_v56, %v419_v26  ;;  %v5020_v51 = vadd.s32 %v440_v38, %v436_v19  ;;  %v394_v49 = vsel %vm388_vm13, %v391_v52, %v393_v47 }
  0x59   :  { %v446_v61 = vadd.s32 %v445_v59, %v435_v25  ;;  %v4193_v62 = vadd.s32 4294967169, %v513_v39  ;;  %v448_v43 = vmul.u32 %v4896_v46, %v394_v49  ;;  %v295_v35 = vadd.s32 %v4966_v63, %v4980_v21 }
  0x5a   :  { %v303_v29 = vsub.s32 %v299_v44, %v302_v23  ;;  %v424_v45 = vadd.s32 %v423_v32, %v413_v24  ;;  %v509_v25 = vand.u32 2147483647, %v5007_v58  ;;  %vm203_vm8 = vcmp.lt.s32.totalorder %v4854_v12, 0 }
  0x5b   :  { %v447_v60 = vadd.s32 %v446_v61, %v437_v34  ;;  %v519_v9 = vadd.s32 1, %v4193_v62  ;;  %v325_v49 = vsub.s32 4, %v5012_v22  ;;  %vm5066_vm13 = vcmp.le.f32.partialorder %v201_v17, 0.7853982 }
  0x5c   :  { %vm304_vm4 = vcmp.lt.s32.totalorder %v303_v29, 0  ;;  %v305_v40 = vsub.s32 0, %v303_v29  ;;  %v5024_v16 = vadd.s32 %v424_v45, %v415_v31  ;;  %v516_v62 = vand.u32 8388607, %v509_v25 }
  0x5d   :  { %v451_v10 = vadd.s32 1, %v447_v60  ;;  %vm520_vm6 = vcmp.gt.s32.totalorder %v519_v9, 0  ;;  %vm357_vm15 = vcmp.lt.s32.totalorder %v4856_v13, 0  ;;  %vm5104_vm1 = vcmp.le.f32.partialorder %v355_v20, 0.7853982 }
  0x5e   :  { %v306_v6 = vsel %vm304_vm4, %v305_v40, %v303_v29  ;;  %vm450_vm5 = vc.u32 %v5024_v16, %v5020_v51  ;;  %v521_v19 = vsel %vm520_vm6, %v519_v9, 0 }
  0x5f   :  { %v307_v44 = vclz %v306_v6  ;;  %v452_v52 = vsel %vm450_vm5, %v451_v10, %v447_v60  ;;  %v523_v47 = vand.u32 31, %v521_v19  ;;  %v5034_v32 = vshrl.u32 %v521_v19, 5 }
  0x60   :  { %v453_v42 = vadd.s32 %v452_v52, %v448_v43 }
  0x61   :  { %v4188_v5 = vadd.s32 4294967294, %v307_v44  ;;  %v5031_v46 = vsub.s32 32, %v523_v47  ;;  %v529_v63 = vshll.u32 %v6862_v50, %v523_v47  ;;  %v538_v40 = vshll.u32 %v6856_v57, %v523_v47 }
  0x62   :  { %v454_v23 = vadd.s32 536870912, %v453_v42  ;;  %v535_v44 = vshll.u32 %v6858_v55, %v523_v47  ;;  %vm544_vm10 = vcmp.lt.s32.totalorder %v5034_v32, 4  ;;  %vm541_vm11 = vcmp.lt.s32.totalorder %v5034_v32, 1 }
  0x63   :  { %vm4189_vm7 = vcmp.lt.s32.totalorder %v4188_v5, 0  ;;  %v530_v33 = vshrl.u32 %v6860_v53, %v5031_v46  ;;  %v533_v34 = vshrl.u32 %v6858_v55, %v5031_v46  ;;  %v539_v45 = vshrl.u32 %v6854_v8, %v5031_v46 }
  0x64   :  { %v310_v11 = vsel %vm4189_vm7, 0, %v4188_v5  ;;  %v455_v56 = vshrl.u32 %v454_v23, 30  ;;  %v536_v60 = vshrl.u32 %v6856_v57, %v5031_v46  ;;  %v526_v5 = vshll.u32 %v6864_v48, %v523_v47 }
  0x65   :  { %v311_v54 = vsub.s32 32, %v310_v11  ;;  %v312_v38 = vshll.u32 %v303_v29, %v310_v11  ;;  %v315_v41 = vsub.s32 4294967266, %v310_v11  ;;  %v532_v29 = vshll.u32 %v6860_v53, %v523_v47 }
  0x66   :  { %v456_v21 = vshll.u32 %v455_v56, 30  ;;  %v540_v9 = vor.u32 %v539_v45, %v538_v40  ;;  %v527_v19 = vshrl.u32 %v6862_v50, %v5031_v46  ;;  %vm543_vm12 = vcmp.lt.s32.totalorder %v5034_v32, 3 }
  0x67   :  { %v313_v24 = vshrl.u32 %v295_v35, %v311_v54  ;;  %v316_v26 = vadd.s32 127, %v315_v41  ;;  %v5056_v35 = vor.u32 %v530_v33, %v529_v63  ;;  %v5058_v52 = vor.u32 %v533_v34, %v532_v29 }
  0x68   :  { %v457_v61 = vsub.s32 %v453_v42, %v456_v21  ;;  %v554_v42 = vsel %vm544_vm10, %v540_v9, 1326507024  ;;  %v537_v41 = vor.u32 %v536_v60, %v535_v44  ;;  %v479_v23 = vsub.s32 4, %v455_v56 }
  0x69   :  { %v314_v28 = vor.u32 %v313_v24, %v312_v38  ;;  %v317_v31 = vshll.u32 %v316_v26, 23  ;;  %v517_v24 = vor.u32 8388608, %v516_v62  ;;  %vm542_vm14 = vcmp.lt.s32.totalorder %v5034_v32, 2 }
  0x6a   :  { %vm458_vm9 = vcmp.lt.s32.totalorder %v457_v61, 0  ;;  %v459_v43 = vsub.s32 0, %v457_v61  ;;  %v555_v17 = vsel %vm543_vm12, %v537_v41, %v554_v42  ;;  %v326_v63 = vsel %vm203_vm8, %v325_v49, %v5012_v22 }
  0x6b   :  { %v318_v59 = vor.u32 4788187, %v317_v31  ;;  %v321_v39 = vcvt.s32.f32 %v314_v28  ;;  %v553_v31 = vsel %vm541_vm11, %v5056_v35, %v5058_v52  ;;  %v5088_v33 = vor.u32 %v527_v19, %v526_v5  ;;  %v5121_v19 = vld [vmem:[#allocation5 + $0x18] sm:$0xff] }
  0x6c   :  { %v460_v11 = vsel %vm458_vm9, %v459_v43, %v457_v61  ;;  %v449_v34 = vadd.s32 %v5020_v51, %v5024_v16  ;;  %v556_v40 = vsel %vm542_vm14, %v553_v31, %v555_v17  ;;  %v5100_v45 = vshll.u32 %v517_v24, 8 }
  0x6d   :  { %v319_v6 = vand.u32 2147483647, %v318_v59  ;;  %v461_v38 = vclz %v460_v11  ;;  %v550_v59 = vsel %vm544_vm10, %v537_v41, 920167782  ;;  %v328_v9 = vsel %vm5066_vm13, 0, %v326_v63 }
  0x6e   :  { %v551_v60 = vsel %vm543_vm12, %v5058_v52, %v550_v59  ;;  %v558_v11 = vand.u32 65535, %v5100_v45  ;;  %v561_v42 = vshrl.u32 %v556_v40, 16  ;;  %v560_v31 = vand.u32 65535, %v556_v40 }
  0x6f   :  { %v322_v10 = vmul.f32 %v321_v39, %v319_v6  ;;  %v4191_v28 = vadd.s32 4294967294, %v461_v38  ;;  %v480_v39 = vsel %vm357_vm15, %v479_v23, %v455_v56  ;;  %v549_v56 = vsel %vm541_vm11, %v5088_v33, %v5056_v35 }
  0x70   :  { %v5128_v47 = vsel %vm542_vm14, %v549_v56, %v551_v60  ;;  %v666_v59 = vand.u32 2139095040, %v5121_v19  ;;  %v562_v40 = vmul.u32 %v560_v31, %v558_v11 }
  0x71   :  { %v323_v54 = vxor.u32 2147483648, %v322_v10  ;;  %vm4192_vm0 = vcmp.lt.s32.totalorder %v4191_v28, 0 }
  0x72   :  { %v464_v22 = vsel %vm4192_vm0, 0, %v4191_v28  ;;  %v559_v28 = vshrl.u32 %v5100_v45, 16 }
  0x73   :  { %v324_v26 = vsel %vm203_vm8, %v323_v54, %v322_v10  ;;  %v465_v6 = vsub.s32 32, %v464_v22  ;;  %v466_v44 = vshll.u32 %v457_v61, %v464_v22  ;;  %v469_v16 = vsub.s32 4294967266, %v464_v22  ;;  %v5124_v54 = vld [vmem:[#allocation2] sm:$0xff]  }
  0x74   :  { %v5085_v21 = vsel %vm5066_vm13, %v4854_v12, %v324_v26  ;;  %v5119_v10 = vsel %vm5104_vm1, 0, %v480_v39  ;;  %v1585_v26 = vadd.s32 3, %v328_v9  ;;  %v4337_v22 = vunpack.c.l.bf16 %v5124_v54 }
  0x75   :  { %v329_v29 = vmul.f32 %v5085_v21, %v5085_v21  ;;  %v467_v5 = vshrl.u32 %v449_v34, %v465_v6  ;;  %v470_v20 = vadd.s32 127, %v469_v16  ;;  %v582_v34 = vand.u32 65535, %v5128_v47 }
  0x76   :  { %v4338_v6 = vunpack.c.h.bf16 %v5124_v54  ;;  %v1740_v56 = vadd.s32 3, %v5119_v10  ;;  %vm344_vm13 = vweird.f32 %v4854_v12  ;;  %v663_v12 = vand.u32 2147483647, %v5121_v19 }
  0x77   :  { %v330_v49 = vmul.f32 -0.001358992, %v329_v29  ;;  %v337_v62 = vmul.f32 -0.00019511016, %v329_v29  ;;  %v468_v23 = vor.u32 %v467_v5, %v466_v44  ;;  %v471_v24 = vshll.u32 %v470_v20, 23 }
  0x78   :  { %v583_v20 = vshrl.u32 %v5128_v47, 16  ;;  %v5141_v36 = vmul.u32 %v582_v34, %v559_v28 }
  0x79   :  { %v331_v61 = vadd.f32 0.041655596, %v330_v49  ;;  %v338_v43 = vadd.f32 0.008332121, %v337_v62  ;;  %v472_v39 = vor.u32 4788187, %v471_v24  ;;  %v475_v49 = vcvt.s32.f32 %v468_v23 }
  0x7a   :  { %v563_v62 = vmul.u32 %v561_v42, %v558_v11  ;;  %v565_v23 = vmul.u32 %v561_v42, %v559_v28  ;;  %v525_v42 = vshrl.u32 %v6864_v48, %v5031_v46 }
  0x7b   :  { %v332_v38 = vmul.f32 %v331_v61, %v329_v29  ;;  %v339_v41 = vmul.f32 %v338_v43, %v329_v29  ;;  %v473_v60 = vand.u32 2147483647, %v472_v39  ;;  %v5136_v61 = vand.u32 3, %v1585_v26 }
  0x7c   :  { %v5138_v43 = vmul.u32 %v560_v31, %v559_v28  ;;  %v566_v37 = vshll.u32 %v563_v62, 16 }
  0x7d   :  { %v333_v17 = vadd.f32 -0.4999988, %v332_v38  ;;  %v340_v63 = vadd.f32 -0.16666654, %v339_v41  ;;  %v584_v38 = vmul.u32 %v582_v34, %v558_v11  ;;  %v667_v41 = vshrl.u32 %v666_v59, 23 }
  0x7e   :  { %v476_v24 = vmul.f32 %v475_v49, %v473_v60  ;;  %v568_v26 = vshll.u32 %v5138_v43, 16  ;;  %vm1588_vm2 = vcmp.eq.s32.totalorder %v5136_v61, 0  ;;  %vm570_vm3 = vc.u32 %v562_v40, %v566_v37 }
  0x7f   :  { %v334_v44 = vmul.f32 %v333_v17, %v329_v29  ;;  %v341_v16 = vmul.f32 %v340_v63, %v329_v29  ;;  %v5143_v29 = vand.u32 3, %v1740_v56  ;;  %v5145_v63 = vand.u32 3, %v328_v9 }
  0x80   :  { %v477_v39 = vxor.u32 2147483648, %v476_v24  ;;  %v572_v31 = vadd.s32 %v566_v37, %v562_v40  ;;  %vm1591_vm4 = vcmp.eq.s32.totalorder %v5136_v61, 2  ;;  %v571_v34 = vsel %vm570_vm3, 1, %v4734_v27 }
  0x81   :  { %v342_v5 = vadd.f32 1.0, %v341_v16  ;;  %v335_v17 = vadd.f32 1.0, %v334_v44  ;;  %vm1587_vm5 = vcmp.lt.s32.totalorder %v5136_v61, 2  ;;  %v573_v59 = vadd.s32 %v571_v34, %v565_v23 }
  0x82   :  { %v478_v9 = vsel %vm357_vm15, %v477_v39, %v476_v24  ;;  %vm574_vm6 = vc.u32 %v572_v31, %v568_v26  ;;  %v585_v49 = vmul.u32 %v583_v20, %v558_v11  ;;  %vm346_vm7 = vcmp.lt.s32.totalorder %v5145_v63, 2 }
  0x83   :  { %v343_v47 = vmul.f32 %v342_v5, %v5085_v21  ;;  %v351_v44 = vxor.u32 2147483648, %v335_v17  ;;  %v481_v37 = vsel %vm5104_vm1, %v4856_v13, %v478_v9  ;;  %v546_v21 = vsel %vm544_vm10, %v5058_v52, 2102212464 }
  0x84   :  { %v575_v46 = vsel %vm574_vm6, 1, %v4734_v27  ;;  %v483_v16 = vmul.f32 %v481_v37, %v481_v37  ;;  %vm347_vm8 = vcmp.eq.s32.totalorder %v5145_v63, 0  ;;  %vm350_vm9 = vcmp.eq.s32.totalorder %v5145_v63, 2 }
  0x85   :  { %v348_v56 = vxor.u32 2147483648, %v343_v47  ;;  %v567_v11 = vshrl.u32 %v563_v62, 16  ;;  %v577_v60 = vadd.s32 %v575_v46, %v573_v59  ;;  %v588_v40 = vshll.u32 %v585_v49, 16 }
  0x86   :  { %v484_v51 = vmul.f32 -0.001358992, %v483_v16  ;;  %v491_v5 = vmul.f32 -0.00019511016, %v483_v16  ;;  %v547_v52 = vsel %vm543_vm12, %v5056_v35, %v546_v21  ;;  %v587_v24 = vmul.u32 %v583_v20, %v559_v28 }
  0x87   :  { %v1593_v23 = vsel %vm1591_vm4, %v351_v44, %v343_v47  ;;  %v545_v26 = vsel %vm541_vm11, %v525_v42, %v5088_v33  ;;  %v569_v62 = vshrl.u32 %v5138_v43, 16  ;;  %v590_v39 = vshll.u32 %v5141_v36, 16 }
  0x88   :  { %v485_v31 = vadd.f32 0.041655596, %v484_v51  ;;  %v492_v34 = vadd.f32 0.008332121, %v491_v5  ;;  %vm592_vm10 = vc.u32 %v584_v38, %v588_v40  ;;  %v594_v9 = vadd.s32 %v588_v40, %v584_v38 }
  0x89   :  { %v1590_v59 = vsel %vm1588_vm2, %v335_v17, %v348_v56  ;;  %v578_v35 = vadd.s32 %v577_v60, %v567_v11  ;;  %v589_v28 = vshrl.u32 %v585_v49, 16  ;;  %v593_v20 = vsel %vm592_vm10, 1, %v4734_v27 }
  0x8a   :  { %v486_v21 = vmul.f32 %v485_v31, %v483_v16  ;;  %v493_v46 = vmul.f32 %v492_v34, %v483_v16  ;;  %v595_v18 = vadd.s32 %v593_v20, %v587_v24  ;;  %vm596_vm12 = vc.u32 %v594_v9, %v590_v39 }
  0x8b   :  { %v349_v33 = vsel %vm347_vm8, %v335_v17, %v348_v56  ;;  %v352_v43 = vsel %vm350_vm9, %v351_v44, %v343_v47  ;;  %v591_v42 = vshrl.u32 %v5141_v36, 16  ;;  %v597_v38 = vsel %vm596_vm12, 1, %v4734_v27 }
  0x8c   :  { %v487_v40 = vadd.f32 -0.4999988, %v486_v21  ;;  %v494_v51 = vadd.f32 -0.16666654, %v493_v46  ;;  %v599_v11 = vadd.s32 %v597_v38, %v595_v18  ;;  %v4196_v49 = vadd.s32 4294967169, %v667_v41 }
  0x8d   :  { %v1594_v60 = vsel %vm1587_vm5, %v1590_v59, %v1593_v23  ;;  %vm1742_vm11 = vcmp.lt.s32.totalorder %v5143_v29, 2  ;;  %v499_v5 = vand.u32 3, %v5119_v10  ;;  %v5191_v24 = vadd.s32 %v578_v35, %v569_v62 }
  0x8e   :  { %v488_v17 = vmul.f32 %v487_v40, %v483_v16  ;;  %v495_v56 = vmul.f32 %v494_v51, %v483_v16  ;;  %v598_v47 = vadd.s32 %v594_v9, %v590_v39  ;;  %v600_v44 = vadd.s32 %v599_v11, %v589_v28 }
  0x8f   :  { %vm1743_vm15 = vcmp.eq.s32.totalorder %v5143_v29, 0  ;;  %vm1746_vm0 = vcmp.eq.s32.totalorder %v5143_v29, 2  ;;  %v353_v18 = vsel %vm346_vm7, %v349_v33, %v352_v43  ;;  %v548_v36 = vsel %vm542_vm14, %v545_v26, %v547_v52 }
  0x90   :  { %v489_v61 = vadd.f32 1.0, %v488_v17  ;;  %v496_v41 = vadd.f32 1.0, %v495_v56  ;;  %v601_v23 = vadd.s32 %v600_v44, %v591_v42  ;;  %v673_v10 = vadd.s32 1, %v4196_v49 }
  0x91   :  { %v1595_v62 = vsel %vm344_vm13, nan, %v1594_v60  ;;  %vm504_vm1 = vcmp.eq.s32.totalorder %v499_v5, 2  ;;  %v6848_v31 = vmov 4   ;;  %v6850_v34 = vmov 1  }
  0x92   :  { %v497_v16 = vmul.f32 %v496_v41, %v481_v37  ;;  %v505_v39 = vxor.u32 2147483648, %v489_v61  ;;  %4407 = vset.pattern.permute.xlu0 %v6848_v31  ;;  %4401 = vset.pattern.permute.xlu1 %v6850_v34  ;;  %vm604_vm2 = vc.u32 %v5191_v24, %v598_v47  ;;  %v605_v32 = vadd.s32 1, %v601_v23 }
  0x93   :  { %v354_v63 = vsel %vm344_vm13, nan, %v353_v18  ;;  %vm500_vm14 = vcmp.lt.s32.totalorder %v499_v5, 2  ;;  %vm501_vm3 = vcmp.eq.s32.totalorder %v499_v5, 0  ;;  %v602_v52 = vmul.u32 %v5100_v45, %v548_v36 }
  0x94   :  { %v502_v26 = vxor.u32 2147483648, %v497_v16  ;;  %v1748_v37 = vsel %vm1746_vm0, %v505_v39, %v497_v16  ;;  %v506_v9 = vsel %vm504_vm1, %v505_v39, %v497_v16  ;;  %vm674_vm4 = vcmp.gt.s32.totalorder %v673_v10, 0 }
  0x95   :  { %vm498_vm5 = vweird.f32 %v4856_v13  ;;  %v2681_v59 = vmul.f32 %v4337_v22, %v1595_v62  ;;  %v606_v20 = vsel %vm604_vm2, %v605_v32, %v601_v23  ;;  %v1433_v42 = vmul.f32 %v4337_v22, %v354_v63 }
  0x96   :  { %v1745_v21 = vsel %vm1743_vm15, %v489_v61, %v502_v26  ;;  %v503_v45 = vsel %vm501_vm3, %v489_v61, %v502_v26  ;;  %v675_v38 = vsel %vm674_vm4, %v673_v10, 0  ;;  %v607_v11 = vadd.s32 %v606_v20, %v602_v52 }
  0x97   :  { %v1749_v43 = vsel %vm1742_vm11, %v1745_v21, %v1748_v37  ;;  %v507_v13 = vsel %vm500_vm14, %v503_v45, %v506_v9  ;;  %v5228_v29 = vand.u32 8388607, %v663_v12  ;;  %vm6866_vm6 = vcmask 261120  }
  0x98   :  { %v1750_v40 = vsel %vm498_vm5, nan, %v1749_v43  ;;  %v508_v51 = vsel %vm498_vm5, nan, %v507_v13  ;;  %v5231_v17 = vand.u32 31, %v675_v38  ;;  %v608_v56 = vadd.s32 536870912, %v607_v11 }
  0x99   :  { %v2682_v49 = vmul.f32 %v4338_v6, %v1750_v40  ;;  %v1434_v60 = vmul.f32 %v4338_v6, %v508_v51  ;;  %v671_v54 = vor.u32 8388608, %v5228_v29  ;;  %v5239_v36 = vadd.s32 %v598_v47, %v5191_v24 }
  0x9a   :  { %v5241_v61 = vshrl.u32 %v675_v38, 5  ;;  %v5243_v10 = vshrl.u32 %v608_v56, 30  ;;  %v678_v62 = vsub.s32 32, %v5231_v17  ;;  %v680_v26 = vshll.u32 %v6864_v48, %v5231_v17 }
  0x9b   :  { %v2692_v35 = vpop.xlane.xlu0 %2691  ;;  %v2698_v28 = vpop.xlane.xlu1 %2697  ;;  %v2854_v5 = vpack.c.bf16 %v2682_v49, %v2681_v59  ;;  %v2850_v22 = vpack.c.bf16 %v1434_v60, %v1433_v42  ;;  %v683_v59 = vshll.u32 %v6862_v50, %v5231_v17  ;;  %v686_v56 = vshll.u32 %v6860_v53, %v5231_v17 }
  0x9c   :  { %v2714_v46 = vadd.f32 1.0, %v2692_v35  ;;  %v5215_v33 = vadd.f32 1.0, %v2698_v28  ;;  %v5258_v9 = vshrl.u32 %v6864_v48, %v678_v62  ;;  %v610_v20 = vshll.u32 %v5243_v10, 30 }
  0x9d   :  { %4243 = vmatmul.msk.bf16.vlgmr.msra.gmra.mxu0 %vm6866_vm6, %v2854_v5  ;;  %4255 = vmatmul.msk.bf16.vlgmr.msra.gmra.mxu1 %vm6866_vm6, %v2850_v22  ;;  %v681_v49 = vshrl.u32 %v6862_v50, %v678_v62  ;;  %v684_v60 = vshrl.u32 %v6860_v53, %v678_v62  ;;  %vm695_vm1 = vcmp.lt.s32.totalorder %v5241_v61, 1  ;;  %vm698_vm3 = vcmp.lt.s32.totalorder %v5241_v61, 4 }
  0x9e   :  { %4467 = vrcp.f32 %v2714_v46  ;;  %v2731_v39 = vand.u32 2147483647, %v2714_v46  ;;  %v2733_v32 = vand.u32 2147483648, %v2714_v46  ;;  %v2761_v63 = vand.u32 2147483647, %v5215_v33 }
  0x9f   :  { %4469 = vrcp.f32 %v5215_v33  ;;  %v2763_v47 = vand.u32 2147483648, %v5215_v33  ;;  %vm2727_vm7 = vweird.f32 %v2714_v46  ;;  %vm2757_vm13 = vweird.f32 %v5215_v33 }
  0xa0   :  { %vm5263_vm9 = vcmp.eq.f32.partialorder %v2731_v39, 8.507059e+37  ;;  %v2734_v45 = vor.u32 1.1754944e-38, %v2733_v32  ;;  %vm5268_vm10 = vcmp.eq.f32.partialorder %v2761_v63, 8.507059e+37  ;;  %v5273_v40 = vsub.s32 %v607_v11, %v610_v20 }
  0xa1   :  { %v2764_v38 = vor.u32 1.1754944e-38, %v2763_v47  ;;  %v689_v11 = vshll.u32 %v6858_v55, %v5231_v17  ;;  %v687_v63 = vshrl.u32 %v6858_v55, %v678_v62  ;;  %v5304_v47 = vor.u32 %v681_v49, %v680_v26 }
  0xa2   :  { %vm612_vm15 = vcmp.lt.s32.totalorder %v5273_v40, 0  ;;  %v613_v32 = vsub.s32 0, %v5273_v40 }
  0xa3   :  { %v2695_v44 = vpop.xlane.xlu0 %2694  ;;  %v2701_v23 = vpop.xlane.xlu1 %2700 }
  0xa4   :  { %v4468_v6 = vpop.eup %4467  ;;  %v5236_v18 = vadd.f32 1.0, %v2695_v44  ;;  %v5255_v37 = vadd.f32 1.0, %v2701_v23 }
  0xa5   :  { %v2723_v41 = vmul.f32 %v4468_v6, %v2714_v46  ;;  %v5246_v16 = vpop.eup %4469  ;;  %vm2728_vm8 = vweird.f32 %v4468_v6 }
  0xa6   :  { %4471 = vrcp.f32 %v5236_v18  ;;  %v2753_v24 = vmul.f32 %v5246_v16, %v5215_v33  ;;  %vm2729_vm12 = vmor %vm2727_vm7, %vm2728_vm8  ;;  %vm2758_vm11 = vweird.f32 %v5246_v16  ;;  %v614_v33 = vsel %vm612_vm15, %v613_v32, %v5273_v40 }
  0xa7   :  { %v2724_v52 = vsub.f32 1.0, %v2723_v41  ;;  %4473 = vrcp.f32 %v5255_v37  ;;  %v690_v41 = vshrl.u32 %v6856_v57, %v678_v62  ;;  %vm5296_vm0 = vmor %vm2757_vm13, %vm2758_vm11  ;;  %v615_v20 = vclz %v614_v33 }
  0xa8   :  { %v2754_v28 = vsub.f32 1.0, %v2753_v24  ;;  %v2748_v24 = vand.u32 2147483648, %v5236_v18  ;;  %vm2742_vm14 = vweird.f32 %v5236_v18  ;;  %vm697_vm8 = vcmp.lt.s32.totalorder %v5241_v61, 3 }
  0xa9   :  { %v2725_v35 = vmul.f32 %v4468_v6, %v2724_v52  ;;  %v2746_v52 = vand.u32 2147483647, %v5236_v18  ;;  %v691_v21 = vor.u32 %v690_v41, %v689_v11  ;;  %v4194_v49 = vadd.s32 4294967294, %v615_v20 }
  0xaa   :  { %v2755_v42 = vmul.f32 %v5246_v16, %v2754_v28  ;;  %v4743_v41 = vmov 6   ;;  %vm511_vm13 = vcmp.lt.s32.totalorder %v5007_v58, 0 }
  0xab   :  { %v2726_v13 = vadd.f32 %v4468_v6, %v2725_v35  ;;  %v692_v35 = vshll.u32 %v6856_v57, %v5231_v17  ;;  %vm2747_vm5 = vcmp.eq.f32.partialorder %v2746_v52, 8.507059e+37  ;;  %v2749_v17 = vor.u32 1.1754944e-38, %v2748_v24 }
  0xac   :  { %v4472_v51 = vpop.eup %4471  ;;  %v2756_v44 = vadd.f32 %v5246_v16, %v2755_v42  ;;  %v685_v42 = vor.u32 %v684_v60, %v683_v59  ;;  %vm4195_vm7 = vcmp.lt.s32.totalorder %v4194_v49, 0 }
  0xad   :  { %v2730_v5 = vsel %vm2729_vm12, %v4468_v6, %v2726_v13  ;;  %v2738_v22 = vmul.f32 %v4472_v51, %v5236_v18  ;;  %vm2743_vm2 = vweird.f32 %v4472_v51  ;;  %v5312_v28 = vpop.eup %4473  ;;  %v704_v18 = vsel %vm698_vm3, %v691_v21, 920167782 }
  0xae   :  { %v2735_v46 = vsel %vm5263_vm9, %v2734_v45, %v2730_v5  ;;  %v2760_v26 = vsel %vm5296_vm0, %v5246_v16, %v2756_v44  ;;  %v693_v45 = vshrl.u32 %v6854_v8, %v678_v62  ;;  %vm2744_vm4 = vmor %vm2742_vm14, %vm2743_vm2  ;;  %v688_v5 = vor.u32 %v687_v63, %v686_v56 }
  0xaf   :  { %v5292_v6 = vmul.f32 %v4353_v3, %v2735_v46  ;;  %v2739_v23 = vsub.f32 1.0, %v2738_v22  ;;  %v2765_v16 = vsel %vm5268_vm10, %v2764_v38, %v2760_v26  ;;  %v5326_v11 = vmul.f32 %v5312_v28, %v5255_v37 }
  0xb0   :  { %v694_v62 = vor.u32 %v693_v45, %v692_v35  ;;  %vm696_vm9 = vcmp.lt.s32.totalorder %v5241_v61, 2  ;;  %v703_v43 = vsel %vm695_vm1, %v5304_v47, %v685_v42  ;;  %v707_v44 = vsel %vm695_vm1, %v685_v42, %v688_v5 }
  0xb1   :  { %v2740_v3 = vmul.f32 %v4472_v51, %v2739_v23  ;;  %3211 = vperm.xlu0 %4407, %v5292_v6   ;;  %3043 = vperm.xlu1 %4401, %v5292_v6   ;;  %v705_v23 = vsel %vm697_vm8, %v688_v5, %v704_v18  ;;  %vm5370_vm10 = vcmp.le.f32.partialorder %v509_v25, 0.7853982  ;;  %v5376_v45 = vmul.f32 %v4357_v4, %v2765_v16 }
  0xb2   :  { %2988 = vperm.xlu2 %4400, %v5292_v6   ;;  %v708_v39 = vsel %vm698_vm3, %v694_v62, 1326507024  ;;  %v706_v52 = vsel %vm696_vm9, %v703_v43, %v705_v23  ;;  %vm2772_vm14 = vweird.f32 %v5255_v37  ;;  %v2776_v61 = vand.u32 2147483647, %v5255_v37 }
  0xb3   :  { %v2741_v13 = vadd.f32 %v4472_v51, %v2740_v3  ;;  %v709_v24 = vsel %vm697_vm8, %v691_v21, %v708_v39  ;;  %v736_v3 = vand.u32 65535, %v706_v52 }
  0xb4   :  { %v710_v29 = vsel %vm696_vm9, %v707_v44, %v709_v24 }
  0xb5   :  { %v2745_v22 = vsel %vm2744_vm4, %v4472_v51, %v2741_v13  ;;  %v618_v51 = vsel %vm4195_vm7, 0, %v4194_v49  ;;  %v714_v20 = vand.u32 65535, %v710_v29  ;;  %v715_v21 = vshrl.u32 %v710_v29, 16 }
  0xb6   :  { %v2750_v46 = vsel %vm2747_vm5, %v2749_v17, %v2745_v22  ;;  %v619_v38 = vsub.s32 32, %v618_v51  ;;  %v620_v60 = vshll.u32 %v5273_v40, %v618_v51  ;;  %v623_v56 = vsub.s32 4294967266, %v618_v51 }
  0xb7   :  { %v5333_v59 = vmul.f32 %v4354_v14, %v2750_v46  ;;  %v700_v14 = vsel %vm698_vm3, %v688_v5, 2102212464  ;;  %v5352_v40 = vshll.u32 %v671_v54, 8  ;;  %v699_v13 = vsel %vm695_vm1, %v5258_v9, %v5304_v47  ;;  %v5382_v5 = vld [vmem:[#allocation5 + $0x20] sm:$0xff] }
  0xb8   :  { %v621_v32 = vshrl.u32 %v5239_v36, %v619_v38  ;;  %v624_v63 = vadd.s32 127, %v623_v56  ;;  %v737_v17 = vshrl.u32 %v706_v52, 16  ;;  %v701_v18 = vsel %vm697_vm8, %v685_v42, %v700_v14 }
  0xb9   :  { %4412 = vset.pattern.permute.xlu0 %v4743_v41  ;;  %4404 = vset.pattern.permute.xlu1 %v6852_v0  ;;  %v712_v54 = vand.u32 65535, %v5352_v40  ;;  %v713_v36 = vshrl.u32 %v5352_v40, 16  ;;  %v820_v56 = vand.u32 2139095040, %v5382_v5  ;;  %vm2773_vm3 = vweird.f32 %v5312_v28 }
  0xba   :  { %4402 = vset.pattern.permute.xlu2 %v6850_v34  ;;  %3327 = vperm.xlu0 %4412, %v5333_v59   ;;  %v622_v35 = vor.u32 %v621_v32, %v620_v60  ;;  %v625_v26 = vshll.u32 %v624_v63, 23  ;;  %vm5429_vm4 = vmor %vm2772_vm14, %vm2773_vm3  ;;  %vm5435_vm5 = vcmp.eq.f32.partialorder %v2776_v61, 8.507059e+37  ;;  %vm665_vm7 = vcmp.lt.s32.totalorder %v5121_v19, 0 }
  0xbb   :  { %3103 = vperm.xlu1 %4404, %v5333_v59   ;;  %3047 = vperm.xlu2 %4402, %v5333_v59   ;;  %v740_v49 = vmul.u32 %v736_v3, %v713_v36  ;;  %v716_v62 = vmul.u32 %v714_v20, %v712_v54  ;;  %v717_v46 = vmul.u32 %v715_v21, %v712_v54 }
  0xbc   :  { %v626_v25 = vor.u32 4788187, %v625_v26  ;;  %v629_v22 = vcvt.s32.f32 %v622_v35  ;;  %v718_v51 = vmul.u32 %v714_v20, %v713_v36  ;;  %v738_v43 = vmul.u32 %v736_v3, %v712_v54 }
  0xbd   :  { %v739_v4 = vmul.u32 %v737_v17, %v712_v54  ;;  %v719_v38 = vmul.u32 %v715_v21, %v713_v36  ;;  %v720_v60 = vshll.u32 %v717_v46, 16  ;;  %v741_v47 = vmul.u32 %v737_v17, %v713_v36 }
  0xbe   :  { %v627_v16 = vand.u32 2147483647, %v626_v25  ;;  %v722_v9 = vshll.u32 %v718_v51, 16  ;;  %v744_v23 = vshll.u32 %v740_v49, 16  ;;  %v721_v32 = vshrl.u32 %v717_v46, 16 }
  0xbf   :  { %v742_v44 = vshll.u32 %v739_v4, 16  ;;  %vm724_vm12 = vc.u32 %v716_v62, %v720_v60  ;;  %v726_v63 = vadd.s32 %v720_v60, %v716_v62  ;;  %v723_v52 = vshrl.u32 %v718_v51, 16 }
  0xc0   :  { %v630_v39 = vmul.f32 %v629_v22, %v627_v16  ;;  %v725_v42 = vsel %vm724_vm12, 1, %v4734_v27  ;;  %v743_v3 = vshrl.u32 %v739_v4, 16  ;;  %v821_v17 = vshrl.u32 %v820_v56, 23 }
  0xc1   :  { %vm746_vm11 = vc.u32 %v738_v43, %v742_v44  ;;  %v748_v14 = vadd.s32 %v742_v44, %v738_v43  ;;  %v727_v29 = vadd.s32 %v725_v42, %v719_v38  ;;  %vm728_vm15 = vc.u32 %v726_v63, %v722_v9  ;;  %v5424_v42 = vld [vmem:[#allocation2 + $0x8] sm:$0xff]  }
  0xc2   :  { %4417 = vset.pattern.permute.xlu0 %v6850_v34  ;;  %v631_v24 = vxor.u32 2147483648, %v630_v39  ;;  %v747_v54 = vsel %vm746_vm11, 1, %v4734_v27  ;;  %v729_v36 = vsel %vm728_vm15, 1, %v4734_v27  ;;  %v745_v22 = vshrl.u32 %v740_v49, 16 }
  0xc3   :  { %4403 = vset.pattern.permute.xlu2 %v6852_v0  ;;  %3051 = vperm.xlu0 %4417, %v5376_v45   ;;  %v749_v35 = vadd.s32 %v747_v54, %v741_v47  ;;  %vm750_vm0 = vc.u32 %v748_v14, %v744_v23  ;;  %v731_v20 = vadd.s32 %v729_v36, %v727_v29  ;;  %v4199_v4 = vadd.s32 4294967169, %v821_v17 }
  0xc4   :  { %3099 = vperm.xlu2 %4403, %v5292_v6   ;;  %v632_v26 = vsel %vm511_vm13, %v631_v24, %v630_v39  ;;  %v751_v21 = vsel %vm750_vm0, 1, %v4734_v27  ;;  %v5406_v43 = vadd.s32 %v748_v14, %v744_v23  ;;  %v2769_v16 = vsub.f32 1.0, %v5326_v11 }
  0xc5   :  { %v5400_v25 = vsel %vm5370_vm10, %v5007_v58, %v632_v26  ;;  %v753_v62 = vadd.s32 %v751_v21, %v749_v35  ;;  %v732_v51 = vadd.s32 %v731_v20, %v721_v32  ;;  %v702_v38 = vsel %vm696_vm9, %v699_v13, %v701_v18 }
  0xc6   :  { %v5404_v46 = vmul.f32 %v5400_v25, %v5400_v25  ;;  %v827_v49 = vadd.s32 1, %v4199_v4  ;;  %v756_v39 = vmul.u32 %v5352_v40, %v702_v38  ;;  %v2770_v23 = vmul.f32 %v5312_v28, %v2769_v16 }
  0xc7   :  { %v754_v60 = vadd.s32 %v753_v62, %v743_v3  ;;  %v5412_v9 = vadd.s32 %v732_v51, %v723_v52  ;;  %v6847_v63 = vand.u32 2147483647, %v5382_v5  ;;  %v2778_v40 = vand.u32 2147483648, %v5255_v37 }
  0xc8   :  { %v645_v56 = vmul.f32 -0.00019511016, %v5404_v46  ;;  %v638_v44 = vmul.f32 -0.001358992, %v5404_v46  ;;  %vm828_vm2 = vcmp.gt.s32.totalorder %v827_v49, 0  ;;  %v633_v14 = vsub.s32 4, %v5243_v10 }
  0xc9   :  { %v755_v47 = vadd.s32 %v754_v60, %v745_v22  ;;  %vm758_vm1 = vc.u32 %v5412_v9, %v5406_v43  ;;  %v829_v13 = vsel %vm828_vm2, %v827_v49, 0  ;;  %v2771_v54 = vadd.f32 %v5312_v28, %v2770_v23 }
  0xca   :  { %v646_v11 = vadd.f32 0.008332121, %v645_v56  ;;  %v831_v52 = vand.u32 31, %v829_v13  ;;  %v639_v24 = vadd.f32 0.041655596, %v638_v44  ;;  %v4341_v37 = vunpack.c.l.bf16 %v5424_v42 }
  0xcb   :  { %v759_v32 = vadd.s32 1, %v755_v47  ;;  %v4342_v21 = vunpack.c.h.bf16 %v5424_v42  ;;  %v824_v17 = vand.u32 8388607, %v6847_v63  ;;  %v2779_v22 = vor.u32 1.1754944e-38, %v2778_v40  ;;  %v5472_v40 = vld [vmem:[#allocation5 + $0x28] sm:$0xff] }
  0xcc   :  { %v647_v36 = vmul.f32 %v646_v11, %v5404_v46  ;;  %v5433_v26 = vsub.s32 32, %v831_v52  ;;  %v634_v62 = vsel %vm511_vm13, %v633_v14, %v5243_v10  ;;  %v640_v51 = vmul.f32 %v639_v24, %v5404_v46 }
  0xcd   :  { %v760_v18 = vsel %vm758_vm1, %v759_v32, %v755_v47  ;;  %v2775_v16 = vsel %vm5429_vm4, %v5312_v28, %v2771_v54  ;;  %v5450_v60 = vshrl.u32 %v829_v13, 5  ;;  %v837_v56 = vshll.u32 %v6862_v50, %v831_v52 }
  0xce   :  { %v761_v29 = vadd.s32 %v760_v18, %v756_v39  ;;  %v648_v38 = vadd.f32 -0.16666654, %v647_v36  ;;  %v838_v47 = vshrl.u32 %v6860_v53, %v5433_v26  ;;  %v840_v44 = vshll.u32 %v6860_v53, %v831_v52 }
  0xcf   :  { %v841_v58 = vshrl.u32 %v6858_v55, %v5433_v26  ;;  %v636_v10 = vsel %vm5370_vm10, 0, %v634_v62  ;;  %v825_v39 = vor.u32 8388608, %v824_v17  ;;  %v846_v28 = vshll.u32 %v6856_v57, %v831_v52 }
  0xd0   :  { %v762_v35 = vadd.s32 536870912, %v761_v29  ;;  %v847_v23 = vshrl.u32 %v6854_v8, %v5433_v26  ;;  %v641_v11 = vadd.f32 -0.4999988, %v640_v51  ;;  %v843_v61 = vshll.u32 %v6858_v55, %v831_v52 }
  0xd1   :  { %v844_v13 = vshrl.u32 %v6856_v57, %v5433_v26  ;;  %v2780_v18 = vsel %vm5435_vm5, %v2779_v22, %v2775_v16  ;;  %v649_v33 = vmul.f32 %v648_v38, %v5404_v46  ;;  %vm852_vm8 = vcmp.lt.s32.totalorder %v5450_v60, 4  ;;  %v4490_v57 = vld [vmem:[#allocation5 + $0x18] sm:$0xff] }
  0xd2   :  { %v763_v4 = vshrl.u32 %v762_v35, 30  ;;  %v848_v14 = vor.u32 %v847_v23, %v846_v28  ;;  %v842_v54 = vor.u32 %v841_v58, %v840_v44  ;;  %vm849_vm13 = vcmp.lt.s32.totalorder %v5450_v60, 1 }
  0xd3   :  { %vm851_vm10 = vcmp.lt.s32.totalorder %v5450_v60, 3  ;;  %v5483_v3 = vshll.u32 %v825_v39, 8  ;;  %v642_v35 = vmul.f32 %v641_v11, %v5404_v46  ;;  %v845_v17 = vor.u32 %v844_v13, %v843_v61 }
  0xd4   :  { %v764_v49 = vshll.u32 %v763_v4, 30  ;;  %v862_v36 = vsel %vm852_vm8, %v848_v14, 1326507024  ;;  %v974_v22 = vand.u32 2139095040, %v5472_v40  ;;  %v650_v62 = vadd.f32 1.0, %v649_v33 }
  0xd5   :  { %v834_v16 = vshll.u32 %v6864_v48, %v831_v52  ;;  %v835_v38 = vshrl.u32 %v6862_v50, %v5433_v26  ;;  %vm850_vm12 = vcmp.lt.s32.totalorder %v5450_v60, 2  ;;  %v863_v46 = vsel %vm851_vm10, %v845_v17, %v862_v36 }
  0xd6   :  { %v5463_v32 = vsub.s32 %v761_v29, %v764_v49  ;;  %v5477_v29 = vor.u32 %v838_v47, %v837_v56  ;;  %v787_v56 = vsub.s32 4, %v763_v4  ;;  %v5499_v47 = vmul.f32 %v4358_v15, %v2780_v18 }
  0xd7   :  { %vm5503_vm11 = vcmp.le.f32.partialorder %v663_v12, 0.7853982  ;;  %v757_v44 = vadd.s32 %v5406_v43, %v5412_v9  ;;  %v643_v39 = vadd.f32 1.0, %v642_v35  ;;  %v1895_v28 = vadd.s32 3, %v636_v10 }
  0xd8   :  { %vm766_vm9 = vcmp.lt.s32.totalorder %v5463_v32, 0  ;;  %v767_v24 = vsub.s32 0, %v5463_v32  ;;  %v861_v49 = vsel %vm849_vm13, %v5477_v29, %v842_v54  ;;  %v5510_v23 = vand.u32 65535, %v5483_v3 }
  0xd9   :  { %v5513_v11 = vshrl.u32 %v5483_v3, 16  ;;  %v651_v1 = vmul.f32 %v650_v62, %v5400_v25  ;;  %v5518_v15 = vsel %vm850_vm12, %v861_v49, %v863_v46  ;;  %v5520_v12 = vshrl.u32 %v974_v22, 23 }
  0xda   :  { %v768_v20 = vsel %vm766_vm9, %v767_v24, %v5463_v32  ;;  %v788_v43 = vsel %vm665_vm7, %v787_v56, %v763_v4  ;;  %v1896_v9 = vand.u32 3, %v1895_v28  ;;  %v836_v13 = vor.u32 %v835_v38, %v834_v16  ;;  %v5527_v24 = vld [vmem:[#allocation5 + $0x10] sm:$0xff] }
  0xdb   :  { %v769_v51 = vclz %v768_v20  ;;  %v833_v25 = vshrl.u32 %v6864_v48, %v5433_v26  ;;  %vm652_vm0 = vweird.f32 %v5527_v24  ;;  %v659_v36 = vxor.u32 2147483648, %v643_v39 }
  0xdc   :  { %v653_v35 = vand.u32 3, %v636_v10  ;;  %v858_v20 = vsel %vm852_vm8, %v845_v17, 920167782  ;;  %v869_v4 = vshrl.u32 %v5518_v15, 16  ;;  %v656_v22 = vxor.u32 2147483648, %v651_v1 }
  0xdd   :  { %v4197_v58 = vadd.s32 4294967294, %v769_v51  ;;  %vm1898_vm1 = vcmp.eq.s32.totalorder %v1896_v9, 0  ;;  %vm1901_vm2 = vcmp.eq.s32.totalorder %v1896_v9, 2  ;;  %v854_v26 = vsel %vm852_vm8, %v842_v54, 2102212464 }
  0xde   :  { %v857_v10 = vsel %vm849_vm13, %v836_v13, %v5477_v29  ;;  %v859_v17 = vsel %vm851_vm10, %v842_v54, %v858_v20  ;;  %v868_v56 = vand.u32 65535, %v5518_v15  ;;  %vm1897_vm14 = vcmp.lt.s32.totalorder %v1896_v9, 2 }
  0xdf   :  { %vm4198_vm15 = vcmp.lt.s32.totalorder %v4197_v58, 0  ;;  %vm655_vm3 = vcmp.eq.s32.totalorder %v653_v35, 0  ;;  %vm658_vm4 = vcmp.eq.s32.totalorder %v653_v35, 2  ;;  %v5544_v49 = vmul.u32 %v869_v4, %v5510_v23 }
  0xe0   :  { %v772_v61 = vsel %vm4198_vm15, 0, %v4197_v58  ;;  %v1900_v58 = vsel %vm1898_vm1, %v643_v39, %v656_v22  ;;  %v1903_v28 = vsel %vm1901_vm2, %v659_v36, %v651_v1  ;;  %v5553_v54 = vsel %vm850_vm12, %v857_v10, %v859_v17 }
  0xe1   :  { %v773_v18 = vsub.s32 32, %v772_v61  ;;  %v774_v33 = vshll.u32 %v5463_v32, %v772_v61  ;;  %v777_v14 = vsub.s32 4294967266, %v772_v61  ;;  %v790_v32 = vsel %vm5503_vm11, 0, %v788_v43 }
  0xe2   :  { %v853_v61 = vsel %vm849_vm13, %v833_v25, %v836_v13  ;;  %v855_v43 = vsel %vm851_vm10, %v5477_v29, %v854_v26  ;;  %v6846_v15 = vand.u32 2147483647, %v5472_v40  ;;  %vm654_vm5 = vcmp.lt.s32.totalorder %v653_v35, 2 }
  0xe3   :  { %v775_v62 = vshrl.u32 %v757_v44, %v773_v18  ;;  %v778_v51 = vadd.s32 127, %v777_v14  ;;  %v660_v14 = vsel %vm658_vm4, %v659_v36, %v651_v1  ;;  %v1904_v20 = vsel %vm1897_vm14, %v1900_v58, %v1903_v28 }
  0xe4   :  { %v870_v13 = vmul.u32 %v868_v56, %v5510_v23  ;;  %v5569_v9 = vsel %vm850_vm12, %v853_v61, %v855_v43  ;;  %v890_v36 = vand.u32 65535, %v5553_v54  ;;  %v891_v35 = vshrl.u32 %v5553_v54, 16  ;;  %v2713_v43 = vpop.xlane.xlu1 %2712 }
  0xe5   :  { %v776_v16 = vor.u32 %v775_v62, %v774_v33  ;;  %v779_v38 = vshll.u32 %v778_v51, 23  ;;  %v657_v33 = vsel %vm655_vm3, %v643_v39, %v656_v22  ;;  %v2050_v62 = vadd.s32 3, %v790_v32  ;;  %v2704_v51 = vpop.xlane.xlu2 %2703 }
  0xe6   :  { %v5559_v29 = vadd.f32 1.0, %v2704_v51  ;;  %v874_v39 = vshll.u32 %v5544_v49, 16  ;;  %v661_v1 = vsel %vm654_vm5, %v657_v33, %v660_v14  ;;  %v1905_v10 = vsel %vm652_vm0, nan, %v1904_v20 }
  0xe7   :  { %v780_v46 = vor.u32 4788187, %v779_v38  ;;  %v783_v44 = vcvt.s32.f32 %v776_v16  ;;  %v2710_v16 = vpop.xlane.xlu0 %2709  ;;  %v4745_v38 = vmov 3   ;;  %v5579_v17 = vmul.u32 %v868_v56, %v5513_v11 }
  0xe8   :  { %4406 = vset.pattern.permute.xlu1 %v4745_v38  ;;  %4422 = vset.pattern.permute.xlu0 %v4745_v38  ;;  %v5562_v26 = vadd.f32 1.0, %v2710_v16  ;;  %4475 = vrcp.f32 %v5559_v29  ;;  %v5583_v60 = vmul.u32 %v869_v4, %v5513_v11  ;;  %v5594_v28 = vand.u32 3, %v2050_v62 }
  0xe9   :  { %v781_v18 = vand.u32 2147483647, %v780_v46  ;;  %3159 = vperm.xlu1 %4406, %v5333_v59   ;;  %4405 = vset.pattern.permute.xlu2 %v4745_v38  ;;  %v5586_v46 = vadd.s32 4294967169, %v5520_v12  ;;  %v662_v56 = vsel %vm652_vm0, nan, %v661_v1  ;;  %vm878_vm8 = vc.u32 %v870_v13, %v874_v39 }
  0xea   :  { %3167 = vperm.xlu0 %4422, %v5499_v47   ;;  %3155 = vperm.xlu2 %4405, %v5292_v6   ;;  %4477 = vrcp.f32 %v5562_v26  ;;  %v5605_v12 = vmul.f32 %v4341_v37, %v1905_v10  ;;  %v5607_v61 = vand.u32 3, %v790_v32  ;;  %v5612_v24 = vadd.f32 1.0, %v2713_v43 }
  0xeb   :  { %v784_v25 = vmul.f32 %v783_v44, %v781_v18  ;;  %v5590_v44 = vand.u32 8388607, %v6846_v15  ;;  %v875_v18 = vshrl.u32 %v5544_v49, 16  ;;  %v876_v14 = vshll.u32 %v5579_v17, 16 }
  0xec   :  { %v877_v20 = vshrl.u32 %v5579_v17, 16  ;;  %v879_v32 = vsel %vm878_vm8, 1, %v4734_v27  ;;  %4479 = vrcp.f32 %v5612_v24  ;;  %v4746_v10 = vmov 5  }
  0xed   :  { %v785_v22 = vxor.u32 2147483648, %v784_v25  ;;  %v2707_v52 = vpop.xlane.xlu2 %2706  ;;  %vm2056_vm9 = vcmp.eq.s32.totalorder %v5594_v28, 2  ;;  %vm812_vm13 = vcmp.eq.s32.totalorder %v5607_v61, 2  ;;  %v5649_v63 = vmul.u32 %v890_v36, %v5510_v23 }
  0xee   :  { %v5621_v62 = vpop.eup %4475  ;;  %vm2053_vm12 = vcmp.eq.s32.totalorder %v5594_v28, 0  ;;  %vm2817_vm0 = vweird.f32 %v5562_v26  ;;  %vm2052_vm1 = vcmp.lt.s32.totalorder %v5594_v28, 2  ;;  %vm808_vm2 = vcmp.lt.s32.totalorder %v5607_v61, 2 }
  0xef   :  { %v786_v58 = vsel %vm665_vm7, %v785_v22, %v784_v25  ;;  %v5623_v25 = vadd.f32 1.0, %v2707_v52  ;;  %v2783_v22 = vmul.f32 %v5621_v62, %v5559_v29  ;;  %vm2787_vm7 = vweird.f32 %v5559_v29 }
  0xf0   :  { %v5601_v4 = vsel %vm5503_vm11, %v5121_v19, %v786_v58  ;;  %v5617_v19 = vmul.f32 %v4341_v37, %v662_v56  ;;  %v5626_v1 = vpop.eup %4477  ;;  %v2791_v37 = vand.u32 2147483647, %v5559_v29  ;;  %v880_v58 = vadd.s32 %v874_v39, %v870_v13 }
  0xf1   :  { %v791_v33 = vmul.f32 %v5601_v4, %v5601_v4  ;;  %4409 = vset.pattern.permute.xlu1 %v4746_v10  ;;  %v2793_v52 = vand.u32 2147483648, %v5559_v29  ;;  %4481 = vrcp.f32 %v5623_v25  ;;  %v2784_v15 = vsub.f32 1.0, %v2783_v22 }
  0xf2   :  { %3267 = vperm.xlu1 %4409, %v5292_v6   ;;  %4427 = vset.pattern.permute.xlu0 %v4743_v41  ;;  %vm2788_vm10 = vweird.f32 %v5621_v62  ;;  %v2813_v13 = vmul.f32 %v5626_v1, %v5562_v26  ;;  %v2823_v39 = vand.u32 2147483648, %v5562_v26  ;;  %v5654_v22 = vmul.u32 %v891_v35, %v5510_v23  ;;  %v5665_v34 = vpop.eup %4479 }
  0xf3   :  { %v792_v51 = vmul.f32 -0.001358992, %v791_v33  ;;  %v799_v16 = vmul.f32 -0.00019511016, %v791_v33  ;;  %4408 = vset.pattern.permute.xlu2 %v6848_v31  ;;  %3331 = vperm.xlu0 %4427, %v5376_v45   ;;  %vm809_vm11 = vcmp.eq.s32.totalorder %v5607_v61, 0  ;;  %v2785_v31 = vmul.f32 %v5621_v62, %v2784_v15  ;;  %vm5673_vm14 = vmor %vm2787_vm7, %vm2788_vm10 }
  0xf4   :  { %3215 = vperm.xlu2 %4408, %v5333_v59   ;;  %vm5659_vm15 = vcmp.eq.f32.partialorder %v2791_v37, 8.507059e+37  ;;  %v2794_v15 = vor.u32 1.1754944e-38, %v2793_v52  ;;  %v2814_v37 = vsub.f32 1.0, %v2813_v13  ;;  %vm806_vm3 = vweird.f32 %v4490_v57 }
  0xf5   :  { %v793_v56 = vadd.f32 0.041655596, %v792_v51  ;;  %v800_v43 = vadd.f32 0.008332121, %v799_v16  ;;  %v2786_v55 = vadd.f32 %v5621_v62, %v2785_v31  ;;  %vm5681_vm4 = vc.u32 %v880_v58, %v876_v14 }
  0xf6   :  { %v2828_v52 = vmul.f32 %v5665_v34, %v5612_v24  ;;  %v5692_v13 = vmul.u32 %v890_v36, %v5513_v11  ;;  %v2806_v14 = vand.u32 2147483647, %v5623_v25  ;;  %v2815_v36 = vmul.f32 %v5626_v1, %v2814_v37 }
  0xf7   :  { %v794_v51 = vmul.f32 %v793_v56, %v791_v33  ;;  %v801_v16 = vmul.f32 %v800_v43, %v791_v33  ;;  %v2821_v43 = vand.u32 2147483647, %v5562_v26  ;;  %v5685_v50 = vpop.eup %4481  ;;  %v2790_v31 = vsel %vm5673_vm14, %v5621_v62, %v2786_v55 }
  0xf8   :  { %vm2802_vm5 = vweird.f32 %v5623_v25  ;;  %v2808_v62 = vand.u32 2147483648, %v5623_v25  ;;  %vm2832_vm8 = vweird.f32 %v5612_v24  ;;  %vm2818_vm7 = vweird.f32 %v5626_v1 }
  0xf9   :  { %v795_v0 = vadd.f32 -0.4999988, %v794_v51  ;;  %v802_v8 = vadd.f32 -0.16666654, %v801_v16  ;;  %v5678_v51 = vor.u32 1.1754944e-38, %v2823_v39  ;;  %v881_v16 = vadd.s32 %v879_v32, %v5583_v60  ;;  %vm5742_vm6 = vmor %vm2817_vm0, %vm2818_vm7 }
  0xfa   :  { %v2798_v60 = vmul.f32 %v5685_v50, %v5623_v25  ;;  %v2795_v32 = vsel %vm5659_vm15, %v2794_v15, %v2790_v31  ;;  %4411 = vset.pattern.permute.xlu1 %v4743_v41  ;;  %vm5717_vm10 = vcmp.eq.f32.partialorder %v2821_v43, 8.507059e+37  ;;  %v2829_v56 = vsub.f32 1.0, %v2828_v52 }
  0xfb   :  { %v796_v29 = vmul.f32 %v795_v0, %v791_v33  ;;  %v803_v48 = vmul.f32 %v802_v8, %v791_v33  ;;  %v2836_v0 = vand.u32 2147483647, %v5612_v24  ;;  %v5707_v58 = vmul.f32 %v4361_v7, %v2795_v32  ;;  %3323 = vperm.xlu1 %4411, %v5292_v6   ;;  %4436 = vset.pattern.permute.xlu0 %v4745_v38 }
  0xfc   :  { %v2799_v55 = vsub.f32 1.0, %v2798_v60  ;;  %4410 = vset.pattern.permute.xlu2 %v4746_v10  ;;  %vm2803_vm15 = vweird.f32 %v5685_v50  ;;  %vm5723_vm14 = vcmp.eq.f32.partialorder %v2806_v14, 8.507059e+37  ;;  %v2816_v52 = vadd.f32 %v5626_v1, %v2815_v36 }
  0xfd   :  { %v797_v8 = vadd.f32 1.0, %v796_v29  ;;  %v804_v33 = vadd.f32 1.0, %v803_v48  ;;  %3171 = vperm.xlu0 %4436, %v5707_v58   ;;  %3271 = vperm.xlu2 %4410, %v5333_v59   ;;  %v2809_v60 = vor.u32 1.1754944e-38, %v2808_v62  ;;  %v2838_v53 = vand.u32 2147483648, %v5612_v24 }
  0xfe   :  { %v2800_v23 = vmul.f32 %v5685_v50, %v2799_v55  ;;  %v2830_v55 = vmul.f32 %v5665_v34, %v2829_v56  ;;  %v898_v28 = vshll.u32 %v5692_v13, 16  ;;  %v4747_v54 = vmov 7  }
  0xff   :  { %v805_v48 = vmul.f32 %v804_v33, %v5601_v4  ;;  %v813_v39 = vxor.u32 2147483648, %v797_v8  ;;  %v883_v4 = vsel %vm5681_vm4, 1, %v4734_v27  ;;  %v896_v33 = vshll.u32 %v5654_v22, 16 }
 0x100   :  { %v2801_v31 = vadd.f32 %v5685_v50, %v2800_v23  ;;  %v885_v62 = vadd.s32 %v883_v4, %v881_v16  ;;  %v2820_v16 = vsel %vm5742_vm6, %v5626_v1, %v2816_v52  ;;  %v5786_v57 = vadd.f32 %v5665_v34, %v2830_v55  ;;  %v5838_v52 = vld [vmem:[#allocation5 + $0x30] sm:$0xff] }
 0x101   :  { %v810_v43 = vxor.u32 2147483648, %v805_v48  ;;  %v2058_v37 = vsel %vm2056_vm9, %v813_v39, %v805_v48  ;;  %v814_v29 = vsel %vm812_vm13, %v813_v39, %v805_v48  ;;  %vm5756_vm9 = vmor %vm2802_vm5, %vm2803_vm15  ;;  %vm2833_vm13 = vweird.f32 %v5665_v34 }
 0x102   :  { %vm5805_vm6 = vmor %vm2832_vm8, %vm2833_vm13  ;;  %v897_v49 = vshrl.u32 %v5654_v22, 16  ;;  %vm6923_vm0 = vcmask 261120   ;;  %v6931_v26 = vmov 2102212464  }
 0x103   :  { %v2055_v32 = vsel %vm2053_vm12, %v797_v8, %v810_v43  ;;  %v811_v36 = vsel %vm809_vm11, %v797_v8, %v810_v43  ;;  %v895_v8 = vmul.u32 %v891_v35, %v5513_v11  ;;  %v2805_v11 = vsel %vm5756_vm9, %v5685_v50, %v2801_v31  ;;  %4414 = vset.pattern.permute.xlu1 %v4747_v54 }
 0x104   :  { %v2059_v48 = vsel %vm2052_vm1, %v2055_v32, %v2058_v37  ;;  %v815_v39 = vsel %vm808_vm2, %v811_v36, %v814_v29  ;;  %vm900_vm12 = vc.u32 %v5649_v63, %v896_v33  ;;  %3383 = vperm.xlu1 %4414, %v5333_v59   ;;  %v886_v35 = vadd.s32 %v885_v62, %v875_v18  ;;  %vm6924_vm1 = vmmov %vm6923_vm0 }
 0x105   :  { %v2060_v25 = vsel %vm806_vm3, nan, %v2059_v48  ;;  %v816_v23 = vsel %vm806_vm3, nan, %v815_v39  ;;  %v901_v42 = vsel %vm900_vm12, 1, %v4734_v27  ;;  %4437 = vset.pattern.permute.xlu0 %v4734_v27  ;;  %4413 = vset.pattern.permute.xlu2 %v4747_v54  ;;  %v981_v43 = vadd.s32 1, %v5586_v46 }
 0x106   :  { %v2684_v61 = vmul.f32 %v4342_v21, %v2060_v25  ;;  %v1436_v56 = vmul.f32 %v4342_v21, %v816_v23  ;;  %v902_v21 = vadd.s32 %v896_v33, %v5649_v63  ;;  %v903_v4 = vadd.s32 %v901_v42, %v895_v8  ;;  %2993 = vperm.xlu0 %4437, %v5333_v59  }
 0x107   :  { %v2810_v37 = vsel %vm5723_vm14, %v2809_v60, %v2805_v11  ;;  %3379 = vperm.xlu2 %4413, %v5292_v6   ;;  %v979_v46 = vor.u32 8388608, %v5590_v44  ;;  %v2825_v6 = vsel %vm5717_vm10, %v5678_v51, %v2820_v16  ;;  %vm5818_vm2 = vcmp.eq.f32.partialorder %v2836_v0, 8.507059e+37 }
 0x108   :  { %v2855_v1 = vpack.c.bf16 %v2684_v61, %v5605_v12  ;;  %v2851_v50 = vpack.c.bf16 %v1436_v56, %v5617_v19  ;;  %vm904_vm11 = vc.u32 %v902_v21, %v898_v28  ;;  %v2839_v12 = vor.u32 1.1754944e-38, %v2838_v53 }
 0x109   :  { %v905_v18 = vsel %vm904_vm11, 1, %v4734_v27  ;;  %vm982_vm3 = vcmp.gt.s32.totalorder %v981_v43, 0  ;;  %v5825_v44 = vadd.s32 %v886_v35, %v877_v20  ;;  %v899_v19 = vshrl.u32 %v5692_v13, 16 }
 0x10a   :  { %4244 = vmatmul.msk.bf16.gmra.mxu0 %vm6923_vm0, %v2855_v1  ;;  %4256 = vmatmul.msk.bf16.gmra.mxu1 %vm6924_vm1, %v2851_v50  ;;  %v907_v22 = vadd.s32 %v905_v18, %v903_v4  ;;  %v983_v15 = vsel %vm982_vm3, %v981_v43, 0  ;;  %v6927_v51 = vunpack.c.h.bf16 %v4843_v2  ;;  %v2835_v24 = vsel %vm5805_vm6, %v5665_v34, %v5786_v57 }
 0x10b   :  { %v5836_v0 = vadd.s32 %v902_v21, %v898_v28  ;;  %v985_v29 = vand.u32 31, %v983_v15  ;;  %v910_v20 = vmul.u32 %v5483_v3, %v5569_v9  ;;  %v5842_v13 = vshrl.u32 %v983_v15, 5 }
 0x10c   :  { %v5830_v7 = vmul.f32 %v6927_v51, %v2810_v37  ;;  %v908_v17 = vadd.s32 %v907_v22, %v897_v49  ;;  %v5844_v31 = vshll.u32 %v979_v46, 8  ;;  %v6928_v60 = vmov 683565275   ;;  %4416 = vset.pattern.permute.xlu1 %v4734_v27 }
 0x10d   :  { %v986_v2 = vsub.s32 32, %v985_v29  ;;  %v988_v14 = vshll.u32 %v6928_v60, %v985_v29  ;;  %v6929_v53 = vmov 2475754826   ;;  %v6930_v32 = vmov 2131351028   ;;  %3003 = vperm.xlu1 %4416, %v5499_v47  }
 0x10e   :  { %v991_v33 = vshll.u32 %v6929_v53, %v985_v29  ;;  %v994_v34 = vshll.u32 %v6930_v32, %v985_v29  ;;  %v909_v36 = vadd.s32 %v908_v17, %v899_v19  ;;  %v997_v55 = vshll.u32 %v6931_v26, %v985_v29  ;;  %3013 = vperm.xlu0 %4437, %v5830_v7  }
 0x10f   :  { %v6932_v62 = vmov 920167782   ;;  %v1128_v3 = vand.u32 2139095040, %v5838_v52  ;;  %vm912_vm4 = vc.u32 %v5825_v44, %v5836_v0  ;;  %v989_v9 = vshrl.u32 %v6929_v53, %v986_v2  ;;  %4415 = vset.pattern.permute.xlu2 %v4734_v27 }
 0x110   :  { %v1000_v48 = vshll.u32 %v6932_v62, %v985_v29  ;;  %v992_v39 = vshrl.u32 %v6930_v32, %v986_v2  ;;  %v995_v8 = vshrl.u32 %v6931_v26, %v986_v2  ;;  %v913_v25 = vadd.s32 1, %v909_v36  ;;  %2998 = vperm.xlu2 %4415, %v5376_v45  }
 0x111   :  { %v998_v23 = vshrl.u32 %v6932_v62, %v986_v2  ;;  %v6933_v16 = vmov 1326507024   ;;  %vm1003_vm5 = vcmp.lt.s32.totalorder %v5842_v13, 1  ;;  %v990_v61 = vor.u32 %v989_v9, %v988_v14 }
 0x112   :  { %v1001_v28 = vshrl.u32 %v6933_v16, %v986_v2  ;;  %v993_v56 = vor.u32 %v992_v39, %v991_v33  ;;  %v996_v11 = vor.u32 %v995_v8, %v994_v34  ;;  %vm1005_vm8 = vcmp.lt.s32.totalorder %v5842_v13, 3 }
 0x113   :  { %v914_v57 = vsel %vm912_vm4, %v913_v25, %v909_v36  ;;  %v999_v35 = vor.u32 %v998_v23, %v997_v55  ;;  %vm1006_vm7 = vcmp.lt.s32.totalorder %v5842_v13, 4  ;;  %v6934_v21 = vunpack.c.l.bf16 %v4882_v30 }
 0x114   :  { %v1002_v42 = vor.u32 %v1001_v28, %v1000_v48  ;;  %v915_v50 = vadd.s32 %v914_v57, %v910_v20  ;;  %vm1004_vm10 = vcmp.lt.s32.totalorder %v5842_v13, 2  ;;  %v2840_v4 = vsel %vm5818_vm2, %v2839_v12, %v2835_v24 }
 0x115   :  { %v5869_v1 = vmul.f32 %v6934_v21, %v2825_v6  ;;  %v1011_v43 = vsel %vm1003_vm5, %v990_v61, %v993_v56  ;;  %v1012_v37 = vsel %vm1006_vm7, %v999_v35, 920167782  ;;  %v1129_v63 = vshrl.u32 %v1128_v3, 23 }
 0x116   :  { %v916_v49 = vadd.s32 536870912, %v915_v50  ;;  %v1013_v46 = vsel %vm1005_vm8, %v996_v11, %v1012_v37  ;;  %v1015_v6 = vsel %vm1003_vm5, %v993_v56, %v996_v11  ;;  %v1020_v18 = vand.u32 65535, %v5844_v31 }
 0x117   :  { %v987_v19 = vshrl.u32 %v6928_v60, %v986_v2  ;;  %v1014_v59 = vsel %vm1004_vm10, %v1011_v43, %v1013_v46  ;;  %v1016_v12 = vsel %vm1006_vm7, %v1002_v42, 1326507024  ;;  %v1021_v22 = vshrl.u32 %v5844_v31, 16  ;;  %3018 = vperm.xlu0 %4437, %v5869_v1  }
 0x118   :  { %v5889_v15 = vshrl.u32 %v916_v49, 30  ;;  %v1017_v51 = vsel %vm1005_vm8, %v999_v35, %v1016_v12  ;;  %v1044_v24 = vand.u32 65535, %v1014_v59  ;;  %v1045_v29 = vshrl.u32 %v1014_v59, 16 }
 0x119   :  { %v6935_v17 = vmov 2   ;;  %v1008_v20 = vsel %vm1006_vm7, %v996_v11, 2102212464  ;;  %v1018_v2 = vsel %vm1004_vm10, %v1015_v6, %v1017_v51  ;;  %v4205_v14 = vadd.s32 4294967169, %v1129_v63 }
 0x11a   :  { %4419 = vset.pattern.permute.xlu1 %v6935_v17  ;;  %v6936_v33 = vunpack.c.h.bf16 %v4882_v30  ;;  %v918_v36 = vshll.u32 %v5889_v15, 30  ;;  %v1022_v55 = vand.u32 65535, %v1018_v2  ;;  %v1023_v48 = vshrl.u32 %v1018_v2, 16 }
 0x11b   :  { %3107 = vperm.xlu1 %4419, %v5376_v45   ;;  %v6937_v3 = vmov 1   ;;  %v911_v9 = vadd.s32 %v5836_v0, %v5825_v44  ;;  %v1007_v39 = vsel %vm1003_vm5, %v987_v19, %v990_v61  ;;  %v1047_v8 = vmul.u32 %v1045_v29, %v1020_v18 }
 0x11c   :  { %v5902_v34 = vmul.f32 %v6936_v33, %v2840_v4  ;;  %4418 = vset.pattern.permute.xlu2 %v6937_v3  ;;  %v1048_v25 = vmul.u32 %v1044_v24, %v1021_v22  ;;  %v5911_v23 = vsub.s32 %v915_v50, %v918_v36  ;;  %v1009_v30 = vsel %vm1005_vm8, %v993_v56, %v1008_v20 }
 0x11d   :  { %3055 = vperm.xlu2 %4418, %v5499_v47   ;;  %v1024_v28 = vmul.u32 %v1022_v55, %v1020_v18  ;;  %v1025_v11 = vmul.u32 %v1023_v48, %v1020_v18  ;;  %v1026_v57 = vmul.u32 %v1022_v55, %v1021_v22  ;;  %v1046_v35 = vmul.u32 %v1044_v24, %v1020_v18 }
 0x11e   :  { %v1050_v42 = vshll.u32 %v1047_v8, 16  ;;  %v1135_v21 = vadd.s32 1, %v4205_v14  ;;  %vm920_vm15 = vcmp.lt.s32.totalorder %v5911_v23, 0  ;;  %v921_v44 = vsub.s32 0, %v5911_v23 }
 0x11f   :  { %v1027_v0 = vmul.u32 %v1023_v48, %v1021_v22  ;;  %v1028_v61 = vshll.u32 %v1025_v11, 16  ;;  %v1029_v4 = vshrl.u32 %v1025_v11, 16  ;;  %v1030_v43 = vshll.u32 %v1026_v57, 16  ;;  %4450 = vset.pattern.permute.xlu0 %v6935_v17 }
 0x120   :  { %v1049_v37 = vmul.u32 %v1045_v29, %v1021_v22  ;;  %v1052_v50 = vshll.u32 %v1048_v25, 16  ;;  %v922_v63 = vsel %vm920_vm15, %v921_v44, %v5911_v23  ;;  %v1051_v49 = vshrl.u32 %v1047_v8, 16  ;;  %3127 = vperm.xlu0 %4450, %v5902_v34  }
 0x121   :  { %vm1032_vm14 = vc.u32 %v1024_v28, %v1028_v61  ;;  %v1034_v56 = vadd.s32 %v1028_v61, %v1024_v28  ;;  %v923_v46 = vclz %v922_v63  ;;  %vm1054_vm9 = vc.u32 %v1046_v35, %v1050_v42 }
 0x122   :  { %v1033_v6 = vsel %vm1032_vm14, 1, %v4734_v27  ;;  %v1056_v18 = vadd.s32 %v1050_v42, %v1046_v35  ;;  %v1055_v59 = vsel %vm1054_vm9, 1, %v4734_v27  ;;  %vm1136_vm12 = vcmp.gt.s32.totalorder %v1135_v21, 0 }
 0x123   :  { %4421 = vset.pattern.permute.xlu1 %v4745_v38  ;;  %v1035_v19 = vadd.s32 %v1033_v6, %v1027_v0  ;;  %vm1036_vm13 = vc.u32 %v1034_v56, %v1030_v43  ;;  %v4200_v12 = vadd.s32 4294967294, %v923_v46  ;;  %v1057_v51 = vadd.s32 %v1055_v59, %v1049_v37 }
 0x124   :  { %3163 = vperm.xlu1 %4421, %v5376_v45   ;;  %v1037_v22 = vsel %vm1036_vm13, 1, %v4734_v27  ;;  %vm1058_vm6 = vc.u32 %v1056_v18, %v1052_v50  ;;  %v1031_v24 = vshrl.u32 %v1026_v57, 16  ;;  %v1137_v2 = vsel %vm1136_vm12, %v1135_v21, 0 }
 0x125   :  { %4420 = vset.pattern.permute.xlu2 %v6935_v17  ;;  %v1039_v29 = vadd.s32 %v1037_v22, %v1035_v19  ;;  %v1059_v20 = vsel %vm1058_vm6, 1, %v4734_v27  ;;  %vm4201_vm11 = vcmp.lt.s32.totalorder %v4200_v12, 0  ;;  %v1010_v14 = vsel %vm1004_vm10, %v1007_v39, %v1009_v30 }
 0x126   :  { %3111 = vperm.xlu2 %4420, %v5499_v47   ;;  %v1053_v33 = vshrl.u32 %v1048_v25, 16  ;;  %v1061_v36 = vadd.s32 %v1059_v20, %v1057_v51  ;;  %v926_v55 = vsel %vm4201_vm11, 0, %v4200_v12  ;;  %v5930_v8 = vadd.s32 %v1056_v18, %v1052_v50 }
 0x127   :  { %v1040_v48 = vadd.s32 %v1039_v29, %v1029_v4  ;;  %v1139_v28 = vand.u32 31, %v1137_v2  ;;  %v927_v11 = vsub.s32 32, %v926_v55  ;;  %v928_v57 = vshll.u32 %v5911_v23, %v926_v55 }
 0x128   :  { %v931_v35 = vsub.s32 4294967266, %v926_v55  ;;  %v1062_v42 = vadd.s32 %v1061_v36, %v1051_v49  ;;  %v1125_v39 = vand.u32 2147483647, %v5838_v52  ;;  %v1064_v25 = vmul.u32 %v5844_v31, %v1010_v14  ;;  %4451 = vset.pattern.permute.xlu0 %v4746_v10 }
 0x129   :  { %v5933_v44 = vadd.s32 %v1040_v48, %v1031_v24  ;;  %v5935_v21 = vsub.s32 32, %v1139_v28  ;;  %v929_v0 = vshrl.u32 %v911_v9, %v927_v11  ;;  %v1145_v30 = vshll.u32 %v6929_v53, %v1139_v28  ;;  %3287 = vperm.xlu0 %4451, %v5830_v7  }
 0x12a   :  { %v932_v61 = vadd.s32 127, %v931_v35  ;;  %v1063_v13 = vadd.s32 %v1062_v42, %v1053_v33  ;;  %v1148_v23 = vshll.u32 %v6930_v32, %v1139_v28  ;;  %v6938_v4 = vmov 4  }
 0x12b   :  { %vm1066_vm0 = vc.u32 %v5933_v44, %v5930_v8  ;;  %v930_v43 = vor.u32 %v929_v0, %v928_v57  ;;  %v1146_v9 = vshrl.u32 %v6930_v32, %v5935_v21  ;;  %v6939_v31 = vand.u32 2147483647, %v5382_v5 }
 0x12c   :  { %4424 = vset.pattern.permute.xlu1 %v6938_v4  ;;  %v933_v37 = vshll.u32 %v932_v61, 23  ;;  %v1067_v50 = vadd.s32 1, %v1063_v13  ;;  %v5954_v56 = vshrl.u32 %v1137_v2, 5  ;;  %v1149_v49 = vshrl.u32 %v6931_v26, %v5935_v21  ;;  %v5974_v2 = vld [vmem:[#allocation5 + $0x20] sm:$0xff] }
 0x12d   :  { %3223 = vperm.xlu1 %4424, %v5499_v47   ;;  %vm5950_vm1 = vcmp.le.f32.partialorder %v6939_v31, 0.7853982  ;;  %v937_v6 = vcvt.s32.f32 %v930_v43  ;;  %v1132_v5 = vand.u32 8388607, %v1125_v39  ;;  %v1151_v59 = vshll.u32 %v6931_v26, %v1139_v28 }
 0x12e   :  { %v934_v46 = vor.u32 4788187, %v933_v37  ;;  %v1068_v18 = vsel %vm1066_vm0, %v1067_v50, %v1063_v13  ;;  %4423 = vset.pattern.permute.xlu2 %v6938_v4  ;;  %v1152_v12 = vshrl.u32 %v6932_v62, %v5935_v21  ;;  %v1154_v22 = vshll.u32 %v6932_v62, %v1139_v28 }
 0x12f   :  { %v1069_v19 = vadd.s32 %v1068_v18, %v1064_v25  ;;  %3219 = vperm.xlu2 %4423, %v5376_v45   ;;  %v5970_v24 = vor.u32 %v1146_v9, %v1145_v30  ;;  %v1150_v29 = vor.u32 %v1149_v49, %v1148_v23  ;;  %v1155_v20 = vshrl.u32 %v6933_v16, %v5935_v21  ;;  %v6017_v49 = vld [vmem:[#allocation2 + $0x10] sm:$0xff]  }
 0x130   :  { %v935_v51 = vand.u32 2147483647, %v934_v46  ;;  %vm819_vm2 = vcmp.lt.s32.totalorder %v5974_v2, 0  ;;  %vm1157_vm3 = vcmp.lt.s32.totalorder %v5954_v56, 1  ;;  %vm1160_vm4 = vcmp.lt.s32.totalorder %v5954_v56, 4 }
 0x131   :  { %v1070_v14 = vadd.s32 536870912, %v1069_v19  ;;  %v1133_v36 = vor.u32 8388608, %v1132_v5  ;;  %v1156_v55 = vor.u32 %v1155_v20, %v1154_v22  ;;  %vm1159_vm5 = vcmp.lt.s32.totalorder %v5954_v56, 3  ;;  %3291 = vperm.xlu0 %4451, %v5869_v1  }
 0x132   :  { %v938_v33 = vmul.f32 %v937_v6, %v935_v51  ;;  %v1142_v11 = vshll.u32 %v6928_v60, %v1139_v28  ;;  %v1143_v57 = vshrl.u32 %v6929_v53, %v5935_v21  ;;  %v1153_v35 = vor.u32 %v1152_v12, %v1151_v59 }
 0x133   :  { %v5980_v48 = vshrl.u32 %v1070_v14, 30  ;;  %vm1158_vm8 = vcmp.lt.s32.totalorder %v5954_v56, 2  ;;  %v1169_v0 = vsel %vm1157_vm3, %v5970_v24, %v1150_v29  ;;  %v1170_v61 = vsel %vm1160_vm4, %v1156_v55, 1326507024 }
 0x134   :  { %v939_v42 = vxor.u32 2147483648, %v938_v33  ;;  %v1171_v28 = vsel %vm1159_vm5, %v1153_v35, %v1170_v61  ;;  %v941_v30 = vsub.s32 4, %v5889_v15  ;;  %v6000_v23 = vshll.u32 %v1133_v36, 8 }
 0x135   :  { %4426 = vset.pattern.permute.xlu1 %v4746_v10  ;;  %v1072_v13 = vshll.u32 %v5980_v48, 30  ;;  %v1144_v50 = vor.u32 %v1143_v57, %v1142_v11  ;;  %v6011_v9 = vsel %vm1158_vm8, %v1169_v0, %v1171_v28  ;;  %v1166_v6 = vsel %vm1160_vm4, %v1153_v35, 920167782 }
 0x136   :  { %3279 = vperm.xlu1 %4426, %v5499_v47   ;;  %v940_v25 = vsel %vm819_vm2, %v939_v42, %v938_v33  ;;  %v1177_v59 = vshrl.u32 %v6011_v9, 16  ;;  %v942_v12 = vsel %vm819_vm2, %v941_v30, %v5889_v15  ;;  %v1167_v36 = vsel %vm1159_vm5, %v1150_v29, %v1166_v6 }
 0x137   :  { %v6005_v43 = vsel %vm5950_vm1, %v5974_v2, %v940_v25  ;;  %v6007_v37 = vsub.s32 %v1069_v19, %v1072_v13  ;;  %4425 = vset.pattern.permute.xlu2 %v4746_v10  ;;  %v6024_v19 = vand.u32 65535, %v6000_v23  ;;  %v1165_v51 = vsel %vm1157_vm3, %v1144_v50, %v5970_v24 }
 0x138   :  { %v945_v31 = vmul.f32 %v6005_v43, %v6005_v43  ;;  %3275 = vperm.xlu2 %4425, %v5376_v45   ;;  %v4345_v55 = vunpack.c.l.bf16 %v6017_v49  ;;  %v1141_v11 = vshrl.u32 %v6928_v60, %v5935_v21  ;;  %v1162_v15 = vsel %vm1160_vm4, %v1150_v29, 2102212464 }
 0x139   :  { %vm1074_vm7 = vcmp.lt.s32.totalorder %v6007_v37, 0  ;;  %v1075_v46 = vsub.s32 0, %v6007_v37  ;;  %v1176_v57 = vand.u32 65535, %v6011_v9  ;;  %4460 = vset.pattern.permute.xlu0 %v4747_v54  ;;  %v6045_v61 = vmul.u32 %v1177_v59, %v6024_v19 }
 0x13a   :  { %v946_v18 = vmul.f32 -0.001358992, %v945_v31  ;;  %v953_v5 = vmul.f32 -0.00019511016, %v945_v31  ;;  %3407 = vperm.xlu0 %4460, %v5902_v34   ;;  %v944_v21 = vsel %vm5950_vm1, 0, %v942_v12  ;;  %v1065_v29 = vadd.s32 %v5930_v8, %v5933_v44 }
 0x13b   :  { %v1076_v22 = vsel %vm1074_vm7, %v1075_v46, %v6007_v37  ;;  %v1095_v13 = vsub.s32 4, %v5980_v48  ;;  %v1168_v28 = vsel %vm1158_vm8, %v1165_v51, %v1167_v36  ;;  %v1175_v9 = vshrl.u32 %v6000_v23, 16 }
 0x13c   :  { %v947_v20 = vadd.f32 0.041655596, %v946_v18  ;;  %v954_v14 = vadd.f32 0.008332121, %v953_v5  ;;  %v1077_v33 = vclz %v1076_v22  ;;  %v1161_v63 = vsel %vm1157_vm3, %v1141_v11, %v1144_v50 }
 0x13d   :  { %v1163_v8 = vsel %vm1159_vm5, %v5970_v24, %v1162_v15  ;;  %v1178_v44 = vmul.u32 %v1176_v57, %v6024_v19  ;;  %v1182_v5 = vshll.u32 %v6045_v61, 16  ;;  %vm973_vm15 = vcmp.lt.s32.totalorder %v5472_v40, 0 }
 0x13e   :  { %4429 = vset.pattern.permute.xlu1 %v4747_v54  ;;  %v948_v35 = vmul.f32 %v947_v20, %v945_v31  ;;  %v955_v42 = vmul.f32 %v954_v14, %v945_v31  ;;  %v4203_v0 = vadd.s32 4294967294, %v1077_v33  ;;  %v1199_v51 = vshrl.u32 %v1168_v28, 16 }
 0x13f   :  { %3387 = vperm.xlu1 %4429, %v5376_v45   ;;  %v1096_v24 = vsel %vm973_vm15, %v1095_v13, %v5980_v48  ;;  %v2205_v20 = vadd.s32 3, %v944_v21  ;;  %v6071_v14 = vmul.u32 %v1176_v57, %v1175_v9  ;;  %v4346_v33 = vunpack.c.h.bf16 %v6017_v49 }
 0x140   :  { %v949_v25 = vadd.f32 -0.4999988, %v948_v35  ;;  %v956_v30 = vadd.f32 -0.16666654, %v955_v42  ;;  %vm4204_vm10 = vcmp.lt.s32.totalorder %v4203_v0, 0  ;;  %4428 = vset.pattern.permute.xlu2 %v4743_v41  ;;  %v6082_v11 = vsel %vm1158_vm8, %v1161_v63, %v1163_v8 }
 0x141   :  { %v1080_v45 = vsel %vm4204_vm10, 0, %v4203_v0  ;;  %3335 = vperm.xlu2 %4428, %v5499_v47   ;;  %v6942_v36 = vand.u32 2147483647, %v5472_v40  ;;  %vm1186_vm9 = vc.u32 %v1178_v44, %v1182_v5  ;;  %v1198_v48 = vand.u32 65535, %v1168_v28 }
 0x142   :  { %v957_v46 = vmul.f32 %v956_v30, %v945_v31  ;;  %v1081_v6 = vsub.s32 32, %v1080_v45  ;;  %v1082_v18 = vshll.u32 %v6007_v37, %v1080_v45  ;;  %v950_v12 = vmul.f32 %v949_v25, %v945_v31 }
 0x143   :  { %v1085_v22 = vsub.s32 4294967266, %v1080_v45  ;;  %vm6076_vm14 = vcmp.le.f32.partialorder %v6942_v36, 0.7853982  ;;  %v6095_v56 = vand.u32 3, %v2205_v20  ;;  %v1181_v13 = vmul.u32 %v1177_v59, %v1175_v9 }
 0x144   :  { %v1083_v50 = vshrl.u32 %v1065_v29, %v1081_v6  ;;  %v958_v15 = vadd.f32 1.0, %v957_v46  ;;  %v6085_v57 = vadd.f32 1.0, %v950_v12  ;;  %v6089_v0 = vsel %vm6076_vm14, 0, %v1096_v24 }
 0x145   :  { %v1086_v31 = vadd.s32 127, %v1085_v22  ;;  %v6092_v29 = vmul.u32 %v1199_v51, %v6024_v19  ;;  %v1184_v25 = vshll.u32 %v6071_v14, 16  ;;  %v1188_v28 = vadd.s32 %v1182_v5, %v1178_v44 }
 0x146   :  { %v1084_v35 = vor.u32 %v1083_v50, %v1082_v18  ;;  %v1185_v63 = vshrl.u32 %v6071_v14, 16  ;;  %v1187_v8 = vsel %vm1186_vm9, 1, %v4734_v27  ;;  %v959_v46 = vmul.f32 %v958_v15, %v6005_v43 }
 0x147   :  { %4431 = vset.pattern.permute.xlu1 %v4734_v27  ;;  %v1087_v42 = vshll.u32 %v1086_v31, 23  ;;  %v6102_v6 = vand.u32 3, %v944_v21  ;;  %v1183_v18 = vshrl.u32 %v6045_v61, 16  ;;  %v1202_v12 = vmul.u32 %v1198_v48, %v1175_v9  ;;  %v6114_v21 = vld [vmem:[#allocation5 + $0x38] sm:$0xff] }
 0x148   :  { %3008 = vperm.xlu1 %4431, %v5707_v58   ;;  %v1091_v45 = vcvt.s32.f32 %v1084_v35  ;;  %v967_v59 = vxor.u32 2147483648, %v6085_v57  ;;  %v1200_v5 = vmul.u32 %v1198_v48, %v6024_v19  ;;  %v1204_v22 = vshll.u32 %v6092_v29, 16 }
 0x149   :  { %v1088_v30 = vor.u32 4788187, %v1087_v42  ;;  %4430 = vset.pattern.permute.xlu2 %v4747_v54  ;;  %vm2211_vm13 = vcmp.eq.s32.totalorder %v6095_v56, 2  ;;  %v1189_v50 = vadd.s32 %v1187_v8, %v1181_v13  ;;  %vm1190_vm12 = vc.u32 %v1188_v28, %v1184_v25  ;;  %v6125_v13 = vld [vmem:[#allocation5 + $0x28] sm:$0xff] }
 0x14a   :  { %3391 = vperm.xlu2 %4430, %v5499_v47   ;;  %v1203_v24 = vmul.u32 %v1199_v51, %v1175_v9  ;;  %vm2207_vm6 = vcmp.lt.s32.totalorder %v6095_v56, 2  ;;  %vm2208_vm11 = vcmp.eq.s32.totalorder %v6095_v56, 0  ;;  %v2360_v61 = vadd.s32 3, %v6089_v0 }
 0x14b   :  { %v1089_v44 = vand.u32 2147483647, %v1088_v30  ;;  %v964_v47 = vxor.u32 2147483648, %v959_v46  ;;  %vm962_vm0 = vcmp.lt.s32.totalorder %v6102_v6, 2  ;;  %v1191_v19 = vsel %vm1190_vm12, 1, %v4734_v27 }
 0x14c   :  { %v1206_v20 = vshll.u32 %v1202_v12, 16  ;;  %v2213_v36 = vsel %vm2211_vm13, %v967_v59, %v959_v46  ;;  %v1193_v31 = vadd.s32 %v1191_v19, %v1189_v50  ;;  %vm1208_vm1 = vc.u32 %v1200_v5, %v1204_v22 }
 0x14d   :  { %v1092_v43 = vmul.f32 %v1091_v45, %v1089_v44  ;;  %vm963_vm2 = vcmp.eq.s32.totalorder %v6102_v6, 0  ;;  %vm966_vm3 = vcmp.eq.s32.totalorder %v6102_v6, 2  ;;  %v1209_v9 = vsel %vm1208_vm1, 1, %v4734_v27 }
 0x14e   :  { %v1210_v51 = vadd.s32 %v1204_v22, %v1200_v5  ;;  %v1194_v35 = vadd.s32 %v1193_v31, %v1183_v18  ;;  %v1211_v48 = vadd.s32 %v1209_v9, %v1203_v24  ;;  %v1282_v42 = vand.u32 2139095040, %v6114_v21 }
 0x14f   :  { %v1093_v14 = vxor.u32 2147483648, %v1092_v43  ;;  %v2210_v28 = vsel %vm2208_vm11, %v6085_v57, %v964_v47  ;;  %v1205_v30 = vshrl.u32 %v6092_v29, 16  ;;  %v965_v45 = vsel %vm963_vm2, %v6085_v57, %v964_v47 }
 0x150   :  { %4433 = vset.pattern.permute.xlu1 %v6937_v3  ;;  %vm1212_vm4 = vc.u32 %v1210_v51, %v1206_v20  ;;  %v1283_v8 = vshrl.u32 %v1282_v42, 23  ;;  %v968_v18 = vsel %vm966_vm3, %v967_v59, %v959_v46  ;;  %v1207_v44 = vshrl.u32 %v1202_v12, 16 }
 0x151   :  { %3063 = vperm.xlu1 %4433, %v5830_v7   ;;  %v1094_v15 = vsel %vm973_vm15, %v1093_v14, %v1092_v43  ;;  %v1213_v37 = vsel %vm1212_vm4, 1, %v4734_v27  ;;  %v1279_v5 = vand.u32 2147483647, %v6114_v21  ;;  %v6147_v24 = vadd.s32 %v1194_v35, %v1185_v63 }
 0x152   :  { %v6130_v25 = vsel %vm6076_vm14, %v6125_v13, %v1094_v15  ;;  %4432 = vset.pattern.permute.xlu2 %v6937_v3  ;;  %v1215_v29 = vadd.s32 %v1213_v37, %v1211_v48  ;;  %v6149_v43 = vadd.s32 %v1210_v51, %v1206_v20  ;;  %vm960_vm5 = vweird.f32 %v5974_v2 }
 0x153   :  { %v1099_v40 = vmul.f32 %v6130_v25, %v6130_v25  ;;  %3059 = vperm.xlu2 %4432, %v5707_v58   ;;  %v6152_v57 = vand.u32 3, %v2360_v61  ;;  %v4208_v19 = vadd.s32 4294967169, %v1283_v8  ;;  %v2214_v46 = vsel %vm2207_vm6, %v2210_v28, %v2213_v36 }
 0x154   :  { %v1216_v47 = vadd.s32 %v1215_v29, %v1205_v30  ;;  %v6157_v12 = vand.u32 3, %v6089_v0  ;;  %v969_v63 = vsel %vm962_vm0, %v965_v45, %v968_v18  ;;  %v1218_v20 = vmul.u32 %v6000_v23, %v6082_v11 }
 0x155   :  { %v1100_v22 = vmul.f32 -0.001358992, %v1099_v40  ;;  %v1107_v50 = vmul.f32 -0.00019511016, %v1099_v40  ;;  %v1289_v9 = vadd.s32 1, %v4208_v19  ;;  %vm1220_vm8 = vc.u32 %v6147_v24, %v6149_v43 }
 0x156   :  { %v1217_v59 = vadd.s32 %v1216_v47, %v1207_v44  ;;  %v1286_v56 = vand.u32 8388607, %v1279_v5  ;;  %vm2363_vm7 = vcmp.eq.s32.totalorder %v6152_v57, 0  ;;  %vm2366_vm10 = vcmp.eq.s32.totalorder %v6152_v57, 2 }
 0x157   :  { %v1101_v14 = vadd.f32 0.041655596, %v1100_v22  ;;  %v1108_v31 = vadd.f32 0.008332121, %v1107_v50  ;;  %vm1290_vm15 = vcmp.gt.s32.totalorder %v1289_v9, 0  ;;  %v2215_v6 = vsel %vm960_vm5, nan, %v2214_v46 }
 0x158   :  { %v1221_v0 = vadd.s32 1, %v1217_v59  ;;  %vm2362_vm14 = vcmp.lt.s32.totalorder %v6152_v57, 2  ;;  %v1291_v36 = vsel %vm1290_vm15, %v1289_v9, 0  ;;  %vm1114_vm9 = vweird.f32 %v6125_v13 }
 0x159   :  { %4435 = vset.pattern.permute.xlu1 %v6935_v17  ;;  %v1102_v61 = vmul.f32 %v1101_v14, %v1099_v40  ;;  %v1109_v51 = vmul.f32 %v1108_v31, %v1099_v40  ;;  %v970_v15 = vsel %vm960_vm5, nan, %v969_v63  ;;  %vm1116_vm13 = vcmp.lt.s32.totalorder %v6157_v12, 2 }
 0x15a   :  { %3119 = vperm.xlu1 %4435, %v5830_v7   ;;  %v1222_v35 = vsel %vm1220_vm8, %v1221_v0, %v1217_v59  ;;  %v1293_v48 = vand.u32 31, %v1291_v36  ;;  %v1287_v45 = vor.u32 8388608, %v1286_v56  ;;  %v2685_v37 = vmul.f32 %v4345_v55, %v2215_v6 }
 0x15b   :  { %v1103_v23 = vadd.f32 -0.4999988, %v1102_v61  ;;  %v1110_v11 = vadd.f32 -0.16666654, %v1109_v51  ;;  %4434 = vset.pattern.permute.xlu2 %v6935_v17  ;;  %v1223_v30 = vadd.s32 %v1222_v35, %v1218_v20  ;;  %vm1117_vm12 = vcmp.eq.s32.totalorder %v6157_v12, 0 }
 0x15c   :  { %3115 = vperm.xlu2 %4434, %v5707_v58   ;;  %vm1120_vm6 = vcmp.eq.s32.totalorder %v6157_v12, 2  ;;  %v6187_v2 = vsub.s32 32, %v1293_v48  ;;  %v1437_v44 = vmul.f32 %v4345_v55, %v970_v15  ;;  %v1296_v22 = vshll.u32 %v6928_v60, %v1293_v48 }
 0x15d   :  { %v1104_v42 = vmul.f32 %v1103_v23, %v1099_v40  ;;  %v1111_v28 = vmul.f32 %v1110_v11, %v1099_v40  ;;  %v1224_v29 = vadd.s32 536870912, %v1223_v30  ;;  %v1299_v50 = vshll.u32 %v6929_v53, %v1293_v48 }
 0x15e   :  { %v1297_v40 = vshrl.u32 %v6929_v53, %v6187_v2  ;;  %v1300_v47 = vshrl.u32 %v6930_v32, %v6187_v2  ;;  %v6200_v46 = vshll.u32 %v1287_v45, 8  ;;  %v6203_v55 = vshrl.u32 %v1291_v36, 5 }
 0x15f   :  { %v1105_v8 = vadd.f32 1.0, %v1104_v42  ;;  %v1112_v18 = vadd.f32 1.0, %v1111_v28  ;;  %v6198_v31 = vshrl.u32 %v1224_v29, 30  ;;  %v1302_v63 = vshll.u32 %v6930_v32, %v1293_v48 }
 0x160   :  { %v1305_v59 = vshll.u32 %v6931_v26, %v1293_v48  ;;  %v1306_v53 = vshrl.u32 %v6932_v62, %v6187_v2  ;;  %v6215_v51 = vor.u32 %v1297_v40, %v1296_v22  ;;  %v6217_v56 = vor.u32 %v1300_v47, %v1299_v50 }
 0x161   :  { %v1113_v19 = vmul.f32 %v1112_v18, %v6130_v25  ;;  %v1121_v14 = vxor.u32 2147483648, %v1105_v8  ;;  %v1226_v61 = vshll.u32 %v6198_v31, 30  ;;  %v1303_v32 = vshrl.u32 %v6931_v26, %v6187_v2 }
 0x162   :  { %4439 = vset.pattern.permute.xlu1 %v6938_v4  ;;  %v1308_v0 = vshll.u32 %v6932_v62, %v1293_v48  ;;  %v1309_v36 = vshrl.u32 %v6933_v16, %v6187_v2  ;;  %v1307_v15 = vor.u32 %v1306_v53, %v1305_v59  ;;  %vm1311_vm11 = vcmp.lt.s32.totalorder %v6203_v55, 1 }
 0x163   :  { %3227 = vperm.xlu1 %4439, %v5707_v58   ;;  %v1118_v20 = vxor.u32 2147483648, %v1113_v19  ;;  %v2368_v25 = vsel %vm2366_vm10, %v1121_v14, %v1113_v19  ;;  %v1122_v9 = vsel %vm1120_vm6, %v1121_v14, %v1113_v19  ;;  %v6227_v6 = vsub.s32 %v1223_v30, %v1226_v61 }
 0x164   :  { %4438 = vset.pattern.permute.xlu2 %v4745_v38  ;;  %v1304_v42 = vor.u32 %v1303_v32, %v1302_v63  ;;  %vm1312_vm1 = vcmp.lt.s32.totalorder %v6203_v55, 2  ;;  %v1310_v30 = vor.u32 %v1309_v36, %v1308_v0  ;;  %vm1313_vm2 = vcmp.lt.s32.totalorder %v6203_v55, 3 }
 0x165   :  { %v2365_v23 = vsel %vm2363_vm7, %v1105_v8, %v1118_v20  ;;  %v1119_v11 = vsel %vm1117_vm12, %v1105_v8, %v1118_v20  ;;  %3175 = vperm.xlu2 %4438, %v5830_v7   ;;  %vm1228_vm0 = vcmp.lt.s32.totalorder %v6227_v6, 0  ;;  %v1229_v16 = vsub.s32 0, %v6227_v6 }
 0x166   :  { %v2369_v26 = vsel %vm2362_vm14, %v2365_v23, %v2368_v25  ;;  %v1123_v62 = vsel %vm1116_vm13, %v1119_v11, %v1122_v9  ;;  %vm1314_vm3 = vcmp.lt.s32.totalorder %v6203_v55, 4  ;;  %v1319_v18 = vsel %vm1311_vm11, %v6215_v51, %v6217_v56 }
 0x167   :  { %v2370_v35 = vsel %vm1114_vm9, nan, %v2369_v26  ;;  %v1124_v48 = vsel %vm1114_vm9, nan, %v1123_v62  ;;  %v1230_v28 = vsel %vm1228_vm0, %v1229_v16, %v6227_v6  ;;  %v1320_v49 = vsel %vm1314_vm3, %v1307_v15, 920167782 }
 0x168   :  { %v2686_v57 = vmul.f32 %v4346_v33, %v2370_v35  ;;  %v1438_v12 = vmul.f32 %v4346_v33, %v1124_v48  ;;  %v1231_v8 = vclz %v1230_v28  ;;  %vm6945_vm4 = vcmask 261120  }
 0x169   :  { %vm6946_vm5 = vmmov %vm6945_vm4  ;;  %v1324_v22 = vsel %vm1314_vm3, %v1310_v30, 1326507024  ;;  %v1328_v40 = vand.u32 65535, %v6200_v46  ;;  %v1329_v50 = vshrl.u32 %v6200_v46, 16  ;;  %v1219_v47 = vadd.s32 %v6149_v43, %v6147_v24 }
 0x16a   :  { %v2856_v13 = vpack.c.bf16 %v2686_v57, %v2685_v37  ;;  %v2852_v45 = vpack.c.bf16 %v1438_v12, %v1437_v44  ;;  %v4206_v33 = vadd.s32 4294967294, %v1231_v8  ;;  %v1321_v37 = vsel %vm1313_vm2, %v1304_v42, %v1320_v49 }
 0x16b   :  { %4441 = vset.pattern.permute.xlu1 %v4746_v10  ;;  %v1323_v44 = vsel %vm1311_vm11, %v6217_v56, %v1304_v42  ;;  %v1322_v29 = vsel %vm1312_vm1, %v1319_v18, %v1321_v37  ;;  %v1325_v19 = vsel %vm1313_vm2, %v1307_v15, %v1324_v22  ;;  %v1295_v9 = vshrl.u32 %v6928_v60, %v6187_v2 }
 0x16c   :  { %3283 = vperm.xlu1 %4441, %v5707_v58   ;;  %4245 = vmatmul.msk.bf16.gmra.mxu0 %vm6945_vm4, %v2856_v13  ;;  %vm4207_vm8 = vcmp.lt.s32.totalorder %v4206_v33, 0  ;;  %v1352_v14 = vand.u32 65535, %v1322_v29  ;;  %v1326_v59 = vsel %vm1312_vm1, %v1323_v44, %v1325_v19  ;;  %v1353_v53 = vshrl.u32 %v1322_v29, 16 }
 0x16d   :  { %4257 = vmatmul.msk.bf16.gmra.mxu1 %vm6946_vm5, %v2852_v45  ;;  %4440 = vset.pattern.permute.xlu2 %v6938_v4  ;;  %v1234_v63 = vsel %vm4207_vm8, 0, %v4206_v33  ;;  %v1330_v61 = vand.u32 65535, %v1326_v59  ;;  %v1331_v43 = vshrl.u32 %v1326_v59, 16  ;;  %v1316_v16 = vsel %vm1314_vm3, %v1304_v42, 2102212464 }
 0x16e   :  { %3231 = vperm.xlu2 %4440, %v5830_v7   ;;  %v1235_v20 = vsub.s32 32, %v1234_v63  ;;  %v1239_v25 = vsub.s32 4294967266, %v1234_v63  ;;  %v1236_v24 = vshll.u32 %v6227_v6, %v1234_v63  ;;  %v1355_v32 = vmul.u32 %v1353_v53, %v1328_v40 }
 0x16f   :  { %v1356_v0 = vmul.u32 %v1352_v14, %v1329_v50  ;;  %v1334_v36 = vmul.u32 %v1330_v61, %v1329_v50  ;;  %v1354_v26 = vmul.u32 %v1352_v14, %v1328_v40  ;;  %v1332_v62 = vmul.u32 %v1330_v61, %v1328_v40 }
 0x170   :  { %v1237_v23 = vshrl.u32 %v1219_v47, %v1235_v20  ;;  %v1240_v11 = vadd.s32 127, %v1239_v25  ;;  %v1333_v15 = vmul.u32 %v1331_v43, %v1328_v40  ;;  %v1358_v35 = vshll.u32 %v1355_v32, 16 }
 0x171   :  { %v1357_v60 = vmul.u32 %v1353_v53, %v1329_v50  ;;  %v1335_v2 = vmul.u32 %v1331_v43, %v1329_v50  ;;  %v1338_v57 = vshll.u32 %v1334_v36, 16  ;;  %v1360_v12 = vshll.u32 %v1356_v0, 16 }
 0x172   :  { %v1241_v48 = vshll.u32 %v1240_v11, 23  ;;  %v1336_v6 = vshll.u32 %v1333_v15, 16  ;;  %v1238_v28 = vor.u32 %v1237_v23, %v1236_v24  ;;  %v1315_v13 = vsel %vm1311_vm11, %v1295_v9, %v6215_v51 }
 0x173   :  { %vm1362_vm7 = vc.u32 %v1354_v26, %v1358_v35  ;;  %v1364_v8 = vadd.s32 %v1358_v35, %v1354_v26  ;;  %v1317_v18 = vsel %vm1313_vm2, %v6217_v56, %v1316_v16  ;;  %v1337_v49 = vshrl.u32 %v1333_v15, 16 }
 0x174   :  { %4443 = vset.pattern.permute.xlu1 %v4743_v41  ;;  %v1242_v30 = vor.u32 4788187, %v1241_v48  ;;  %vm1340_vm10 = vc.u32 %v1332_v62, %v1336_v6  ;;  %v1342_v45 = vadd.s32 %v1336_v6, %v1332_v62  ;;  %v1363_v42 = vsel %vm1362_vm7, 1, %v4734_v27 }
 0x175   :  { %3343 = vperm.xlu1 %4443, %v5830_v7   ;;  %v1341_v33 = vsel %vm1340_vm10, 1, %v4734_v27  ;;  %v1365_v37 = vadd.s32 %v1363_v42, %v1357_v60  ;;  %v1359_v51 = vshrl.u32 %v1355_v32, 16  ;;  %vm1366_vm14 = vc.u32 %v1364_v8, %v1360_v12 }
 0x176   :  { %4442 = vset.pattern.permute.xlu2 %v4743_v41  ;;  %v1343_v44 = vadd.s32 %v1341_v33, %v1335_v2  ;;  %vm1344_vm15 = vc.u32 %v1342_v45, %v1338_v57  ;;  %v1243_v29 = vand.u32 2147483647, %v1242_v30  ;;  %v1245_v22 = vcvt.s32.f32 %v1238_v28 }
 0x177   :  { %3339 = vperm.xlu2 %4442, %v5707_v58   ;;  %v1345_v40 = vsel %vm1344_vm15, 1, %v4734_v27  ;;  %v1367_v50 = vsel %vm1366_vm14, 1, %v4734_v27  ;;  %v1339_v47 = vshrl.u32 %v1334_v36, 16  ;;  %v1361_v14 = vshrl.u32 %v1356_v0, 16 }
 0x178   :  { %v1347_v19 = vadd.s32 %v1345_v40, %v1343_v44  ;;  %v1369_v63 = vadd.s32 %v1367_v50, %v1365_v37  ;;  %v1318_v56 = vsel %vm1312_vm1, %v1315_v13, %v1317_v18  ;;  %v1368_v53 = vadd.s32 %v1364_v8, %v1360_v12  ;;  %v6335_v50 = vpop.permute.xlu2 %2988 }
 0x179   :  { %v1246_v25 = vmul.f32 %v1245_v22, %v1243_v29  ;;  %v1372_v24 = vmul.u32 %v6200_v46, %v1318_v56  ;;  %vm1127_vm13 = vcmp.lt.s32.totalorder %v5838_v52, 0  ;;  %vm6310_vm12 = vcmp.le.f32.partialorder %v1125_v39, 0.7853982 }
 0x17a   :  { %v1348_v59 = vadd.s32 %v1347_v19, %v1337_v49  ;;  %v1370_v20 = vadd.s32 %v1369_v63, %v1359_v51  ;;  %vm1281_vm0 = vcmp.lt.s32.totalorder %v6114_v21, 0  ;;  %v6341_v19 = vpop.permute.xlu0 %3211  ;;  %vm1280_vm1 = vcmp.le.f32.partialorder %v1279_v5, 0.7853982 }
 0x17b   :  { %v1247_v32 = vxor.u32 2147483648, %v1246_v25 }
 0x17c   :  { %v1349_v9 = vadd.s32 %v1348_v59, %v1339_v47  ;;  %v1371_v61 = vadd.s32 %v1370_v20, %v1361_v14 }
 0x17d   :  { %4445 = vset.pattern.permute.xlu1 %v4747_v54  ;;  %v1248_v46 = vsel %vm1127_vm13, %v1247_v32, %v1246_v25 }
 0x17e   :  { %3399 = vperm.xlu1 %4445, %v5830_v7   ;;  %vm1374_vm9 = vc.u32 %v1349_v9, %v1368_v53  ;;  %v1375_v43 = vadd.s32 1, %v1371_v61  ;;  %v1251_v11 = vsel %vm6310_vm12, %v5838_v52, %v1248_v46  ;;  %v1373_v2 = vadd.s32 %v1368_v53, %v1349_v9 }
 0x17f   :  { %4444 = vset.pattern.permute.xlu2 %v4747_v54  ;;  %v1253_v39 = vmul.f32 %v1251_v11, %v1251_v11 }
 0x180   :  { %3395 = vperm.xlu2 %4444, %v5707_v58   ;;  %v1376_v55 = vsel %vm1374_vm9, %v1375_v43, %v1371_v61  ;;  %v6348_v5 = vpop.permute.xlu2 %3047 }
 0x181   :  { %v1377_v0 = vadd.s32 %v1376_v55, %v1372_v24  ;;  %v1261_v15 = vmul.f32 -0.00019511016, %v1253_v39  ;;  %v1254_v16 = vmul.f32 -0.001358992, %v1253_v39  ;;  %v6351_v55 = vpop.permute.xlu1 %3043 }
 0x183   :  { %v1378_v23 = vadd.s32 536870912, %v1377_v0  ;;  %v1262_v60 = vadd.f32 0.008332121, %v1261_v15 }
 0x185   :  { %v1379_v58 = vshrl.u32 %v1378_v23, 30  ;;  %v1263_v30 = vmul.f32 %v1262_v60, %v1253_v39 }
 0x186   :  { %4447 = vset.pattern.permute.xlu1 %v6937_v3 }
 0x187   :  { %3067 = vperm.xlu1 %4447, %v5869_v1   ;;  %v1380_v36 = vshll.u32 %v1379_v58, 30  ;;  %v1264_v49 = vadd.f32 -0.16666654, %v1263_v30  ;;  %v1403_v40 = vsub.s32 4, %v1379_v58 }
 0x188   :  { %4446 = vset.pattern.permute.xlu2 %v4734_v27 }
 0x189   :  { %3023 = vperm.xlu2 %4446, %v5902_v34   ;;  %v1381_v26 = vsub.s32 %v1377_v0, %v1380_v36  ;;  %v1265_v22 = vmul.f32 %v1264_v49, %v1253_v39  ;;  %v1404_v56 = vsel %vm1281_vm0, %v1403_v40, %v1379_v58  ;;  %v6353_v0 = vpop.permute.xlu0 %3327 }
 0x18a   :  { %v1406_v61 = vsel %vm1280_vm1, 0, %v1404_v56 }
 0x18b   :  { %vm1382_vm6 = vcmp.lt.s32.totalorder %v1381_v26, 0  ;;  %v1383_v62 = vsub.s32 0, %v1381_v26  ;;  %v1266_v14 = vadd.f32 1.0, %v1265_v22  ;;  %v2670_v23 = vadd.s32 3, %v1406_v61 }
 0x18d   :  { %v1384_v35 = vsel %vm1382_vm6, %v1383_v62, %v1381_v26  ;;  %v1267_v9 = vmul.f32 %v1266_v14, %v1251_v11  ;;  %v2671_v15 = vand.u32 3, %v2670_v23 }
 0x18e   :  { %v1385_v48 = vclz %v1384_v35  ;;  %v1423_v35 = vand.u32 3, %v1406_v61 }
 0x18f   :  { %4449 = vset.pattern.permute.xlu1 %v6935_v17  ;;  %v1255_v17 = vadd.f32 0.041655596, %v1254_v16  ;;  %v1272_v58 = vxor.u32 2147483648, %v1267_v9  ;;  %vm2676_vm15 = vcmp.eq.s32.totalorder %v2671_v15, 2  ;;  %vm2672_vm9 = vcmp.lt.s32.totalorder %v2671_v15, 2 }
 0x190   :  { %3123 = vperm.xlu1 %4449, %v5869_v1   ;;  %v4209_v27 = vadd.s32 4294967294, %v1385_v48  ;;  %vm1428_vm14 = vcmp.eq.s32.totalorder %v1423_v35, 2  ;;  %vm1425_vm6 = vcmp.eq.s32.totalorder %v1423_v35, 0 }
 0x191   :  { %4448 = vset.pattern.permute.xlu2 %v6937_v3  ;;  %v1249_v3 = vsub.s32 4, %v6198_v31  ;;  %v1256_v18 = vmul.f32 %v1255_v17, %v1253_v39 }
 0x192   :  { %3071 = vperm.xlu2 %4448, %v5902_v34   ;;  %vm4210_vm11 = vcmp.lt.s32.totalorder %v4209_v27, 0 }
 0x193   :  { %v1388_v6 = vsel %vm4210_vm11, 0, %v4209_v27  ;;  %v1250_v44 = vsel %vm1127_vm13, %v1249_v3, %v6198_v31  ;;  %v1257_v29 = vadd.f32 -0.4999988, %v1256_v18  ;;  %v6366_v3 = vpop.permute.xlu1 %3103  ;;  %vm2673_vm13 = vcmp.eq.s32.totalorder %v2671_v15, 0 }
 0x194   :  { %v1389_v57 = vsub.s32 32, %v1388_v6  ;;  %v1390_v12 = vshll.u32 %v1381_v26, %v1388_v6  ;;  %v1393_v28 = vsub.s32 4294967266, %v1388_v6  ;;  %v1252_v47 = vsel %vm6310_vm12, 0, %v1250_v44  ;;  %v6358_v6 = vpop.permute.xlu2 %3099 }
 0x195   :  { %v1258_v31 = vmul.f32 %v1257_v29, %v1253_v39  ;;  %v2515_v59 = vadd.s32 3, %v1252_v47  ;;  %vm1424_vm12 = vcmp.lt.s32.totalorder %v1423_v35, 2  ;;  %vm1422_vm11 = vweird.f32 %v6114_v21  ;;  %v2954_v29 = vpop.f32.mrf.mxu1 }
 0x196   :  { %v1391_v13 = vshrl.u32 %v1373_v2, %v1389_v57  ;;  %v1394_v45 = vadd.s32 127, %v1393_v28  ;;  %v4369_v57 = vld [vmem:[#allocation2 + $0x18] sm:$0xff]   ;;  %v4493_v28 = vld [vmem:[#allocation5 + $0x30] sm:$0xff] }
 0x197   :  { %v1259_v25 = vadd.f32 1.0, %v1258_v31  ;;  %v2516_v32 = vand.u32 3, %v2515_v59  ;;  %vm1268_vm10 = vweird.f32 %v4493_v28  ;;  %v4350_v44 = vunpack.c.h.bf16 %v4369_v57  ;;  %v6378_v59 = vld [vmem:[#allocation10] ss:$0 sm:$0xff] }
 0x198   :  { %4453 = vset.pattern.permute.xlu1 %v4745_v38  ;;  %v1392_v42 = vor.u32 %v1391_v13, %v1390_v12  ;;  %v1395_v8 = vshll.u32 %v1394_v45, 23  ;;  %v6360_v12 = vpop.permute.xlu0 %3051 }
 0x199   :  { %3183 = vperm.xlu1 %4453, %v5902_v34   ;;  %v1275_v11 = vxor.u32 2147483648, %v1259_v25  ;;  %vm2518_vm2 = vcmp.eq.s32.totalorder %v2516_v32, 0  ;;  %vm2521_vm3 = vcmp.eq.s32.totalorder %v2516_v32, 2  ;;  %vm2517_vm8 = vcmp.lt.s32.totalorder %v2516_v32, 2 }
 0x19a   :  { %4452 = vset.pattern.permute.xlu2 %v4745_v38  ;;  %v1396_v33 = vor.u32 4788187, %v1395_v8  ;;  %v1399_v37 = vcvt.s32.f32 %v1392_v42  ;;  %v2520_v48 = vsel %vm2518_vm2, %v1259_v25, %v1272_v58  ;;  %v4349_v42 = vunpack.c.l.bf16 %v4369_v57 }
 0x19b   :  { %3179 = vperm.xlu2 %4452, %v5869_v1   ;;  %v2523_v27 = vsel %vm2521_vm3, %v1275_v11, %v1267_v9 }
 0x19c   :  { %v1397_v51 = vand.u32 2147483647, %v1396_v33  ;;  %v2524_v13 = vsel %vm2517_vm8, %v2520_v48, %v2523_v27  ;;  %v6374_v31 = vpop.permute.xlu2 %3155 }
 0x19e   :  { %v1400_v38 = vmul.f32 %v1399_v37, %v1397_v51  ;;  %v2901_v51 = vpop.f32.mrf.mxu0 }
 0x19f   :  { %v2955_v56 = vadd.f32 %v2954_v29, %v2901_v51  ;;  %v4325_v51 = vld [vmem:[#allocation11 + $0x10] sm:$0xff]  ;;  %v4323_v29 = vld [vmem:[#allocation11] sm:$0xff] }
 0x1a0   :  { %v1401_v52 = vxor.u32 2147483648, %v1400_v38 }
 0x1a1   :  { %4455 = vset.pattern.permute.xlu1 %v6938_v4  ;;  %v2978_v61 = vadd.f32 %v6378_v59, %v2955_v56 }
 0x1a2   :  { %3239 = vperm.xlu1 %4455, %v5902_v34   ;;  %v1402_v63 = vsel %vm1281_vm0, %v1401_v52, %v1400_v38  ;;  %vm6950_vm0 = vcmask 261120  }
 0x1a3   :  { %4454 = vset.pattern.permute.xlu2 %v6938_v4  ;;  %v1405_v53 = vsel %vm1280_vm1, %v6114_v21, %v1402_v63  ;;  %v1269_v4 = vand.u32 3, %v1252_v47  ;;  %vm6951_vm1 = vmmov %vm6950_vm0  ;;  %v3026_v32 = vperm.slane %v2978_v61, 0  ;;  %v3298_v57 = vperm.slane %v2978_v61, 5 }
 0x1a4   :  { %3235 = vperm.xlu2 %4454, %v5869_v1   ;;  %v1407_v20 = vmul.f32 %v1405_v53, %v1405_v53  ;;  %vm6954_vm2 = vmmov %vm6950_vm0 }
 0x1a5   :  { %vm1271_vm4 = vcmp.eq.s32.totalorder %v1269_v4, 0  ;;  %vm1274_vm5 = vcmp.eq.s32.totalorder %v1269_v4, 2  ;;  %vm1270_vm7 = vcmp.lt.s32.totalorder %v1269_v4, 2  ;;  %vm6955_vm3 = vmmov %vm6950_vm0 }
 0x1a6   :  { %v1408_v24 = vmul.f32 -0.001358992, %v1407_v20  ;;  %v1415_v43 = vmul.f32 -0.00019511016, %v1407_v20  ;;  %v1273_v2 = vsel %vm1271_vm4, %v1259_v25, %v1272_v58  ;;  %v2903_v4 = vpop.f32.mrf.mxu0  ;;  %v3034_v58 = vmul.f32 %v3026_v32, %v6335_v50  ;;  %vm6961_vm4 = vmmov %vm6950_vm0 }
 0x1a7   :  { %vm6974_vm8 = vmmov %vm6950_vm0 }
 0x1a8   :  { %v1409_v7 = vadd.f32 0.041655596, %v1408_v24  ;;  %v1416_v46 = vadd.f32 0.008332121, %v1415_v43  ;;  %v3074_v24 = vperm.slane %v2978_v61, 1 }
 0x1aa   :  { %4457 = vset.pattern.permute.xlu1 %v4743_v41  ;;  %v1410_v36 = vmul.f32 %v1409_v7, %v1407_v20  ;;  %v1417_v39 = vmul.f32 %v1416_v46, %v1407_v20  ;;  %v2956_v7 = vpop.f32.mrf.mxu1  ;;  %v6387_v46 = vpop.permute.xlu2 %3215  ;;  %v3082_v23 = vmul.f32 %v3074_v24, %v6351_v55 }
 0x1ab   :  { %3347 = vperm.xlu1 %4457, %v5869_v1  }
 0x1ac   :  { %4456 = vset.pattern.permute.xlu2 %v4746_v10  ;;  %v1411_v26 = vadd.f32 -0.4999988, %v1410_v36  ;;  %v1418_v62 = vadd.f32 -0.16666654, %v1417_v39  ;;  %v1276_v10 = vsel %vm1274_vm5, %v1275_v11, %v1267_v9  ;;  %v6380_v9 = vpop.permute.xlu1 %3159  ;;  %v2957_v11 = vadd.f32 %v2956_v7, %v2903_v4  ;;  %vm6962_vm5 = vmmov %vm6950_vm0 }
 0x1ad   :  { %3295 = vperm.xlu2 %4456, %v5902_v34   ;;  %v1277_v45 = vsel %vm1270_vm7, %v1273_v2, %v1276_v10  ;;  %v3130_v36 = vperm.slane %v2978_v61, 2  ;;  %vm6975_vm7 = vmmov %vm6950_vm0 }
 0x1ae   :  { %v1412_v16 = vmul.f32 %v1411_v26, %v1407_v20  ;;  %v1419_v60 = vmul.f32 %v1418_v62, %v1407_v20  ;;  %v1278_v33 = vsel %vm1268_vm10, nan, %v1277_v45  ;;  %v3090_v26 = vadd.f32 %v3082_v23, %v3034_v58 }
 0x1af   :  { %v1439_v52 = vmul.f32 %v4349_v42, %v1278_v33  ;;  %v3186_v62 = vperm.slane %v2978_v61, 3  ;;  %v2979_v35 = vadd.f32 %v6378_v59, %v2957_v11  ;;  %v3138_v48 = vmul.f32 %v3130_v36, %v6358_v6 }
 0x1b0   :  { %v1413_v17 = vadd.f32 1.0, %v1412_v16  ;;  %v1420_v30 = vadd.f32 1.0, %v1419_v60  ;;  %v3242_v60 = vperm.slane %v2978_v61, 4 }
 0x1b1   :  { %v3146_v27 = vadd.f32 %v3138_v48, %v3090_v26  ;;  %v3194_v16 = vmul.f32 %v3186_v62, %v6374_v31  ;;  %v3075_v10 = vperm.slane %v2979_v35, 1  ;;  %v3027_v28 = vperm.slane %v2979_v35, 0  ;;  %v6422_v26 = vld [vmem:[%s6836_s5 + $0x1] ss:$0 sm:$0xff]  ;;  %v6427_v62 = vld [vmem:[%s6836_s5] ss:$0 sm:$0xff] }
 0x1b2   :  { %v1421_v8 = vmul.f32 %v1420_v30, %v1405_v53  ;;  %v1429_v18 = vxor.u32 2147483648, %v1413_v17  ;;  %v6398_v2 = vpop.permute.xlu2 %3271  ;;  %v3131_v30 = vperm.slane %v2979_v35, 2  ;;  %v3250_v45 = vmul.f32 %v3242_v60, %v6341_v19 }
 0x1b3   :  { %4459 = vset.pattern.permute.xlu1 %v4747_v54  ;;  %v2525_v54 = vsel %vm1268_vm10, nan, %v2524_v13  ;;  %v3354_v13 = vperm.slane %v2978_v61, 6  ;;  %v3411_v7 = vperm.slane %v2979_v35, 7  ;;  %vm6979_vm10 = vmmov %vm6950_vm0 }
 0x1b4   :  { %3403 = vperm.xlu1 %4459, %v5869_v1   ;;  %v1426_v1 = vxor.u32 2147483648, %v1421_v8  ;;  %v2678_v49 = vsel %vm2676_vm15, %v1429_v18, %v1421_v8  ;;  %v1430_v37 = vsel %vm1428_vm14, %v1429_v18, %v1421_v8  ;;  %v2687_v40 = vmul.f32 %v4349_v42, %v2525_v54  ;;  %v6391_v39 = vpop.permute.xlu1 %3267  ;;  %v4326_v18 = vld [vmem:[#allocation11 + $0x18] sm:$0xff]  ;;  %v4324_v54 = vld [vmem:[#allocation11 + $0x8] sm:$0xff]  ;;  %vm6980_vm15 = vmmov %vm6950_vm0 }
 0x1b5   :  { %4458 = vset.pattern.permute.xlu2 %v4743_v41  ;;  %v3306_v33 = vmul.f32 %v3298_v57, %v6391_v39  ;;  %3517 = vmatpush.bf16.msra.mxu2 %v4326_v18  ;;  %vm6981_vm14 = vmmov %vm6950_vm0 }
 0x1b6   :  { %3351 = vperm.xlu2 %4458, %v5902_v34   ;;  %v2675_v22 = vsel %vm2673_vm13, %v1413_v17, %v1426_v1  ;;  %v1427_v38 = vsel %vm1425_vm6, %v1413_v17, %v1426_v1  ;;  %v6376_v34 = vpop.permute.xlu0 %3167  ;;  %v3202_v17 = vadd.f32 %v3194_v16, %v3146_v27  ;;  %v3083_v1 = vmul.f32 %v3075_v10, %v6348_v5  ;;  %vm6983_vm13 = vmmov %vm6950_vm0 }
 0x1b7   :  { %v2679_v41 = vsel %vm2672_vm9, %v2675_v22, %v2678_v49  ;;  %v1431_v47 = vsel %vm1424_vm12, %v1427_v38, %v1430_v37  ;;  %6949 = vst [vmem:[#allocation23_spill] sm:$0xff] %v6376_v34  ;;  %v3187_v49 = vperm.slane %v2979_v35, 3  ;;  %3570 = vmatpush.bf16.msra.mxu3 %v4324_v54  ;;  %v3139_v22 = vmul.f32 %v3131_v30, %v6366_v3  ;;  %vm6982_vm9 = vmmov %vm6950_vm0 }
 0x1b8   :  { %v2680_v14 = vsel %vm1422_vm11, nan, %v2679_v41  ;;  %v1432_v63 = vsel %vm1422_vm11, nan, %v1431_v47  ;;  %v3258_v38 = vadd.f32 %v3250_v45, %v3202_v17  ;;  %v3299_v47 = vperm.slane %v2979_v35, 5  ;;  %vm6986_vm12 = vmmov %vm6950_vm0 }
 0x1b9   :  { %v2688_v53 = vmul.f32 %v4350_v44, %v2680_v14  ;;  %v1440_v21 = vmul.f32 %v4350_v44, %v1432_v63  ;;  %v3243_v44 = vperm.slane %v2979_v35, 4  ;;  %v3410_v63 = vperm.slane %v2978_v61, 7  ;;  %3518 = vmatpush.bf16.msra.mxu2 %v4325_v51  ;;  %vm6997_vm6 = vmmov %vm6950_vm0 }
 0x1ba   :  { %v3314_v14 = vadd.f32 %v3306_v33, %v3258_v38  ;;  %v3307_v32 = vmul.f32 %v3299_v47, %v6398_v2  ;;  %vm7000_vm11 = vmmov %vm6950_vm0 }
 0x1bb   :  { %v2857_v20 = vpack.c.bf16 %v2688_v53, %v2687_v40  ;;  %v2853_v25 = vpack.c.bf16 %v1440_v21, %v1439_v52  ;;  %v3195_v52 = vmul.f32 %v3187_v49, %v6380_v9  ;;  %v6411_v53 = vpop.permute.xlu2 %3379  ;;  %3571 = vmatpush.bf16.msra.mxu3 %v4323_v29  ;;  %v3355_v21 = vperm.slane %v2979_v35, 6 }
 0x1bc   :  { %v6401_v42 = vpop.permute.xlu1 %3323  ;;  %v3418_v4 = vmul.f32 %v3410_v63, %v6411_v53 }
 0x1bd   :  { %4246 = vmatmul.msk.bf16.gmra.mxu0 %vm6950_vm0, %v2857_v20  ;;  %4258 = vmatmul.msk.bf16.gmra.mxu1 %vm6951_vm1, %v2853_v25  ;;  %v3362_v41 = vmul.f32 %v3354_v13, %v6401_v42  ;;  %v3251_v20 = vmul.f32 %v3243_v44, %v6387_v46  ;;  %v3363_v61 = vmul.f32 %v3355_v21, %v6353_v0  ;;  %v2959_v44 = vpop.f32.mrf.mxu1  ;;  %vm3978_vm0 = vcmask 1041409  }
 0x1be   :  { %v6385_v43 = vpop.permute.xlu0 %3331 }
 0x1bf   :  { %6952 = vst [vmem:[#allocation24_spill] sm:$0xff] %v6385_v43  ;;  %v3370_v25 = vadd.f32 %v3362_v41, %v3314_v14 }
 0x1c1   :  { %v3426_v11 = vadd.f32 %v3418_v4, %v3370_v25 }
 0x1c3   :  { %v3454_v16 = vadd.f32 %v6422_v26, %v3426_v11  ;;  %v3436_v60 = vadd.f32 %v6427_v62, %v3426_v11 }
 0x1c4   :  { %v6416_v58 = vpop.permute.xlu1 %3383 }
 0x1c5   :  { %v3419_v48 = vmul.f32 %v3411_v7, %v6416_v58  ;;  %v3462_v17 = vmax.f32 %v3454_v16, 0.0  ;;  %v3444_v13 = vmax.f32 %v3436_v60, 0.0  ;;  %v2961_v38 = vpop.f32.mrf.mxu1 }
 0x1c6   :  { %v6393_v15 = vpop.permute.xlu0 %3171 }
 0x1c7   :  { %6953 = vst [vmem:[#allocation25_spill] sm:$0xff] %v6393_v15 }
 0x1cc   :  { %v6440_v49 = vpop.permute.xlu1 %3003 }
 0x1ce   :  { %v6403_v8 = vpop.permute.xlu0 %2993 }
 0x1cf   :  { %v3035_v37 = vmul.f32 %v3027_v28, %v6403_v8  ;;  %v6434_v28 = vpop.permute.xlu2 %2998 }
 0x1d1   :  { %v3091_v40 = vadd.f32 %v3083_v1, %v3035_v37  ;;  %v2906_v37 = vpop.f32.mrf.mxu0 }
 0x1d3   :  { %v3147_v56 = vadd.f32 %v3139_v22, %v3091_v40  ;;  %v2960_v40 = vadd.f32 %v2959_v44, %v2906_v37 }
 0x1d4   :  { %v6444_v51 = vpop.permute.xlu1 %3107 }
 0x1d5   :  { %v3203_v24 = vadd.f32 %v3195_v52, %v3147_v56  ;;  %v2980_v63 = vadd.f32 %v6378_v59, %v2960_v40 }
 0x1d7   :  { %v3259_v23 = vadd.f32 %v3251_v20, %v3203_v24  ;;  %v6438_v1 = vpop.permute.xlu2 %3055  ;;  %v3028_v21 = vperm.slane %v2980_v63, 0  ;;  %v3076_v25 = vperm.slane %v2980_v63, 1  ;;  %v3132_v4 = vperm.slane %v2980_v63, 2 }
 0x1d9   :  { %v3315_v36 = vadd.f32 %v3307_v32, %v3259_v23  ;;  %v2908_v22 = vpop.f32.mrf.mxu0  ;;  %v3036_v7 = vmul.f32 %v3028_v21, %v6434_v28  ;;  %v3140_v16 = vmul.f32 %v3132_v4, %v6444_v51 }
 0x1da   :  { %v2962_v41 = vadd.f32 %v2961_v38, %v2908_v22 }
 0x1db   :  { %v3371_v35 = vadd.f32 %v3363_v61, %v3315_v36  ;;  %v3188_v61 = vperm.slane %v2980_v63, 3 }
 0x1dc   :  { %v6448_v47 = vpop.permute.xlu1 %3163  ;;  %v2981_v14 = vadd.f32 %v6378_v59, %v2962_v41 }
 0x1dd   :  { %v3427_v27 = vadd.f32 %v3419_v48, %v3371_v35  ;;  %v3084_v48 = vmul.f32 %v3076_v25, %v6360_v12 }
 0x1de   :  { %v3029_v56 = vperm.slane %v2981_v14, 0  ;;  %v3077_v20 = vperm.slane %v2981_v14, 1  ;;  %v3133_v32 = vperm.slane %v2981_v14, 2  ;;  %v3357_v22 = vperm.slane %v2981_v14, 6 }
 0x1df   :  { %v3455_v10 = vadd.f32 %v6422_v26, %v3427_v27  ;;  %v3437_v57 = vadd.f32 %v6427_v62, %v3427_v27  ;;  %v6442_v33 = vpop.permute.xlu2 %3111  ;;  %v3092_v60 = vadd.f32 %v3084_v48, %v3036_v7  ;;  %v3413_v21 = vperm.slane %v2981_v14, 7 }
 0x1e0   :  { %v3037_v24 = vmul.f32 %v3029_v56, %v6440_v49  ;;  %v3085_v23 = vmul.f32 %v3077_v20, %v6438_v1  ;;  %v3141_v27 = vmul.f32 %v3133_v32, %v6442_v33  ;;  %v3301_v56 = vperm.slane %v2981_v14, 5 }
 0x1e1   :  { %v3463_v30 = vmax.f32 %v3455_v10, 0.0  ;;  %v3445_v45 = vmax.f32 %v3437_v57, 0.0  ;;  %v3196_v10 = vmul.f32 %v3188_v61, %v6448_v47  ;;  %v3189_v57 = vperm.slane %v2981_v14, 3 }
 0x1e2   :  { %v3093_v35 = vadd.f32 %v3085_v23, %v3037_v24  ;;  %v3356_v7 = vperm.slane %v2980_v63, 6 }
 0x1e3   :  { %v3474_v18 = vpack.c.bf16 %v3463_v30, %v3462_v17  ;;  %v3470_v54 = vpack.c.bf16 %v3445_v45, %v3444_v13  ;;  %v3245_v17 = vperm.slane %v2981_v14, 4  ;;  %v3148_v13 = vadd.f32 %v3140_v16, %v3092_v60 }
 0x1e4   :  { %v6457_v11 = vpop.permute.xlu1 %3223  ;;  %v3149_v30 = vadd.f32 %v3141_v27, %v3093_v35  ;;  %v3244_v45 = vperm.slane %v2980_v63, 4  ;;  %v3197_v37 = vmul.f32 %v3189_v57, %v6376_v34  ;;  %v3364_v16 = vmul.f32 %v3356_v7, %v6385_v43 }
 0x1e5   :  { %4267 = vmatmul.msk.bf16.vlgmr.msra.gmra.mxu2 %vm6954_vm2, %v3474_v18  ;;  %4279 = vmatmul.msk.bf16.vlgmr.msra.gmra.mxu3 %vm6955_vm3, %v3470_v54  ;;  %6956 = vst [vmem:[#allocation26_spill] sm:$0xff] %v6457_v11  ;;  %v3204_v18 = vadd.f32 %v3196_v10, %v3148_v13  ;;  %v3300_v54 = vperm.slane %v2980_v63, 5  ;;  %v3253_v44 = vmul.f32 %v3245_v17, %v6457_v11  ;;  %v3412_v10 = vperm.slane %v2980_v63, 7  ;;  %vm7004_vm2 = vmmov %vm6951_vm1 }
 0x1e6   :  { %v3205_v41 = vadd.f32 %v3197_v37, %v3149_v30  ;;  %vm7005_vm3 = vmmov %vm6951_vm1 }
 0x1e7   :  { %v6446_v29 = vpop.permute.xlu2 %3219 }
 0x1e8   :  { %v3252_v38 = vmul.f32 %v3244_v45, %v6446_v29  ;;  %v3261_v32 = vadd.f32 %v3253_v44, %v3205_v41 }
 0x1ea   :  { %v3260_v25 = vadd.f32 %v3252_v38, %v3204_v18 }
 0x1ec   :  { %v6468_v40 = vpop.permute.xlu1 %3279 }
 0x1ed   :  { %6958 = vst [vmem:[#allocation28_spill] sm:$0xff] %v6468_v40  ;;  %v3309_v4 = vmul.f32 %v3301_v56, %v6468_v40 }
 0x1ef   :  { %v6450_v52 = vpop.permute.xlu2 %3275  ;;  %v3317_v61 = vadd.f32 %v3309_v4, %v3261_v32  ;;  %v2964_v32 = vpop.f32.mrf.mxu1 }
 0x1f0   :  { %v3308_v24 = vmul.f32 %v3300_v54, %v6450_v52 }
 0x1f2   :  { %v3316_v35 = vadd.f32 %v3308_v24, %v3260_v25  ;;  %v2911_v24 = vpop.f32.mrf.mxu0 }
 0x1f4   :  { %v6477_v14 = vpop.permute.xlu1 %3387  ;;  %v3372_v17 = vadd.f32 %v3364_v16, %v3316_v35 }
 0x1f5   :  { %6960 = vst [vmem:[#allocation30_spill] sm:$0xff] %v6477_v14  ;;  %v3420_v30 = vmul.f32 %v3412_v10, %v6477_v14 }
 0x1f7   :  { %v6459_v36 = vpop.permute.xlu2 %3335  ;;  %v3428_v18 = vadd.f32 %v3420_v30, %v3372_v17 }
 0x1f8   :  { %6957 = vst [vmem:[#allocation27_spill] sm:$0xff] %v6459_v36  ;;  %v3365_v23 = vmul.f32 %v3357_v22, %v6459_v36 }
 0x1f9   :  { %v3438_v54 = vadd.f32 %v6427_v62, %v3428_v18  ;;  %v3456_v37 = vadd.f32 %v6422_v26, %v3428_v18 }
 0x1fa   :  { %v3373_v27 = vadd.f32 %v3365_v23, %v3317_v61  ;;  %v2965_v23 = vadd.f32 %v2964_v32, %v2911_v24  ;;  %v6496_v61 = vpop.permute.xlu0 %3013  ;;  %v2913_v16 = vpop.f32.mrf.mxu0 }
 0x1fb   :  { %v3464_v22 = vmax.f32 %v3456_v37, 0.0  ;;  %v3446_v41 = vmax.f32 %v3438_v54, 0.0 }
 0x1fc   :  { %v6486_v44 = vpop.permute.xlu1 %3008  ;;  %v2982_v35 = vadd.f32 %v6378_v59, %v2965_v23 }
 0x1fe   :  { %v3030_v17 = vperm.slane %v2982_v35, 0  ;;  %v3078_v30 = vperm.slane %v2982_v35, 1  ;;  %v3134_v18 = vperm.slane %v2982_v35, 2  ;;  %v3190_v23 = vperm.slane %v2982_v35, 3 }
 0x1ff   :  { %v6470_v20 = vpop.permute.xlu2 %3391 }
 0x200   :  { %6959 = vst [vmem:[#allocation29_spill] sm:$0xff] %v6470_v20  ;;  %v3421_v48 = vmul.f32 %v3413_v21, %v6470_v20  ;;  %v3302_v20 = vperm.slane %v2982_v35, 5 }
 0x202   :  { %v3429_v60 = vadd.f32 %v3421_v48, %v3373_v27  ;;  %v6505_v54 = vpop.permute.xlu0 %3018 }
 0x204   :  { %v3439_v13 = vadd.f32 %v6427_v62, %v3429_v60  ;;  %v3457_v45 = vadd.f32 %v6422_v26, %v3429_v60  ;;  %v6492_v4 = vpop.permute.xlu1 %3063  ;;  %v2966_v60 = vpop.f32.mrf.mxu1 }
 0x205   :  { %v2967_v10 = vadd.f32 %v2966_v60, %v2913_v16  ;;  %v3246_v16 = vperm.slane %v2982_v35, 4 }
 0x206   :  { %v3465_v38 = vmax.f32 %v3457_v45, 0.0  ;;  %v3447_v63 = vmax.f32 %v3439_v13, 0.0  ;;  %v3038_v45 = vmul.f32 %v3030_v17, %v6486_v44 }
 0x207   :  { %v6479_v57 = vpop.permute.xlu2 %3059  ;;  %v2983_v13 = vadd.f32 %v6378_v59, %v2967_v10 }
 0x208   :  { %v3475_v21 = vpack.c.bf16 %v3465_v38, %v3464_v22  ;;  %v3471_v25 = vpack.c.bf16 %v3447_v63, %v3446_v41  ;;  %v3086_v22 = vmul.f32 %v3078_v30, %v6479_v57 }
 0x209   :  { %v3079_v38 = vperm.slane %v2983_v13, 1  ;;  %v3135_v24 = vperm.slane %v2983_v13, 2  ;;  %v3191_v40 = vperm.slane %v2983_v13, 3  ;;  %v3247_v14 = vperm.slane %v2983_v13, 4 }
 0x20a   :  { %4268 = vmatmul.msk.bf16.gmra.mxu2 %vm6961_vm4, %v3475_v21  ;;  %4280 = vmatmul.msk.bf16.gmra.mxu3 %vm6962_vm5, %v3471_v25  ;;  %v3094_v63 = vadd.f32 %v3086_v22, %v3038_v45  ;;  %v3031_v25 = vperm.slane %v2983_v13, 0  ;;  %v3198_v45 = vmul.f32 %v3190_v23, %v6393_v15  ;;  %v6522_v11 = vpop.permute.xlu0 %3127  ;;  %v3414_v23 = vperm.slane %v2982_v35, 7  ;;  %vm7006_vm4 = vmmov %vm6951_vm1 }
 0x20b   :  { %v3087_v32 = vmul.f32 %v3079_v38, %v6492_v4  ;;  %6967 = vst [vmem:[#allocation35_spill] sm:$0xff] %v6522_v11  ;;  %v3359_v43 = vperm.slane %v2983_v13, 6  ;;  %vm7007_vm5 = vmmov %vm6951_vm1 }
 0x20c   :  { %v6498_v48 = vpop.permute.xlu1 %3119  ;;  %v3039_v10 = vmul.f32 %v3031_v25, %v6496_v61 }
 0x20d   :  { %6963 = vst [vmem:[#allocation31_spill] sm:$0xff] %v6498_v48  ;;  %v3143_v17 = vmul.f32 %v3135_v24, %v6498_v48  ;;  %v3358_v48 = vperm.slane %v2982_v35, 6 }
 0x20e   :  { %v3095_v30 = vadd.f32 %v3087_v32, %v3039_v10 }
 0x20f   :  { %v6488_v56 = vpop.permute.xlu2 %3115 }
 0x210   :  { %v3142_v21 = vmul.f32 %v3134_v18, %v6488_v56  ;;  %v3151_v38 = vadd.f32 %v3143_v17, %v3095_v30 }
 0x212   :  { %v3150_v60 = vadd.f32 %v3142_v21, %v3094_v63 }
 0x214   :  { %v6507_v37 = vpop.permute.xlu1 %3227  ;;  %v3206_v63 = vadd.f32 %v3198_v45, %v3150_v60 }
 0x215   :  { %6964 = vst [vmem:[#allocation32_spill] sm:$0xff] %v6507_v37  ;;  %v3254_v18 = vmul.f32 %v3246_v16, %v6507_v37  ;;  %v3303_v16 = vperm.slane %v2983_v13, 5 }
 0x217   :  { %v6494_v7 = vpop.permute.xlu2 %3175  ;;  %v3262_v24 = vadd.f32 %v3254_v18, %v3206_v63  ;;  %v3415_v18 = vperm.slane %v2983_v13, 7 }
 0x218   :  { %v3199_v25 = vmul.f32 %v3191_v40, %v6494_v7  ;;  %v6533_v40 = vpop.permute.xlu0 %3287 }
 0x219   :  { %6970 = vst [vmem:[#allocation38_spill] sm:$0xff] %v6533_v40  ;;  %v3311_v45 = vmul.f32 %v3303_v16, %v6533_v40 }
 0x21a   :  { %v3207_v34 = vadd.f32 %v3199_v25, %v3151_v38 }
 0x21c   :  { %v6516_v36 = vpop.permute.xlu1 %3283 }
 0x21d   :  { %v3310_v21 = vmul.f32 %v3302_v20, %v6516_v36 }
 0x21f   :  { %v6501_v27 = vpop.permute.xlu2 %3231  ;;  %v3318_v10 = vadd.f32 %v3310_v21, %v3262_v24 }
 0x220   :  { %v3255_v32 = vmul.f32 %v3247_v14, %v6501_v27 }
 0x222   :  { %v3263_v60 = vadd.f32 %v3255_v32, %v3207_v34 }
 0x224   :  { %v6527_v15 = vpop.permute.xlu1 %3343  ;;  %v3319_v63 = vadd.f32 %v3311_v45, %v3263_v60 }
 0x225   :  { %6968 = vst [vmem:[#allocation36_spill] sm:$0xff] %v6527_v15  ;;  %v3367_v14 = vmul.f32 %v3359_v43, %v6527_v15 }
 0x227   :  { %v6510_v41 = vpop.permute.xlu2 %3339 }
 0x228   :  { %6965 = vst [vmem:[#allocation33_spill] sm:$0xff] %v6510_v41  ;;  %v3366_v37 = vmul.f32 %v3358_v48, %v6510_v41  ;;  %v3375_v48 = vadd.f32 %v3367_v14, %v3319_v63 }
 0x22a   :  { %v3374_v30 = vadd.f32 %v3366_v37, %v3318_v10 }
 0x22c   :  { %v6537_v25 = vpop.permute.xlu1 %3399 }
 0x22d   :  { %6971 = vst [vmem:[#allocation39_spill] sm:$0xff] %v6537_v25  ;;  %v3423_v24 = vmul.f32 %v3415_v18, %v6537_v25 }
 0x22f   :  { %v6520_v22 = vpop.permute.xlu2 %3395  ;;  %v3431_v10 = vadd.f32 %v3423_v24, %v3375_v48 }
 0x230   :  { %6966 = vst [vmem:[#allocation34_spill] sm:$0xff] %v6520_v22  ;;  %v3422_v20 = vmul.f32 %v3414_v23, %v6520_v22 }
 0x231   :  { %v3441_v23 = vadd.f32 %v6427_v62, %v3431_v10  ;;  %v3459_v43 = vadd.f32 %v6422_v26, %v3431_v10 }
 0x232   :  { %v3430_v38 = vadd.f32 %v3422_v20, %v3374_v30 }
 0x233   :  { %v3467_v16 = vmax.f32 %v3459_v43, 0.0  ;;  %v3449_v30 = vmax.f32 %v3441_v23, 0.0 }
 0x234   :  { %v3440_v37 = vadd.f32 %v6427_v62, %v3430_v38  ;;  %v3458_v32 = vadd.f32 %v6422_v26, %v3430_v38  ;;  %v6546_v20 = vpop.permute.xlu1 %3067 }
 0x235   :  { %6973 = vst [vmem:[#allocation41_spill] sm:$0xff] %v6546_v20 }
 0x236   :  { %v3466_v13 = vmax.f32 %v3458_v32, 0.0  ;;  %v3448_v60 = vmax.f32 %v3440_v37, 0.0 }
 0x237   :  { %v6530_v17 = vpop.permute.xlu2 %3023 }
 0x238   :  { %6969 = vst [vmem:[#allocation37_spill] sm:$0xff] %v6530_v17  ;;  %v3476_v45 = vpack.c.bf16 %v3467_v16, %v3466_v13  ;;  %v3472_v14 = vpack.c.bf16 %v3449_v30, %v3448_v60 }
 0x23a   :  { %v2916_v35 = vpop.f32.mrf.mxu0  ;;  %v2969_v21 = vpop.f32.mrf.mxu1  ;;  %4269 = vmatmul.msk.bf16.gmra.mxu2 %vm6974_vm8, %v3476_v45  ;;  %4281 = vmatmul.msk.bf16.gmra.mxu3 %vm6975_vm7, %v3472_v14  ;;  %vm7010_vm8 = vmmov %vm6951_vm1 }
 0x23b   :  { %v2970_v37 = vadd.f32 %v2969_v21, %v2916_v35  ;;  %vm7014_vm7 = vmmov %vm6951_vm1 }
 0x23c   :  { %v6552_v48 = vpop.permute.xlu1 %3123 }
 0x23d   :  { %6976 = vst [vmem:[#allocation42_spill] sm:$0xff] %v6552_v48  ;;  %v2984_v43 = vadd.f32 %v6378_v59, %v2970_v37 }
 0x23f   :  { %v6540_v34 = vpop.permute.xlu2 %3071  ;;  %v3080_v30 = vperm.slane %v2984_v43, 1  ;;  %v3136_v22 = vperm.slane %v2984_v43, 2  ;;  %v3192_v15 = vperm.slane %v2984_v43, 3 }
 0x240   :  { %6972 = vst [vmem:[#allocation40_spill] sm:$0xff] %v6540_v34 }
 0x241   :  { %v3088_v35 = vmul.f32 %v3080_v30, %v6546_v20 }
 0x242   :  { %v2918_v63 = vpop.f32.mrf.mxu0  ;;  %v2971_v25 = vpop.f32.mrf.mxu1 }
 0x243   :  { %v2972_v38 = vadd.f32 %v2971_v25, %v2918_v63 }
 0x244   :  { %v6559_v16 = vpop.permute.xlu1 %3183 }
 0x245   :  { %v2985_v24 = vadd.f32 %v6378_v59, %v2972_v38  ;;  %6977 = vst [vmem:[#allocation43_spill] sm:$0xff] %v6559_v16  ;;  %v3032_v38 = vperm.slane %v2984_v43, 0 }
 0x247   :  { %v6548_v18 = vpop.permute.xlu2 %3179  ;;  %v3081_v10 = vperm.slane %v2985_v24, 1  ;;  %v3033_v23 = vperm.slane %v2985_v24, 0  ;;  %v3137_v45 = vperm.slane %v2985_v24, 2  ;;  %v3193_v25 = vperm.slane %v2985_v24, 3 }
 0x248   :  { %v3040_v37 = vmul.f32 %v3032_v38, %v6505_v54  ;;  %v3305_v40 = vperm.slane %v2985_v24, 5  ;;  %v3200_v38 = vmul.f32 %v3192_v15, %v6548_v18 }
 0x249   :  { %v3089_v13 = vmul.f32 %v3081_v10, %v6540_v34  ;;  %v3041_v60 = vmul.f32 %v3033_v23, %v6530_v17  ;;  %v3145_v21 = vmul.f32 %v3137_v45, %v6522_v11  ;;  %v3201_v59 = vmul.f32 %v3193_v25, %v6559_v16  ;;  %v6569_v17 = vpop.permute.xlu0 %3291 }
 0x24a   :  { %v3144_v10 = vmul.f32 %v3136_v22, %v6552_v48  ;;  %v3249_v23 = vperm.slane %v2985_v24, 4  ;;  %v3248_v45 = vperm.slane %v2984_v43, 4 }
 0x24b   :  { %v3097_v63 = vadd.f32 %v3089_v13, %v3041_v60  ;;  %v3096_v13 = vadd.f32 %v3088_v35, %v3040_v37  ;;  %v3417_v37 = vperm.slane %v2985_v24, 7 }
 0x24c   :  { %v6571_v41 = vpop.permute.xlu1 %3239 }
 0x24d   :  { %v3153_v34 = vadd.f32 %v3145_v21, %v3097_v63  ;;  %v3257_v30 = vmul.f32 %v3249_v23, %v6571_v41  ;;  %v3152_v20 = vadd.f32 %v3144_v10, %v3096_v13  ;;  %v3361_v63 = vperm.slane %v2985_v24, 6 }
 0x24f   :  { %v6555_v32 = vpop.permute.xlu2 %3235  ;;  %v3209_v60 = vadd.f32 %v3201_v59, %v3153_v34  ;;  %v3208_v21 = vadd.f32 %v3200_v38, %v3152_v20  ;;  %v3304_v59 = vperm.slane %v2984_v43, 5 }
 0x250   :  { %v3256_v16 = vmul.f32 %v3248_v45, %v6555_v32 }
 0x251   :  { %v3265_v11 = vadd.f32 %v3257_v30, %v3209_v60  ;;  %v6582_v10 = vpop.permute.xlu0 %3407  ;;  %v3360_v60 = vperm.slane %v2984_v43, 6  ;;  %v3312_v15 = vmul.f32 %v3304_v59, %v6569_v17 }
 0x252   :  { %v3264_v23 = vadd.f32 %v3256_v16, %v3208_v21 }
 0x254   :  { %v6580_v34 = vpop.permute.xlu1 %3347  ;;  %v3320_v45 = vadd.f32 %v3312_v15, %v3264_v23 }
 0x255   :  { %v3368_v20 = vmul.f32 %v3360_v60, %v6580_v34 }
 0x257   :  { %v6562_v14 = vpop.permute.xlu2 %3295 }
 0x258   :  { %v3313_v22 = vmul.f32 %v3305_v40, %v6562_v14  ;;  %v3425_v40 = vmul.f32 %v3417_v37, %v6582_v10 }
 0x25a   :  { %v3321_v48 = vadd.f32 %v3313_v22, %v3265_v11  ;;  %v3416_v11 = vperm.slane %v2984_v43, 7  ;;  %v3376_v22 = vadd.f32 %v3368_v20, %v3320_v45  ;;  %v6596_v20 = vld [vmem:[#allocation13] ss:$0 sm:$0xff] }
 0x25c   :  { %v6587_v38 = vpop.permute.xlu1 %3403 }
 0x25f   :  { %v6574_v25 = vpop.permute.xlu2 %3351 }
 0x260   :  { %6978 = vst [vmem:[#allocation44_spill] sm:$0xff] %v6574_v25  ;;  %v3369_v35 = vmul.f32 %v3361_v63, %v6574_v25  ;;  %v3424_v63 = vmul.f32 %v3416_v11, %v6587_v38 }
 0x262   :  { %v3377_v13 = vadd.f32 %v3369_v35, %v3321_v48  ;;  %v3432_v24 = vadd.f32 %v3424_v63, %v3376_v22 }
 0x264   :  { %v3433_v30 = vadd.f32 %v3425_v40, %v3377_v13  ;;  %v3442_v16 = vadd.f32 %v6427_v62, %v3432_v24  ;;  %v3460_v21 = vadd.f32 %v6422_v26, %v3432_v24 }
 0x266   :  { %v3461_v25 = vadd.f32 %v6422_v26, %v3433_v30  ;;  %v3443_v48 = vadd.f32 %v6427_v62, %v3433_v30  ;;  %v3468_v35 = vmax.f32 %v3460_v21, 0.0  ;;  %v3450_v37 = vmax.f32 %v3442_v16, 0.0 }
 0x268   :  { %v3469_v59 = vmax.f32 %v3461_v25, 0.0  ;;  %v3451_v13 = vmax.f32 %v3443_v48, 0.0  ;;  %v3520_v60 = vpop.f32.mrf.mxu2  ;;  %v3573_v15 = vpop.f32.mrf.mxu3 }
 0x269   :  { %v3574_v40 = vadd.f32 %v3573_v15, %v3520_v60 }
 0x26a   :  { %v3477_v23 = vpack.c.bf16 %v3469_v59, %v3468_v35  ;;  %v3473_v43 = vpack.c.bf16 %v3451_v13, %v3450_v37 }
 0x26b   :  { %v6599_v62 = vadd.f32 %v6596_v20, %v3574_v40 }
 0x26c   :  { %4270 = vmatmul.msk.bf16.gmra.mxu2 %vm6979_vm10, %v3477_v23  ;;  %4282 = vmatmul.msk.bf16.gmra.mxu3 %vm6980_vm15, %v3473_v43  ;;  %vm7015_vm10 = vmmov %vm6951_vm1 }
 0x26d   :  { %v3605_v25 = vperm.slane %v6599_v62, 0  ;;  %v3621_v11 = vperm.slane %v6599_v62, 1  ;;  %v3645_v21 = vperm.slane %v6599_v62, 2  ;;  %v3669_v23 = vperm.slane %v6599_v62, 3  ;;  %vm7016_vm15 = vmmov %vm6951_vm1 }
 0x26f   :  { %v3613_v63 = vmul.f32 %v3605_v25, %v6335_v50  ;;  %v3629_v24 = vmul.f32 %v3621_v11, %v6351_v55  ;;  %v3653_v13 = vmul.f32 %v3645_v21, %v6358_v6  ;;  %v3693_v55 = vperm.slane %v6599_v62, 4  ;;  %v4311_v25 = vld [vmem:[#allocation14 + $0x10] sm:$0xf]  ;;  %v4330_v11 = vld [vmem:[#allocation14 + $0x14] sm:$0xf0] }
 0x270   :  { %v3522_v30 = vpop.f32.mrf.mxu2  ;;  %v3575_v45 = vpop.f32.mrf.mxu3  ;;  %v4293_v21 = vld [vmem:[#allocation14 + $0x30] sm:$0xf] }
 0x271   :  { %v3576_v26 = vadd.f32 %v3575_v45, %v3522_v30  ;;  %v3637_v35 = vadd.f32 %v3629_v24, %v3613_v63  ;;  %v3677_v30 = vmul.f32 %v3669_v23, %v6374_v31  ;;  %v4329_v63 = vld [vmem:[#allocation14 + $0x14] sm:$0xf]  ;;  %v3701_v24 = vmul.f32 %v3693_v55, %v6341_v19  ;;  %v4295_v23 = vld [vmem:[#allocation14 + $0x38] sm:$0xf0] }
 0x272   :  { %v3741_v55 = vperm.slane %v6599_v62, 6 }
 0x273   :  { %v6604_v22 = vadd.f32 %v6596_v20, %v3576_v26  ;;  %v3661_v50 = vadd.f32 %v3653_v13, %v3637_v35  ;;  %v4334_v35 = vld [vmem:[#allocation14 + $0x34] sm:$0xf0]  ;;  %v4333_v13 = vld [vmem:[#allocation14 + $0x34] sm:$0xf] }
 0x275   :  { %v3606_v48 = vperm.slane %v6604_v22, 0  ;;  %v3622_v16 = vperm.slane %v6604_v22, 1  ;;  %v3646_v43 = vperm.slane %v6604_v22, 2  ;;  %v3685_v26 = vadd.f32 %v3677_v30, %v3661_v50 }
 0x276   :  { %v3694_v31 = vperm.slane %v6604_v22, 4 }
 0x277   :  { %v3614_v59 = vmul.f32 %v3606_v48, %v6403_v8  ;;  %v3630_v37 = vmul.f32 %v3622_v16, %v6348_v5  ;;  %v3654_v45 = vmul.f32 %v3646_v43, %v6366_v3  ;;  %v3670_v8 = vperm.slane %v6604_v22, 3  ;;  %v4313_v16 = vld [vmem:[#allocation14 + $0x18] sm:$0xf0] }
 0x278   :  { %v3717_v5 = vperm.slane %v6599_v62, 5  ;;  %v4312_v48 = vor.u32 %v4330_v11, %v4311_v25  ;;  %v4316_v3 = vor.u32 %v4329_v63, %v4313_v16  ;;  %v4298_v43 = vor.u32 %v4333_v13, %v4295_v23 }
 0x279   :  { %v3638_v60 = vadd.f32 %v3630_v37, %v3614_v59  ;;  %v3678_v59 = vmul.f32 %v3670_v8, %v6380_v9  ;;  %v4294_v37 = vor.u32 %v4334_v35, %v4293_v21  ;;  %v3709_v50 = vadd.f32 %v3701_v24, %v3685_v26 }
 0x27a   :  { %4095 = vmatpush.bf16.msrb.mxu2 %v4312_v48  ;;  %4108 = vmatpush.bf16.msrb.mxu3 %v4316_v3  ;;  %v3725_v19 = vmul.f32 %v3717_v5, %v6391_v39  ;;  %v3702_v30 = vmul.f32 %v3694_v31, %v6387_v46  ;;  %v3718_v9 = vperm.slane %v6604_v22, 5  ;;  %v3765_v48 = vperm.slane %v6599_v62, 7  ;;  %v6643_v31 = vld [vmem:[%s6839_s8 + $0x1] ss:$0 sm:$0xff] }
 0x27b   :  { %v3662_v6 = vadd.f32 %v3654_v45, %v3638_v60  ;;  %4022 = vmatpush.bf16.msrb.mxu0 %v4294_v37  ;;  %4035 = vmatpush.bf16.msrb.mxu1 %v4298_v43  ;;  %v3749_v26 = vmul.f32 %v3741_v55, %v6401_v42  ;;  %v3742_v39 = vperm.slane %v6604_v22, 6  ;;  %v6651_v37 = vld [vmem:[%s6839_s8] ss:$0 sm:$0xff] }
 0x27c   :  { %v3733_v11 = vadd.f32 %v3725_v19, %v3709_v50  ;;  %v3773_v16 = vmul.f32 %v3765_v48, %v6411_v53 }
 0x27d   :  { %v3686_v60 = vadd.f32 %v3678_v59, %v3662_v6  ;;  %v3726_v6 = vmul.f32 %v3718_v9, %v6398_v2 }
 0x27e   :  { %v3757_v46 = vadd.f32 %v3749_v26, %v3733_v11 }
 0x27f   :  { %v3710_v63 = vadd.f32 %v3702_v30, %v3686_v60 }
 0x280   :  { %v3781_v59 = vadd.f32 %v3773_v16, %v3757_v46 }
 0x281   :  { %v3734_v24 = vadd.f32 %v3726_v6, %v3710_v63 }
 0x282   :  { %v3809_v43 = vadd.f32 %v6643_v31, %v3781_v59 }
 0x28d   :  { %v3525_v15 = vpop.f32.mrf.mxu2  ;;  %v3578_v40 = vpop.f32.mrf.mxu3 }
 0x28e   :  { %v3579_v45 = vadd.f32 %v3578_v40, %v3525_v15  ;;  %v3750_v15 = vmul.f32 %v3742_v39, %v6353_v0  ;;  %v3766_v40 = vperm.slane %v6604_v22, 7 }
 0x290   :  { %v6633_v5 = vadd.f32 %v6596_v20, %v3579_v45  ;;  %v3758_v2 = vadd.f32 %v3750_v15, %v3734_v24  ;;  %v3774_v3 = vmul.f32 %v3766_v40, %v6416_v58  ;;  %v3817_v45 = vmax.f32 %v3809_v43, 0.0 }
 0x292   :  { %v3607_v21 = vperm.slane %v6633_v5, 0  ;;  %v3623_v62 = vperm.slane %v6633_v5, 1  ;;  %v3647_v13 = vperm.slane %v6633_v5, 2  ;;  %v3782_v23 = vadd.f32 %v3774_v3, %v3758_v2 }
 0x293   :  { %v3671_v30 = vperm.slane %v6633_v5, 3  ;;  %v3695_v39 = vperm.slane %v6633_v5, 4  ;;  %v3889_v24 = vsel %vm6981_vm14, %v3817_v45, 0.0  ;;  %v3767_v45 = vperm.slane %v6633_v5, 7  ;;  %vm7017_vm14 = vmmov %vm6951_vm1 }
 0x294   :  { %v3615_v53 = vmul.f32 %v3607_v21, %v6434_v28  ;;  %v3631_v0 = vmul.f32 %v3623_v62, %v6360_v12  ;;  %v3791_v12 = vadd.f32 %v6651_v37, %v3781_v59  ;;  %v3655_v55 = vmul.f32 %v3647_v13, %v6444_v51 }
 0x295   :  { %v3527_v8 = vpop.f32.mrf.mxu2  ;;  %v3580_v25 = vpop.f32.mrf.mxu3  ;;  %v3810_v9 = vadd.f32 %v6643_v31, %v3782_v23  ;;  %v3679_v6 = vmul.f32 %v3671_v30, %v6448_v47  ;;  %v3792_v47 = vadd.f32 %v6651_v37, %v3782_v23  ;;  %v3703_v2 = vmul.f32 %v3695_v39, %v6446_v29  ;;  %v6985_v39 = vld [vmem:[#allocation23_spill] sm:$0xff] }
 0x296   :  { %v3581_v22 = vadd.f32 %v3580_v25, %v3527_v8  ;;  %v3639_v60 = vadd.f32 %v3631_v0, %v3615_v53  ;;  %v3799_v26 = vmax.f32 %v3791_v12, 0.0  ;;  %v3719_v59 = vperm.slane %v6633_v5, 5 }
 0x297   :  { %v3818_v51 = vmax.f32 %v3810_v9, 0.0  ;;  %v3800_v9 = vmax.f32 %v3792_v47, 0.0  ;;  %v6988_v47 = vld [vmem:[#allocation25_spill] sm:$0xff] }
 0x298   :  { %v6656_v19 = vadd.f32 %v6596_v20, %v3581_v22  ;;  %v3663_v11 = vadd.f32 %v3655_v55, %v3639_v60 }
 0x299   :  { %v3896_v53 = vsel %vm6983_vm13, %v3818_v51, 0.0  ;;  %vm3982_vm13 = vcmask 1043459  }
 0x29a   :  { %v3608_v63 = vperm.slane %v6656_v19, 0  ;;  %v3624_v48 = vperm.slane %v6656_v19, 1  ;;  %v3687_v40 = vadd.f32 %v3679_v6, %v3663_v11  ;;  %v3648_v3 = vperm.slane %v6656_v19, 2 }
 0x29b   :  { %v3897_v12 = vrot.slane %v3896_v53, 4 }
 0x29c   :  { %v3616_v21 = vmul.f32 %v3608_v63, %v6440_v49  ;;  %v3632_v62 = vmul.f32 %v3624_v48, %v6438_v1  ;;  %v3711_v13 = vadd.f32 %v3703_v2, %v3687_v40 }
 0x29e   :  { %v3640_v23 = vadd.f32 %v3632_v62, %v3616_v21  ;;  %v6987_v62 = vld [vmem:[#allocation30_spill] sm:$0xff] }
 0x2bd   :  { %v3530_v42 = vpop.f32.mrf.mxu2  ;;  %v3583_v35 = vpop.f32.mrf.mxu3 }
 0x2be   :  { %v3584_v50 = vadd.f32 %v3583_v35, %v3530_v42  ;;  %v3890_v42 = vrot.slane %v3889_v24, 4  ;;  %v3825_v35 = vsel %vm6982_vm9, %v3799_v26, 0.0  ;;  %v6984_v26 = vld [vmem:[#allocation24_spill] sm:$0xff]  ;;  %vm3980_vm9 = vcmask 1042434  }
 0x2bf   :  { %v3826_v43 = vrot.slane %v3825_v35, 4 }
 0x2c0   :  { %v6663_v8 = vadd.f32 %v6596_v20, %v3584_v50  ;;  %v3743_v50 = vperm.slane %v6633_v5, 6  ;;  %v3891_v60 = vadd.f32 %v3890_v42, %v3889_v24  ;;  %v3898_v24 = vadd.f32 %v3897_v12, %v3896_v53 }
 0x2c1   :  { %v3827_v63 = vadd.f32 %v3826_v43, %v3825_v35  ;;  %v3832_v5 = vsel %vm6986_vm12, %v3800_v9, 0.0  ;;  %vm3984_vm12 = vcmask 1044484  }
 0x2c2   :  { %v3609_v46 = vperm.slane %v6663_v8, 0  ;;  %v3625_v16 = vperm.slane %v6663_v8, 1  ;;  %v3649_v29 = vperm.slane %v6663_v8, 2  ;;  %v3751_v6 = vmul.f32 %v3743_v50, %v6984_v26  ;;  %v6992_v26 = vld [vmem:[#allocation28_spill] sm:$0xff] }
 0x2c3   :  { %v3828_v42 = vrot.slane %v3827_v63, 2  ;;  %v3697_v2 = vperm.slane %v6663_v8, 4 }
 0x2c4   :  { %v3617_v0 = vmul.f32 %v3609_v46, %v6486_v44  ;;  %v3633_v22 = vmul.f32 %v3625_v16, %v6479_v57  ;;  %v3672_v44 = vperm.slane %v6656_v19, 3  ;;  %v3657_v48 = vmul.f32 %v3649_v29, %v6488_v56 }
 0x2c5   :  { %v3532_v58 = vpop.f32.mrf.mxu2  ;;  %v3585_v28 = vpop.f32.mrf.mxu3  ;;  %v3892_v16 = vrot.slane %v3891_v60, 2  ;;  %v3775_v56 = vmul.f32 %v3767_v45, %v6987_v62 }
 0x2c6   :  { %v3586_v25 = vadd.f32 %v3585_v28, %v3532_v58  ;;  %v3727_v58 = vmul.f32 %v3719_v59, %v6450_v52  ;;  %v3656_v28 = vmul.f32 %v3648_v3, %v6442_v33  ;;  %v3641_v57 = vadd.f32 %v3633_v22, %v3617_v0  ;;  %v6989_v59 = vld [vmem:[#allocation31_spill] sm:$0xff]  ;;  %v6990_v22 = vld [vmem:[#allocation26_spill] sm:$0xff] }
 0x2c7   :  { %v3673_v52 = vperm.slane %v6663_v8, 3  ;;  %v3680_v51 = vmul.f32 %v3672_v44, %v6985_v39  ;;  %v4327_v44 = vld [vmem:[#allocation14 + $0x4] sm:$0xf]  ;;  %v3744_v39 = vperm.slane %v6656_v19, 6 }
 0x2c8   :  { %v6673_v15 = vadd.f32 %v6596_v20, %v3586_v25  ;;  %v3664_v25 = vadd.f32 %v3656_v28, %v3640_v23  ;;  %v3735_v11 = vadd.f32 %v3727_v58, %v3711_v13  ;;  %v3833_v13 = vrot.slane %v3832_v5, 4  ;;  %v4303_v58 = vld [vmem:[#allocation14] sm:$0xf]  ;;  %v4328_v28 = vld [vmem:[#allocation14 + $0x4] sm:$0xf0] }
 0x2c9   :  { %v3681_v35 = vmul.f32 %v3673_v52, %v6988_v47  ;;  %v3721_v23 = vperm.slane %v6663_v8, 5  ;;  %v4332_v52 = vld [vmem:[#allocation14 + $0x24] sm:$0xf0] }
 0x2ca   :  { %v3610_v49 = vperm.slane %v6673_v15, 0  ;;  %v3626_v1 = vperm.slane %v6673_v15, 1  ;;  %v3650_v33 = vperm.slane %v6673_v15, 2  ;;  %v3688_v40 = vadd.f32 %v3680_v51, %v3664_v25 }
 0x2cb   :  { %v3759_v21 = vadd.f32 %v3751_v6, %v3735_v11  ;;  %v3674_v0 = vperm.slane %v6673_v15, 3  ;;  %v3698_v43 = vperm.slane %v6673_v15, 4  ;;  %v4304_v25 = vor.u32 %v4328_v28, %v4303_v58  ;;  %v4305_v11 = vld [vmem:[#allocation14 + $0x8] sm:$0xf0] }
 0x2cc   :  { %v3618_v55 = vmul.f32 %v3610_v49, %v6496_v61  ;;  %v3634_v30 = vmul.f32 %v3626_v1, %v6492_v4  ;;  %v3696_v61 = vperm.slane %v6656_v19, 4  ;;  %v3665_v4 = vadd.f32 %v3657_v48, %v3641_v57  ;;  %v4285_v48 = vld [vmem:[#allocation14 + $0x20] sm:$0xf] }
 0x2cd   :  { %v3658_v3 = vmul.f32 %v3650_v33, %v6989_v59  ;;  %v3720_v49 = vperm.slane %v6656_v19, 5  ;;  %v3899_v1 = vrot.slane %v3898_v24, 2  ;;  %v3783_v57 = vadd.f32 %v3775_v56, %v3759_v21  ;;  %4096 = vmatpush.bf16.msrb.mxu2 %v4304_v25 }
 0x2ce   :  { %v3642_v46 = vadd.f32 %v3634_v30, %v3618_v55  ;;  %v3704_v53 = vmul.f32 %v3696_v61, %v6990_v22  ;;  %v3689_v29 = vadd.f32 %v3681_v35, %v3665_v4  ;;  %v3893_v55 = vadd.f32 %v3892_v16, %v3891_v60  ;;  %v6991_v30 = vld [vmem:[#allocation32_spill] sm:$0xff]  ;;  %v4331_v4 = vld [vmem:[#allocation14 + $0x24] sm:$0xf] }
 0x2cf   :  { %v3705_v9 = vmul.f32 %v3697_v2, %v6991_v30  ;;  %v3682_v45 = vmul.f32 %v3674_v0, %v6494_v7  ;;  %v3829_v33 = vadd.f32 %v3828_v42, %v3827_v63  ;;  %v3728_v6 = vmul.f32 %v3720_v49, %v6992_v26  ;;  %v6993_v2 = vld [vmem:[#allocation27_spill] sm:$0xff] }
 0x2d0   :  { %v3666_v50 = vadd.f32 %v3658_v3, %v3642_v46  ;;  %v3712_v12 = vadd.f32 %v3704_v53, %v3688_v40  ;;  %v4308_v51 = vor.u32 %v4327_v44, %v4305_v11  ;;  %v4286_v61 = vor.u32 %v4332_v52, %v4285_v48  ;;  %v4287_v46 = vld [vmem:[#allocation14 + $0x28] sm:$0xf0]  ;;  %v6998_v48 = vld [vmem:[#allocation36_spill] sm:$0xff] }
 0x2d1   :  { %v4290_v40 = vor.u32 %v4331_v4, %v4287_v46  ;;  %v3713_v16 = vadd.f32 %v3705_v9, %v3689_v29  ;;  %v3834_v21 = vadd.f32 %v3833_v13, %v3832_v5  ;;  %v3811_v62 = vadd.f32 %v6643_v31, %v3783_v57  ;;  %v6994_v29 = vld [vmem:[#allocation38_spill] sm:$0xff] }
 0x2d2   :  { %v3690_v60 = vadd.f32 %v3682_v45, %v3666_v50  ;;  %4109 = vmatpush.bf16.msrb.mxu3 %v4308_v51  ;;  %4023 = vmatpush.bf16.msrb.mxu0 %v4286_v61  ;;  %v3736_v7 = vadd.f32 %v3728_v6, %v3712_v12  ;;  %v3900_v56 = vadd.f32 %v3899_v1, %v3898_v24  ;;  %v3745_v63 = vperm.slane %v6663_v8, 6  ;;  %v6999_v6 = vld [vmem:[#allocation34_spill] sm:$0xff] }
 0x2d3   :  { %v3722_v42 = vperm.slane %v6673_v15, 5  ;;  %4036 = vmatpush.bf16.msrb.mxu1 %v4290_v40  ;;  %v3706_v47 = vmul.f32 %v3698_v43, %v6501_v27  ;;  %v3729_v35 = vmul.f32 %v3721_v23, %v6516_v36  ;;  %v3752_v59 = vmul.f32 %v3744_v39, %v6993_v2  ;;  %v6995_v43 = vld [vmem:[#allocation33_spill] sm:$0xff] }
 0x2d4   :  { %v3894_v3 = vrot.slane %v3893_v55, 1  ;;  %v3793_v5 = vadd.f32 %v6651_v37, %v3783_v57  ;;  %v3768_v0 = vperm.slane %v6656_v19, 7  ;;  %v3835_v49 = vrot.slane %v3834_v21, 2  ;;  %v6996_v57 = vld [vmem:[#allocation29_spill] sm:$0xff] }
 0x2d5   :  { %v3714_v22 = vadd.f32 %v3706_v47, %v3690_v60  ;;  %v3737_v53 = vadd.f32 %v3729_v35, %v3713_v16  ;;  %v3760_v24 = vadd.f32 %v3752_v59, %v3736_v7  ;;  %v3819_v1 = vmax.f32 %v3811_v62, 0.0  ;;  %v7001_v62 = vld [vmem:[#allocation39_spill] sm:$0xff] }
 0x2d6   :  { %v3901_v13 = vrot.slane %v3900_v56, 1  ;;  %v3830_v50 = vrot.slane %v3829_v33, 1  ;;  %v3730_v58 = vmul.f32 %v3722_v42, %v6994_v29  ;;  %v3746_v27 = vperm.slane %v6673_v15, 6 }
 0x2d7   :  { %v3753_v36 = vmul.f32 %v3745_v63, %v6995_v43  ;;  %v3769_v23 = vperm.slane %v6663_v8, 7  ;;  %v3801_v28 = vmax.f32 %v3793_v5, 0.0  ;;  %v3776_v19 = vmul.f32 %v3768_v0, %v6996_v57 }
 0x2d8   :  { %v3738_v44 = vadd.f32 %v3730_v58, %v3714_v22  ;;  %v3836_v30 = vadd.f32 %v3835_v49, %v3834_v21  ;;  %v3895_v9 = vadd.f32 %v3894_v3, %v3893_v55  ;;  %v3902_v45 = vadd.f32 %v3901_v13, %v3900_v56 }
 0x2d9   :  { %v3761_v12 = vadd.f32 %v3753_v36, %v3737_v53  ;;  %v3903_v25 = vsel %vm6997_vm6, %v3819_v1, 0.0  ;;  %v3831_v11 = vadd.f32 %v3830_v50, %v3829_v33  ;;  %v3754_v52 = vmul.f32 %v3746_v27, %v6998_v48  ;;  %v7003_v48 = vld [vmem:[#allocation42_spill] sm:$0xff] }
 0x2da   :  { %v3770_v26 = vperm.slane %v6673_v15, 7  ;;  %v3777_v39 = vmul.f32 %v3769_v23, %v6999_v6  ;;  %v3784_v51 = vadd.f32 %v3776_v19, %v3760_v24  ;;  %v3839_v8 = vsel %vm7000_vm11, %v3801_v28, 0.0  ;;  %v7002_v28 = vld [vmem:[#allocation41_spill] sm:$0xff] }
 0x2db   :  { %v3762_v61 = vadd.f32 %v3754_v52, %v3738_v44  ;;  %v3904_v46 = vrot.slane %v3903_v25, 4  ;;  %v3837_v40 = vrot.slane %v3836_v30, 1  ;;  %v3945_v60 = vpack.c.bf16 %v3895_v9, %v3895_v9 }
 0x2dc   :  { %v3785_v4 = vadd.f32 %v3777_v39, %v3761_v12  ;;  %v3946_v16 = vpack.c.bf16 %v3902_v45, %v3902_v45  ;;  %v3881_v55 = vpack.c.bf16 %v3831_v11, %v3831_v11  ;;  %v3778_v33 = vmul.f32 %v3770_v26, %v7001_v62 }
 0x2dd   :  { %v3812_v56 = vadd.f32 %v6643_v31, %v3784_v51  ;;  %v3840_v63 = vrot.slane %v3839_v8, 4  ;;  %v3794_v42 = vadd.f32 %v6651_v37, %v3784_v51  ;;  %v3905_v2 = vadd.f32 %v3904_v46, %v3903_v25 }
 0x2de   :  { %v3786_v47 = vadd.f32 %v3778_v33, %v3762_v61  ;;  %v3813_v35 = vadd.f32 %v6643_v31, %v3785_v4  ;;  %v6737_v59 = vadd.f32 %v3837_v40, %v3836_v30  ;;  %v3970_v5 = vunpack.c.l.b16 %v3945_v60 }
 0x2df   :  { %v3971_v0 = vunpack.c.l.b16 %v3946_v16  ;;  %v6742_v22 = vunpack.c.l.b16 %v3881_v55  ;;  %v3820_v53 = vmax.f32 %v3812_v56, 0.0  ;;  %v3795_v49 = vadd.f32 %v6651_v37, %v3785_v4 }
 0x2e0   :  { %v6745_v24 = vadd.f32 %v3840_v63, %v3839_v8  ;;  %v3802_v29 = vmax.f32 %v3794_v42, 0.0  ;;  %v3814_v58 = vadd.f32 %v6643_v31, %v3786_v47  ;;  %v3821_v27 = vmax.f32 %v3813_v35, 0.0 }
 0x2e1   :  { %v3906_v43 = vrot.slane %v3905_v2, 2  ;;  %v3882_v36 = vpack.c.bf16 %v6737_v59, %v6737_v59  ;;  %v6756_v12 = vsel %vm3978_vm0, %v3971_v0, %v3970_v5  ;;  %v3796_v57 = vadd.f32 %v6651_v37, %v3786_v47 }
 0x2e2   :  { %v3910_v45 = vsel %vm6951_vm1, %v3820_v53, 0.0  ;;  %v3803_v25 = vmax.f32 %v3795_v49, 0.0  ;;  %v3842_v11 = vrot.slane %v6745_v24, 2  ;;  %v3846_v6 = vsel %vm7004_vm2, %v3802_v29, 0.0  ;;  %vm7018_vm2 = vmmov %vm6951_vm1 }
 0x2e3   :  { %v3822_v51 = vmax.f32 %v3814_v58, 0.0  ;;  %v6765_v8 = vadd.f32 %v3906_v43, %v3905_v2  ;;  %v3917_v61 = vsel %vm7005_vm3, %v3821_v27, 0.0  ;;  %v3911_v40 = vrot.slane %v3910_v45, 4  ;;  %v7009_v2 = vld [vmem:[#allocation40_spill] sm:$0xff]  ;;  %vm7019_vm3 = vmmov %vm6951_vm1 }
 0x2e4   :  { %v3804_v60 = vmax.f32 %v3796_v57, 0.0  ;;  %v3918_v63 = vrot.slane %v3917_v61, 4  ;;  %vm3986_vm6 = vcmask 1045509   ;;  %vm3988_vm11 = vcmask 1046534  }
 0x2e5   :  { %v3924_v47 = vsel %vm7007_vm5, %v3822_v51, 0.0  ;;  %v3912_v43 = vadd.f32 %v3911_v40, %v3910_v45  ;;  %v3843_v40 = vadd.f32 %v3842_v11, %v6745_v24 }
 0x2e6   :  { %v3860_v53 = vsel %vm7010_vm8, %v3804_v60, 0.0 }
 0x2e7   :  { %v3861_v57 = vrot.slane %v3860_v53, 4  ;;  %v3913_v51 = vrot.slane %v3912_v43, 2 }
 0x2e9   :  { %v3862_v60 = vadd.f32 %v3861_v57, %v3860_v53 }
 0x2ef   :  { %v3535_v21 = vpop.f32.mrf.mxu2  ;;  %v3588_v7 = vpop.f32.mrf.mxu3 }
 0x2f0   :  { %v3589_v15 = vadd.f32 %v3588_v7, %v3535_v21  ;;  %v3847_v21 = vrot.slane %v3846_v6, 4  ;;  %v3853_v7 = vsel %vm7006_vm4, %v3803_v25, 0.0  ;;  %vm7020_vm4 = vmmov %vm6951_vm1 }
 0x2f2   :  { %v6740_v3 = vadd.f32 %v6596_v20, %v3589_v15 }
 0x2f4   :  { %v3611_v1 = vperm.slane %v6740_v3, 0  ;;  %v3627_v13 = vperm.slane %v6740_v3, 1  ;;  %v3651_v50 = vperm.slane %v6740_v3, 2  ;;  %v3675_v19 = vperm.slane %v6740_v3, 3 }
 0x2f5   :  { %v3699_v39 = vperm.slane %v6740_v3, 4  ;;  %v3723_v55 = vperm.slane %v6740_v3, 5  ;;  %v3747_v42 = vperm.slane %v6740_v3, 6 }
 0x2f6   :  { %v3619_v23 = vmul.f32 %v3611_v1, %v6505_v54  ;;  %v3635_v44 = vmul.f32 %v3627_v13, %v7002_v28  ;;  %v3659_v52 = vmul.f32 %v3651_v50, %v7003_v48  ;;  %v3683_v16 = vmul.f32 %v3675_v19, %v6548_v18  ;;  %v7008_v18 = vld [vmem:[#allocation37_spill] sm:$0xff] }
 0x2f7   :  { %v3537_v30 = vpop.f32.mrf.mxu2  ;;  %v3590_v9 = vpop.f32.mrf.mxu3  ;;  %v3731_v1 = vmul.f32 %v3723_v55, %v6569_v17  ;;  %v3771_v13 = vperm.slane %v6740_v3, 7  ;;  %v3854_v50 = vrot.slane %v3853_v7, 4  ;;  %v3755_v28 = vmul.f32 %v3747_v42, %v6580_v34 }
 0x2f8   :  { %v3591_v26 = vadd.f32 %v3590_v9, %v3537_v30  ;;  %v3643_v54 = vadd.f32 %v3635_v44, %v3619_v23  ;;  %v3925_v44 = vrot.slane %v3924_v47, 4  ;;  %v7012_v30 = vld [vmem:[#allocation43_spill] sm:$0xff]  ;;  %v3848_v17 = vadd.f32 %v3847_v21, %v3846_v6 }
 0x2f9   :  { %v3779_v3 = vmul.f32 %v3771_v13, %v6587_v38  ;;  %v3863_v42 = vrot.slane %v3862_v60, 2  ;;  %v4051_v13 = vunpack.c.l.b16 %v3882_v36 }
 0x2fa   :  { %v6769_v4 = vadd.f32 %v6596_v20, %v3591_v26  ;;  %v3667_v46 = vadd.f32 %v3659_v52, %v3643_v54  ;;  %v3707_v20 = vmul.f32 %v3699_v39, %v6555_v32  ;;  %v7011_v32 = vld [vmem:[#allocation35_spill] sm:$0xff]  ;;  %v3919_v52 = vadd.f32 %v3918_v63, %v3917_v61 }
 0x2fb   :  { %v3855_v26 = vadd.f32 %v3854_v50, %v3853_v7  ;;  %v3849_v21 = vrot.slane %v3848_v17, 2  ;;  %v3908_v63 = vrot.slane %v6765_v8, 1 }
 0x2fc   :  { %v3612_v62 = vperm.slane %v6769_v4, 0  ;;  %v3628_v33 = vperm.slane %v6769_v4, 1  ;;  %v3652_v56 = vperm.slane %v6769_v4, 2  ;;  %v3691_v15 = vadd.f32 %v3683_v16, %v3667_v46 }
 0x2fd   :  { %v3676_v0 = vperm.slane %v6769_v4, 3  ;;  %v3700_v27 = vperm.slane %v6769_v4, 4  ;;  %v3724_v25 = vperm.slane %v6769_v4, 5  ;;  %v3748_v45 = vperm.slane %v6769_v4, 6 }
 0x2fe   :  { %v3620_v35 = vmul.f32 %v3612_v62, %v7008_v18  ;;  %v3636_v5 = vmul.f32 %v3628_v33, %v7009_v2  ;;  %v3715_v49 = vadd.f32 %v3707_v20, %v3691_v15  ;;  %v3660_v58 = vmul.f32 %v3652_v56, %v7011_v32  ;;  %v7013_v33 = vld [vmem:[#allocation44_spill] sm:$0xff] }
 0x2ff   :  { %v3684_v9 = vmul.f32 %v3676_v0, %v7012_v30  ;;  %v3708_v39 = vmul.f32 %v3700_v27, %v6571_v41  ;;  %v3926_v46 = vadd.f32 %v3925_v44, %v3924_v47  ;;  %v3732_v55 = vmul.f32 %v3724_v25, %v6562_v14 }
 0x300   :  { %v3644_v29 = vadd.f32 %v3636_v5, %v3620_v35  ;;  %v3739_v23 = vadd.f32 %v3731_v1, %v3715_v49  ;;  %v3772_v6 = vperm.slane %v6769_v4, 7  ;;  %v3920_v61 = vrot.slane %v3919_v52, 2 }
 0x301   :  { %v3856_v41 = vrot.slane %v3855_v26, 2  ;;  %v3756_v56 = vmul.f32 %v3748_v45, %v7013_v33  ;;  %v3914_v15 = vadd.f32 %v3913_v51, %v3912_v43  ;;  %v3927_v11 = vrot.slane %v3926_v46, 2 }
 0x302   :  { %v3668_v19 = vadd.f32 %v3660_v58, %v3644_v29  ;;  %v3763_v48 = vadd.f32 %v3755_v28, %v3739_v23  ;;  %v3780_v4 = vmul.f32 %v3772_v6, %v6582_v10  ;;  %v3844_v47 = vrot.slane %v3843_v40, 1 }
 0x303   :  { %v3850_v18 = vadd.f32 %v3849_v21, %v3848_v17  ;;  %v3921_v35 = vadd.f32 %v3920_v61, %v3919_v52  ;;  %v3857_v5 = vadd.f32 %v3856_v41, %v3855_v26  ;;  %v3909_v50 = vadd.f32 %v3908_v63, %v6765_v8 }
 0x304   :  { %v3692_v54 = vadd.f32 %v3684_v9, %v3668_v19  ;;  %v3787_v34 = vadd.f32 %v3779_v3, %v3763_v48  ;;  %v3915_v29 = vrot.slane %v3914_v15, 1  ;;  %v3928_v32 = vadd.f32 %v3927_v11, %v3926_v46 }
 0x305   :  { %v3864_v10 = vadd.f32 %v3863_v42, %v3862_v60  ;;  %v3922_v28 = vrot.slane %v3921_v35, 1  ;;  %v3845_v44 = vadd.f32 %v3844_v47, %v3843_v40  ;;  %v3851_v57 = vrot.slane %v3850_v18, 1 }
 0x306   :  { %v3716_v16 = vadd.f32 %v3708_v39, %v3692_v54  ;;  %v3815_v38 = vadd.f32 %v6643_v31, %v3787_v34  ;;  %v3797_v7 = vadd.f32 %v6651_v37, %v3787_v34  ;;  %v3858_v19 = vrot.slane %v3857_v5, 1 }
 0x307   :  { %v3916_v36 = vadd.f32 %v3915_v29, %v3914_v15  ;;  %v3929_v17 = vrot.slane %v3928_v32, 1  ;;  %v3947_v8 = vpack.c.bf16 %v3909_v50, %v3909_v50  ;;  %v3865_v48 = vrot.slane %v3864_v10, 1 }
 0x308   :  { %v3740_v62 = vadd.f32 %v3732_v55, %v3716_v16  ;;  %v3823_v24 = vmax.f32 %v3815_v38, 0.0  ;;  %v3805_v20 = vmax.f32 %v3797_v7, 0.0  ;;  %v3852_v54 = vadd.f32 %v3851_v57, %v3850_v18 }
 0x309   :  { %v3883_v45 = vpack.c.bf16 %v3845_v44, %v3845_v44  ;;  %v3923_v51 = vadd.f32 %v3922_v28, %v3921_v35  ;;  %v3859_v46 = vadd.f32 %v3858_v19, %v3857_v5  ;;  %v3930_v60 = vadd.f32 %v3929_v17, %v3928_v32 }
 0x30a   :  { %v3764_v14 = vadd.f32 %v3756_v56, %v3740_v62  ;;  %v3931_v2 = vsel %vm7014_vm7, %v3823_v24, 0.0  ;;  %v3867_v0 = vsel %vm7015_vm10, %v3805_v20, 0.0  ;;  %v3866_v55 = vadd.f32 %v3865_v48, %v3864_v10 }
 0x30b   :  { %v3932_v49 = vrot.slane %v3931_v2, 4  ;;  %v3868_v1 = vrot.slane %v3867_v0, 4  ;;  %v3948_v38 = vpack.c.bf16 %v3916_v36, %v3916_v36  ;;  %v3972_v61 = vunpack.c.l.b16 %v3947_v8 }
 0x30c   :  { %v3788_v53 = vadd.f32 %v3780_v4, %v3764_v14  ;;  %v3884_v33 = vpack.c.bf16 %v3852_v54, %v3852_v54  ;;  %v3949_v56 = vpack.c.bf16 %v3923_v51, %v3923_v51  ;;  %v3885_v63 = vpack.c.bf16 %v3859_v46, %v3859_v46 }
 0x30d   :  { %v3933_v27 = vadd.f32 %v3932_v49, %v3931_v2  ;;  %v3869_v23 = vadd.f32 %v3868_v1, %v3867_v0  ;;  %v4052_v15 = vunpack.c.l.b16 %v3883_v45  ;;  %v4058_v24 = vsel %vm3978_vm0, %v4051_v13, %v6742_v22 }
 0x30e   :  { %v3816_v58 = vadd.f32 %v6643_v31, %v3788_v53  ;;  %v3798_v43 = vadd.f32 %v6651_v37, %v3788_v53  ;;  %v3950_v20 = vpack.c.bf16 %v3930_v60, %v3930_v60  ;;  %v3886_v14 = vpack.c.bf16 %v3866_v55, %v3866_v55 }
 0x30f   :  { %v3934_v9 = vrot.slane %v3933_v27, 2  ;;  %v3870_v59 = vrot.slane %v3869_v23, 2  ;;  %v3973_v47 = vunpack.c.l.b16 %v3948_v38  ;;  %v3981_v18 = vsel %vm3980_vm9, %v3972_v61, %v6756_v12 }
 0x310   :  { %v3824_v30 = vmax.f32 %v3816_v58, 0.0  ;;  %v3806_v25 = vmax.f32 %v3798_v43, 0.0  ;;  %v4053_v0 = vunpack.c.l.b16 %v3884_v33  ;;  %v3974_v53 = vunpack.c.l.b16 %v3949_v56 }
 0x311   :  { %v3935_v3 = vadd.f32 %v3934_v9, %v3933_v27  ;;  %v3871_v31 = vadd.f32 %v3870_v59, %v3869_v23  ;;  %v4054_v49 = vunpack.c.l.b16 %v3885_v63  ;;  %v4059_v1 = vsel %vm3980_vm9, %v4052_v15, %v4058_v24 }
 0x312   :  { %v3938_v52 = vsel %vm7016_vm15, %v3824_v30, 0.0  ;;  %v3874_v26 = vsel %vm7017_vm14, %v3806_v25, 0.0  ;;  %v3975_v13 = vunpack.c.l.b16 %v3950_v20  ;;  %v4055_v29 = vunpack.c.l.b16 %v3886_v14 }
 0x313   :  { %v3939_v37 = vrot.slane %v3938_v52, 4  ;;  %v3875_v39 = vrot.slane %v3874_v26, 4  ;;  %v3936_v34 = vrot.slane %v3935_v3, 1  ;;  %v3872_v40 = vrot.slane %v3871_v31, 1 }
 0x314   :  { %v3983_v10 = vsel %vm3982_vm13, %v3973_v47, %v3981_v18  ;;  %v4060_v43 = vsel %vm3982_vm13, %v4053_v0, %v4059_v1  ;;  %vm3990_vm0 = vcmask 1047559  }
 0x315   :  { %v3940_v16 = vadd.f32 %v3939_v37, %v3938_v52  ;;  %v3876_v6 = vadd.f32 %v3875_v39, %v3874_v26  ;;  %v3937_v21 = vadd.f32 %v3936_v34, %v3935_v3  ;;  %v3873_v7 = vadd.f32 %v3872_v40, %v3871_v31  ;;  %v4115_v52 = vld [vmem:[%s6841_s10] sm:$0x3]  ;;  %s4748_s10 = smov [#allocation16]  }
 0x316   :  { %v3985_v23 = vsel %vm3984_vm12, %v3974_v53, %v3983_v10  ;;  %v4061_v28 = vsel %vm3984_vm12, %v4054_v49, %v4060_v43  ;;  %v4117_v31 = vperm.slane %v4115_v52, 0  ;;  %v4118_v26 = vperm.slane %v4115_v52, 1  ;;  %s4171_s21 = sshll.u32 %s4748_s10, 4  ;;  %s4172_s21 = int_to_ptr.vmem [resolvable:$true] %s4171_s21 }
 0x317   :  { %v3941_v41 = vrot.slane %v3940_v16, 2  ;;  %v3877_v62 = vrot.slane %v3876_v6, 2  ;;  %v3951_v4 = vpack.c.bf16 %v3937_v21, %v3937_v21  ;;  %v3887_v35 = vpack.c.bf16 %v3873_v7, %v3873_v7 }
 0x318   :  { %v3987_v57 = vsel %vm3986_vm6, %v3975_v13, %v3985_v23  ;;  %v4062_v30 = vsel %vm3986_vm6, %v4055_v29, %v4061_v28 }
 0x319   :  { %v3942_v11 = vadd.f32 %v3941_v41, %v3940_v16  ;;  %v3878_v42 = vadd.f32 %v3877_v62, %v3876_v6  ;;  %v3976_v32 = vunpack.c.l.b16 %v3951_v4  ;;  %v4056_v58 = vunpack.c.l.b16 %v3887_v35 }
 0x31a   :  { %v4139_v62 = vlaneseq }
 0x31b   :  { %v3943_v2 = vrot.slane %v3942_v11, 1  ;;  %v3879_v5 = vrot.slane %v3878_v42, 1  ;;  %v3989_v9 = vsel %vm3988_vm11, %v3976_v32, %v3987_v57  ;;  %v4063_v25 = vsel %vm3988_vm11, %v4056_v58, %v4062_v30 }
 0x31c   :  { %v4140_v63 = vand.u32 127, %v4139_v62 }
 0x31d   :  { %v3944_v22 = vadd.f32 %v3943_v2, %v3942_v11  ;;  %v3880_v50 = vadd.f32 %v3879_v5, %v3878_v42 }
 0x31e   :  { %vm4141_vm7 = vcmp.lt.s32.totalorder %v4140_v63, 3 }
 0x31f   :  { %v3952_v12 = vpack.c.bf16 %v3944_v22, %v3944_v22  ;;  %v3888_v27 = vpack.c.bf16 %v3880_v50, %v3880_v50 }
 0x321   :  { %v3977_v44 = vunpack.c.l.b16 %v3952_v12  ;;  %v4057_v19 = vunpack.c.l.b16 %v3888_v27 }
 0x323   :  { %v3991_v59 = vsel %vm3990_vm0, %v3977_v44, %v3989_v9  ;;  %v4064_v36 = vsel %vm3990_vm0, %v4057_v19, %v4063_v25 }
 0x324   :  { %v3992_v17 = vpack.c.b16 %v3991_v59, %v3991_v59  ;;  %v4065_v8 = vpack.c.b16 %v4064_v36, %v4064_v36 }
 0x326   :  { %4299 = vmatmul.msk.bf16.vlgmr.msrb.gmra.mxu0 %vm6951_vm1, %v3992_v17  ;;  %4300 = vmatmul.msk.bf16.vlgmr.msrb.gmra.mxu1 %vm7018_vm2, %v3992_v17 }
 0x327   :  { %4317 = vmatmul.msk.bf16.vlgmr.msrb.gmra.mxu2 %vm7019_vm3, %v4065_v8  ;;  %4318 = vmatmul.msk.bf16.vlgmr.msrb.gmra.mxu3 %vm7020_vm4, %v4065_v8 }
 0x3a3   :  { %v4025_v48 = vpop.f32.mrf.mxu0  ;;  %v4038_v3 = vpop.f32.mrf.mxu1 }
 0x3aa   :  { %v4098_v37 = vpop.f32.mrf.mxu2  ;;  %v4111_v54 = vpop.f32.mrf.mxu3 }
 0x3ab   :  { %v4099_v39 = vadd.f32 %v4098_v37, %v4025_v48  ;;  %v4112_v45 = vadd.f32 %v4111_v54, %v4038_v3  ;;  %v4027_v51 = vpop.f32.mrf.mxu0  ;;  %v4040_v34 = vpop.f32.mrf.mxu1 }
 0x3ad   :  { %v4121_v46 = vadd.f32 %v4117_v31, %v4099_v39  ;;  %v4122_v40 = vadd.f32 %v4118_v26, %v4112_v45 }
 0x3af   :  { %v4123_v60 = vmul.f32 %v4121_v46, %v4121_v46  ;;  %v4124_v16 = vmul.f32 %v4122_v40, %v4122_v40 }
 0x3b1   :  { %v4125_v55 = vadd.f32 %v4124_v16, %v4123_v60 }
 0x3b2   :  { %v4100_v6 = vpop.f32.mrf.mxu2  ;;  %v4113_v21 = vpop.f32.mrf.mxu3 }
 0x3b3   :  { %4483 = vrsqrt.f32 %v4125_v55  ;;  %vm4133_vm5 = vcmp.eq.f32.partialorder %v4125_v55, inf  ;;  %v4136_v24 = vand.u32 2147483648, %v4125_v55  ;;  %vm4135_vm8 = vcmp.eq.f32.partialorder %v4125_v55, 0.0 }
 0x3b9   :  { %v4484_v38 = vpop.eup %4483 }
 0x3ba   :  { %v4127_v61 = vmul.f32 %v4484_v38, %v4125_v55 }
 0x3bc   :  { %v4128_v7 = vmul.f32 %v4484_v38, %v4127_v61 }
 0x3be   :  { %v4129_v41 = vmul.f32 0.5, %v4128_v7 }
 0x3c0   :  { %v4130_v33 = vsub.f32 1.5, %v4129_v41 }
 0x3c2   :  { %v4131_v56 = vmul.f32 %v4484_v38, %v4130_v33 }
 0x3c4   :  { %v4132_v15 = vmul.f32 %v4131_v56, %v4125_v55 }
 0x3c6   :  { %v4134_v11 = vsel %vm4133_vm5, %v4125_v55, %v4132_v15 }
 0x3c7   :  { %v4137_v20 = vsel %vm4135_vm8, %v4136_v24, %v4134_v11 }
 0x3c8   :  { %v4138_v42 = vmul.f32 0.6666667, %v4137_v20 }
 0x3ca   :  { %v4142_v14 = vsel %vm4141_vm7, %v4138_v42, -1e+30 }
 0x3cb   :  { %4143 = vmax.xlane.f32.xlu2 %v4142_v14 }
 0x43e   :  { %v4144_v4 = vpop.xlane.xlu2 %4143 }
 0x43f   :  { %v4145_v47 = vsub.f32 %v4142_v14, %v4144_v4 }
 0x441   :  { %v4146_v18 = vmul.f32 1.442695, %v4145_v47 }
 0x443   :  { %4485 = vpow2.f32 %v4146_v18 }
 0x449   :  { %v4486_v35 = vpop.eup %4485 }
 0x44a   :  { %4148 = vadd.xlane.f32.xlu1 %v4486_v35 }
 0x4bd   :  { %v4149_v2 = vpop.xlane.xlu1 %4148 }
 0x4be   :  { %4487 = vrcp.f32 %v4149_v2  ;;  %v4161_v49 = vand.u32 2147483648, %v4149_v2  ;;  %v4159_v22 = vand.u32 2147483647, %v4149_v2  ;;  %vm4155_vm15 = vweird.f32 %v4149_v2 }
 0x4c0   :  { %v4162_v50 = vor.u32 1.1754944e-38, %v4161_v49  ;;  %vm4160_vm9 = vcmp.eq.f32.partialorder %v4159_v22, 8.507059e+37 }
 0x4c4   :  { %v4488_v5 = vpop.eup %4487 }
 0x4c5   :  { %v4151_v0 = vmul.f32 %v4488_v5, %v4149_v2  ;;  %vm4156_vm10 = vweird.f32 %v4488_v5 }
 0x4c6   :  { %vm4157_vm14 = vmor %vm4155_vm15, %vm4156_vm10 }
 0x4c7   :  { %v4152_v53 = vsub.f32 1.0, %v4151_v0 }
 0x4c9   :  { %v4153_v1 = vmul.f32 %v4488_v5, %v4152_v53 }
 0x4cb   :  { %v4154_v13 = vadd.f32 %v4488_v5, %v4153_v1 }
 0x4cd   :  { %v4158_v29 = vsel %vm4157_vm14, %v4488_v5, %v4154_v13 }
 0x4ce   :  { %v4163_v32 = vsel %vm4160_vm9, %v4162_v50, %v4158_v29 }
 0x4cf   :  { %v4164_v10 = vmul.f32 %v4486_v35, %v4163_v32 }
 0x4d1   :  { %4165 = vst [vmem:[#allocation16] sm:$0xff] %v4164_v10 }
 0x4d2   :  { %4176 = dma.vmem_to_hbm [thread:$0]  %s4172_s21, 128, %s4174_s25, [#allocation4]  }
 0x4d3   :  { %4720 = dma.done.wait [#allocation4], 128  }
 0x4d4   :  { %4721 = vsyncadd [#allocation4], 4294967168 }
 0x4d5   :  { %4181 = vsyncpa [#allocation3], 1 }
 0x4d6   :  { %4182 = vsyncpa [#allocation6], 1 }
 0x4d7   :  { %4183 = vsyncpa [#allocation9], 1 }
 0x4d8   :  { %4184 = vsyncpa [#allocation12], 1 }
 0x4d9   :  { %4185 = vsyncpa [#allocation15], 1 }
 0x4da   :  { %4186 = vsyncpa [#allocation4], 1 }

</bundles_post_ra>
